<compile_context>
chip_gen: v7x
topology: tpu7x:2x2x1
jax: 0.10.0
libtpu: 0.0.40
codegen_flags: <defaults>
</compile_context>

<pallas_src>
import jax
import jax.numpy as jnp
from jax import lax
from jax.experimental import pallas as pl
from jax.experimental.pallas import tpu as pltpu  # noqa: F401  (TPU backend)

# ----------------------------------------------------------------------------
# Synthetic "label file" (parse_label equivalent) and CRF tag constants.
# ----------------------------------------------------------------------------
LABEL_LST = ["[BOS]", "[EOS]", "O", "B-PER", "I-PER", "B-LOC", "I-LOC", "B-MISC"]
NUM_LABELS = len(LABEL_LST)          # 8
BOS_TAG_ID = 0                       # crf.Const.BOS_TAG_ID
EOS_TAG_ID = 1                       # crf.Const.EOS_TAG_ID
PAD_TAG_ID = LABEL_LST.index("O")    # pad_token_label_id == label index of 'O'
IGNORE_INDEX = -100                  # torch.nn.CrossEntropyLoss().ignore_index

# Model hyper-parameters (small synthetic KoBERT).
B, S = 2, 8
H, N_HEADS, D_HEAD = 32, 4, 8
INTER = 128
N_LAYERS = 2
VOCAB = 64
MAX_POS = 64
N_TYPES = 2
N_TYPES_PAD = 8                      # pad type-embedding table for clean matmul
EMB_ROWS = VOCAB + N_TYPES_PAD + S   # concat table: words | types | positions
L = NUM_LABELS
ATTN_SCALE = 1.0 / (D_HEAD ** 0.5)


# ----------------------------------------------------------------------------
# The single fused Pallas kernel
# ----------------------------------------------------------------------------
def _fused_forward_kernel(
        idx_ref, addmask_ref, labels_ref,
        emb_table_ref, emb_ln_g_ref, emb_ln_b_ref,
        wqkv_ref, bqkv_ref, wo_ref, bo_ref,
        w1_ref, b1_ref, w2_ref, b2_ref,
        ln1_g_ref, ln1_b_ref, ln2_g_ref, ln2_b_ref,
        cls_w_ref, cls_b_ref, trans_ref, eos_row_ref,
        nll_ref, tags_ref):
    BS = B * S

    def ln(x, g, b):
        mean = jnp.mean(x, axis=-1, keepdims=True)
        var = jnp.mean((x - mean) ** 2, axis=-1, keepdims=True)
        return (x - mean) * lax.rsqrt(var + 1e-12) * g + b

    # ------------- embeddings: ONE fused one-hot gather-matmul -------------
    idx = idx_ref[...]                                        # (BS, 2) int32
    word_id = idx[:, 0:1]                                     # (BS, 1)
    type_id = idx[:, 1:2]                                     # (BS, 1), offset by VOCAB
    col_iota = lax.broadcasted_iota(jnp.int32, (BS, EMB_ROWS), 1)
    # position id per flattened row: r mod S (S is a power of two -> bit-and),
    # offset into the position block of the concatenated table.
    pos_id = ((lax.broadcasted_iota(jnp.int32, (BS, 1), 0) & (S - 1))
              + (VOCAB + N_TYPES_PAD))                        # (BS, 1)
    onehot = ((col_iota == word_id) | (col_iota == type_id)
              | (col_iota == pos_id)).astype(jnp.float32)     # (BS, EMB_ROWS)
    emb = jnp.dot(onehot, emb_table_ref[...],
                  preferred_element_type=jnp.float32)         # (BS, H) = w+t+p
    h = ln(emb, emb_ln_g_ref[...], emb_ln_b_ref[...])

    # ---------------- transformer encoder layers ----------------
    for layer in range(N_LAYERS):
        # fused QKV projection: one (H, 3H) matmul
        qkv = (jnp.dot(h, wqkv_ref[layer], preferred_element_type=jnp.float32)
               + bqkv_ref[layer])                             # (BS, 3H)

        ctx_rows = []
        for b in range(B):
            r0 = b * S
            q_b = qkv[r0:r0 + S, 0:H]                         # (S, H)
            k_b = qkv[r0:r0 + S, H:2 * H]
            v_b = qkv[r0:r0 + S, 2 * H:3 * H]
            amask = addmask_ref[b]                            # (1, S) additive
            heads = []
            for hh in range(N_HEADS):
                c0 = hh * D_HEAD
                qh = q_b[:, c0:c0 + D_HEAD]                   # (S, dH)
                kh = k_b[:, c0:c0 + D_HEAD]
                vh = v_b[:, c0:c0 + D_HEAD]
                s = lax.dot_general(qh, kh, (((1,), (1,)), ((), ())),
                                    preferred_element_type=jnp.float32)
                s = s * ATTN_SCALE + amask                    # (S, S)
                s = s - jnp.max(s, axis=-1, keepdims=True)
                p = jnp.exp(s)
                p = p / jnp.sum(p, axis=-1, keepdims=True)
                heads.append(jnp.dot(p, vh, preferred_element_type=jnp.float32))
            ctx_rows.append(jnp.concatenate(heads, axis=1))   # (S, H)
        ctx = jnp.concatenate(ctx_rows, axis=0)               # (BS, H)

        attn = (jnp.dot(ctx, wo_ref[layer], preferred_element_type=jnp.float32)
                + bo_ref[layer])
        h1 = ln(attn + h, ln1_g_ref[layer], ln1_b_ref[layer])
        ff = (jnp.dot(h1, w1_ref[layer], preferred_element_type=jnp.float32)
              + b1_ref[layer])
        ff = jax.nn.gelu(ff, approximate=True)
        ff = (jnp.dot(ff, w2_ref[layer], preferred_element_type=jnp.float32)
              + b2_ref[layer])
        h = ln(ff + h1, ln2_g_ref[layer], ln2_b_ref[layer])

    # -------- classifier (fused; emissions never leave VMEM) --------
    em2d = (jnp.dot(h, cls_w_ref[...], preferred_element_type=jnp.float32)
            + cls_b_ref[...])                                 # (BS, L)

    # per-timestep emission slabs (B, L), statically sliced
    ems = []
    for t in range(S):
        ems.append(jnp.concatenate(
            [em2d[b * S + t: b * S + t + 1, :] for b in range(B)], axis=0))

    # -------- CRF (mask == all ones, as in the reference call) --------
    labels = labels_ref[...]                                  # (B, S) int32
    labels = jnp.where(labels == IGNORE_INDEX, PAD_TAG_ID, labels)

    T = trans_ref[...]                                        # (L, L) T[prev, cur]
    eos_row = eos_row_ref[...]                                # (1, L)
    bos_row = T[BOS_TAG_ID:BOS_TAG_ID + 1, :]                 # (1, L)

    # loop-invariant broadcasts / iotas hoisted once
    lane = lax.broadcasted_iota(jnp.int32, (B, L), 1)         # (B, L)
    Tb = jnp.broadcast_to(T[None, :, :], (B, L, L))           # (B, prev, cur)
    prev_idx = lax.broadcasted_iota(jnp.int32, (B, L, L), 1)  # backpointer iota

    tag0 = labels[:, 0:1]                                     # (B, 1)
    oh = (lane == tag0).astype(jnp.float32)                   # (B, L)
    gold = jnp.sum((bos_row + ems[0]) * oh, axis=1, keepdims=True)
    alphas = bos_row + ems[0]                                 # log-partition state
    valphas = alphas                                          # Viterbi state
    backptrs = []

    # single merged, fully-unrolled pass over the sequence
    for t in range(1, S):
        e_t = ems[t]                                          # (B, L)
        # gold-path score
        cur = labels[:, t:t + 1]
        cur_oh = (lane == cur).astype(jnp.float32)
        gold = gold + jnp.sum(e_t * cur_oh, axis=1, keepdims=True)
        gold = gold + jnp.sum(
            jnp.dot(oh, T, preferred_element_type=jnp.float32) * cur_oh,
            axis=1, keepdims=True)
        oh = cur_oh
        # shared transition + emission term
        te = Tb + e_t[:, None, :]                             # (B, prev, cur)
        # forward algorithm (logsumexp over prev)
        sc = alphas[:, :, None] + te
        m = jnp.max(sc, axis=1)                               # (B, L)
        alphas = m + jnp.log(jnp.sum(jnp.exp(sc - m[:, None, :]), axis=1))
        # Viterbi (max / first-index argmax over prev)
        vsc = valphas[:, :, None] + te
        vmx = jnp.max(vsc, axis=1)                            # (B, L)
        cand = jnp.where(vsc == vmx[:, None, :], prev_idx, L)
        backptrs.append(jnp.min(cand, axis=1).astype(jnp.int32))  # (B, L)
        valphas = vmx

    # terminate with EOS transition
    gold = gold + jnp.sum(oh * eos_row, axis=1, keepdims=True)
    end = alphas + eos_row
    m_end = jnp.max(end, axis=1, keepdims=True)
    log_z = m_end + jnp.log(jnp.sum(jnp.exp(end - m_end), axis=1, keepdims=True))
    # nll = sum_b (logZ_b - gold_b)
    nll_ref[...] = jnp.sum(log_z - gold, keepdims=True)

    vend = valphas + eos_row
    vmax = jnp.max(vend, axis=1, keepdims=True)               # (B, 1)
    best = jnp.min(jnp.where(vend == vmax, lane, L), axis=1,
                   keepdims=True).astype(jnp.int32)           # (B, 1)

    # unrolled backtracking
    path = [best]
    cur_best = best
    for t in range(S - 1, 0, -1):
        bp_t = backptrs[t - 1]                                # (B, L)
        sel = (lane == cur_best).astype(jnp.int32)
        cur_best = jnp.sum(bp_t * sel, axis=1, keepdims=True)  # (B, 1)
        path.append(cur_best)
    path.reverse()
    tags_ref[...] = jnp.concatenate(path, axis=1)             # (B, S)


# ----------------------------------------------------------------------------
# Host wrapper: one pallas_call for the whole forward.
# ----------------------------------------------------------------------------
def kobert_crf_forward(params, input_ids, attention_mask, labels, token_type_ids):
    addmask = ((1.0 - attention_mask.astype(jnp.float32)) * -10000.0
               ).reshape(B, 1, S)
    ids2d = input_ids.reshape(B * S, 1).astype(jnp.int32)
    types2d = token_type_ids.reshape(B * S, 1).astype(jnp.int32) + VOCAB
    idx2d = jnp.concatenate([ids2d, types2d], axis=1)         # (BS, 2)
    eos_row = params["crf_trans"][:, EOS_TAG_ID][None, :]     # (1, L)

    nll, vit_tags = pl.pallas_call(
        _fused_forward_kernel,
        out_shape=(jax.ShapeDtypeStruct((1, 1), jnp.float32),
                   jax.ShapeDtypeStruct((B, S), jnp.int32)),
    )(idx2d, addmask, labels.astype(jnp.int32),
      params["emb_table"], params["emb_ln_g"], params["emb_ln_b"],
      params["wqkv"], params["bqkv"], params["wo"], params["bo"],
      params["w1"], params["b1"], params["w2"], params["b2"],
      params["ln1_g"], params["ln1_b"], params["ln2_g"], params["ln2_b"],
      params["cls_w"], params["cls_b"], params["crf_trans"], eos_row)

    # torch.Tensor(tags) -> float tensor (B, S)
    return nll[0, 0], vit_tags.astype(jnp.float32)


# ----------------------------------------------------------------------------
# Deterministic parameter init (synthetic KoBERT, fused/stacked layout)
# ----------------------------------------------------------------------------
def init_params(key):
    n_keys = 3 + 4 * N_LAYERS + 2
    keys = iter(jax.random.split(key, n_keys))

    def w(k, fi, fo):
        return 0.02 * jax.random.normal(k, (fi, fo), jnp.float32)

    word_emb = 0.02 * jax.random.normal(next(keys), (VOCAB, H), jnp.float32)
    pos_emb = 0.02 * jax.random.normal(next(keys), (MAX_POS, H), jnp.float32)
    type_emb_pad = jnp.zeros((N_TYPES_PAD, H), jnp.float32).at[:N_TYPES].set(
        0.02 * jax.random.normal(next(keys), (N_TYPES, H), jnp.float32))

    params = {
        # concatenated gather table: words | padded types | first-S positions
        "emb_table": jnp.concatenate([word_emb, type_emb_pad, pos_emb[:S]],
                                     axis=0),                  # (EMB_ROWS, H)
        "emb_ln_g": jnp.ones((1, H), jnp.float32),
        "emb_ln_b": jnp.zeros((1, H), jnp.float32),
    }

    wqkv, wo, w1, w2 = [], [], [], []
    for _ in range(N_LAYERS):
        wqkv.append(w(next(keys), H, 3 * H))   # fused Wq|Wk|Wv
        wo.append(w(next(keys), H, H))
        w1.append(w(next(keys), H, INTER))
        w2.append(w(next(keys), INTER, H))
    params["wqkv"] = jnp.stack(wqkv)                               # (NL, H, 3H)
    params["bqkv"] = jnp.zeros((N_LAYERS, 1, 3 * H), jnp.float32)
    params["wo"] = jnp.stack(wo)                                   # (NL, H, H)
    params["bo"] = jnp.zeros((N_LAYERS, 1, H), jnp.float32)
    params["w1"] = jnp.stack(w1)                                   # (NL, H, INTER)
    params["b1"] = jnp.zeros((N_LAYERS, 1, INTER), jnp.float32)
    params["w2"] = jnp.stack(w2)                                   # (NL, INTER, H)
    params["b2"] = jnp.zeros((N_LAYERS, 1, H), jnp.float32)
    params["ln1_g"] = jnp.ones((N_LAYERS, 1, H), jnp.float32)
    params["ln1_b"] = jnp.zeros((N_LAYERS, 1, H), jnp.float32)
    params["ln2_g"] = jnp.ones((N_LAYERS, 1, H), jnp.float32)
    params["ln2_b"] = jnp.zeros((N_LAYERS, 1, H), jnp.float32)

    params["cls_w"] = w(next(keys), H, L)
    params["cls_b"] = jnp.zeros((1, L), jnp.float32)

    # CRF transitions: uniform(-0.1, 0.1) with BOS/EOS/PAD constraints.
    trans = jax.random.uniform(next(keys), (L, L), jnp.float32, -0.1, 0.1)
    trans = trans.at[:, BOS_TAG_ID].set(-10000.0)
    trans = trans.at[EOS_TAG_ID, :].set(-10000.0)
    trans = trans.at[PAD_TAG_ID, :].set(-10000.0)
    trans = trans.at[:, PAD_TAG_ID].set(-10000.0)
    trans = trans.at[PAD_TAG_ID, EOS_TAG_ID].set(0.0)
    trans = trans.at[PAD_TAG_ID, PAD_TAG_ID].set(0.0)
    params["crf_trans"] = trans
    return params


# ----------------------------------------------------------------------------
# main
# ----------------------------------------------------------------------------
if __name__ == "__main__":
    key = jax.random.PRNGKey(0)
    kp, k_ids, k_lab = jax.random.split(key, 3)

    params = init_params(kp)

    input_ids = jax.random.randint(k_ids, (B, S), 0, VOCAB, dtype=jnp.int32)
    token_type_ids = jnp.zeros((B, S), jnp.int32)
    attention_mask = jnp.ones((B, S), jnp.int32).at[1, 6:].set(0)
    labels = jax.random.randint(k_lab, (B, S), PAD_TAG_ID, L, dtype=jnp.int32)
    labels = labels.at[0, 0].set(IGNORE_INDEX)   # exercise ignore_index path

    fwd = jax.jit(kobert_crf_forward)
    nll, tags = fwd(params, input_ids, attention_mask, labels, token_type_ids)
    jax.block_until_ready((nll, tags))

    assert nll.shape == () and tags.shape == (B, S)
    print("KERNEL_OK")
</pallas_src>

<mosaic_0001>
module attributes {stable_mosaic.version = 11 : i64} {
  func.func @_fused_forward_kernel(%arg0: memref<16x2xi32, #tpu.memory_space<vmem>>, %arg1: memref<2x1x8xf32, #tpu.memory_space<vmem>>, %arg2: memref<2x8xi32, #tpu.memory_space<vmem>>, %arg3: memref<80x32xf32, #tpu.memory_space<vmem>>, %arg4: memref<1x32xf32, #tpu.memory_space<vmem>>, %arg5: memref<1x32xf32, #tpu.memory_space<vmem>>, %arg6: memref<2x32x96xf32, #tpu.memory_space<vmem>>, %arg7: memref<2x1x96xf32, #tpu.memory_space<vmem>>, %arg8: memref<2x32x32xf32, #tpu.memory_space<vmem>>, %arg9: memref<2x1x32xf32, #tpu.memory_space<vmem>>, %arg10: memref<2x32x128xf32, #tpu.memory_space<vmem>>, %arg11: memref<2x1x128xf32, #tpu.memory_space<vmem>>, %arg12: memref<2x128x32xf32, #tpu.memory_space<vmem>>, %arg13: memref<2x1x32xf32, #tpu.memory_space<vmem>>, %arg14: memref<2x1x32xf32, #tpu.memory_space<vmem>>, %arg15: memref<2x1x32xf32, #tpu.memory_space<vmem>>, %arg16: memref<2x1x32xf32, #tpu.memory_space<vmem>>, %arg17: memref<2x1x32xf32, #tpu.memory_space<vmem>>, %arg18: memref<32x8xf32, #tpu.memory_space<vmem>>, %arg19: memref<1x8xf32, #tpu.memory_space<vmem>>, %arg20: memref<8x8xf32, #tpu.memory_space<vmem>>, %arg21: memref<1x8xf32, #tpu.memory_space<vmem>>, %arg22: memref<1x1xf32, #tpu.memory_space<vmem>>, %arg23: memref<2x8xi32, #tpu.memory_space<vmem>>) attributes {dimension_semantics = [], scalar_prefetch = 0 : i64, scratch_operands = 0 : i64, tpu.core_type = #tpu.core_type<tc>} {
    %c0 = arith.constant 0 : index
    %c0_0 = arith.constant 0 : index
    %0 = vector.load %arg0[%c0, %c0_0] : memref<16x2xi32, #tpu.memory_space<vmem>>, vector<16x2xi32>
    %1 = vector.extract_strided_slice %0 {offsets = [0, 0], sizes = [16, 1], strides = [1, 1]} : vector<16x2xi32> to vector<16x1xi32>
    %2 = vector.extract_strided_slice %0 {offsets = [0, 1], sizes = [16, 1], strides = [1, 1]} : vector<16x2xi32> to vector<16x1xi32>
    %3 = tpu.iota {dimensions = array<i32: 1>} : vector<16x80xi32>
    %4 = tpu.iota {dimensions = array<i32: 0>} : vector<16x1xi32>
    %c7_i32 = arith.constant 7 : i32
    %5 = vector.broadcast %c7_i32 : i32 to vector<16x1xi32>
    %6 = arith.andi %4, %5 : vector<16x1xi32>
    %c72_i32 = arith.constant 72 : i32
    %7 = vector.broadcast %c72_i32 : i32 to vector<16x1xi32>
    %8 = arith.addi %6, %7 : vector<16x1xi32>
    %9 = vector.broadcast %1 : vector<16x1xi32> to vector<16x80xi32>
    %10 = arith.cmpi eq, %3, %9 : vector<16x80xi32>
    %11 = vector.broadcast %2 : vector<16x1xi32> to vector<16x80xi32>
    %12 = arith.cmpi eq, %3, %11 : vector<16x80xi32>
    %13 = arith.ori %10, %12 : vector<16x80xi1>
    %14 = vector.broadcast %8 : vector<16x1xi32> to vector<16x80xi32>
    %15 = arith.cmpi eq, %3, %14 : vector<16x80xi32>
    %16 = arith.ori %13, %15 : vector<16x80xi1>
    %17 = arith.extui %16 : vector<16x80xi1> to vector<16x80xi32>
    %18 = arith.sitofp %17 : vector<16x80xi32> to vector<16x80xf32>
    %c0_1 = arith.constant 0 : index
    %c0_2 = arith.constant 0 : index
    %19 = vector.load %arg3[%c0_1, %c0_2] : memref<80x32xf32, #tpu.memory_space<vmem>>, vector<80x32xf32>
    %cst = arith.constant dense<0.000000e+00> : vector<16x32xf32>
    %20 = tpu.matmul %18, %19, %cst {dimension_numbers = #tpu.dot_dimension_numbers<[1], [0], [0], [1], [0, 0, 1, 1], [], []>} : vector<16x80xf32>, vector<80x32xf32>, vector<16x32xf32> -> vector<16x32xf32>
    %c0_3 = arith.constant 0 : index
    %c0_4 = arith.constant 0 : index
    %21 = vector.load %arg4[%c0_3, %c0_4] : memref<1x32xf32, #tpu.memory_space<vmem>>, vector<1x32xf32>
    %c0_5 = arith.constant 0 : index
    %c0_6 = arith.constant 0 : index
    %22 = vector.load %arg5[%c0_5, %c0_6] : memref<1x32xf32, #tpu.memory_space<vmem>>, vector<1x32xf32>
    %cst_7 = arith.constant dense<0.000000e+00> : vector<16xf32>
    %23 = vector.multi_reduction <add>, %20, %cst_7 [1] : vector<16x32xf32> to vector<16xf32>
    %24 = vector.shape_cast %23 : vector<16xf32> to vector<16x1xf32>
    %cst_8 = arith.constant 3.200000e+01 : f32
    %25 = vector.broadcast %cst_8 : f32 to vector<16x1xf32>
    %26 = arith.divf %24, %25 : vector<16x1xf32>
    %27 = vector.broadcast %26 : vector<16x1xf32> to vector<16x32xf32>
    %28 = arith.subf %20, %27 : vector<16x32xf32>
    %29 = arith.mulf %28, %28 : vector<16x32xf32>
    %cst_9 = arith.constant dense<0.000000e+00> : vector<16xf32>
    %30 = vector.multi_reduction <add>, %29, %cst_9 [1] : vector<16x32xf32> to vector<16xf32>
    %31 = vector.shape_cast %30 : vector<16xf32> to vector<16x1xf32>
    %cst_10 = arith.constant 3.200000e+01 : f32
    %32 = vector.broadcast %cst_10 : f32 to vector<16x1xf32>
    %33 = arith.divf %31, %32 : vector<16x1xf32>
    %34 = vector.broadcast %26 : vector<16x1xf32> to vector<16x32xf32>
    %35 = arith.subf %20, %34 : vector<16x32xf32>
    %cst_11 = arith.constant 9.99999996E-13 : f32
    %36 = vector.broadcast %cst_11 : f32 to vector<16x1xf32>
    %37 = arith.addf %33, %36 : vector<16x1xf32>
    %38 = math.rsqrt %37 : vector<16x1xf32>
    %39 = vector.broadcast %38 : vector<16x1xf32> to vector<16x32xf32>
    %40 = arith.mulf %35, %39 : vector<16x32xf32>
    %41 = vector.broadcast %21 : vector<1x32xf32> to vector<16x32xf32>
    %42 = arith.mulf %40, %41 : vector<16x32xf32>
    %43 = vector.broadcast %22 : vector<1x32xf32> to vector<16x32xf32>
    %44 = arith.addf %42, %43 : vector<16x32xf32>
    %c0_12 = arith.constant 0 : index
    %c0_13 = arith.constant 0 : index
    %c0_14 = arith.constant 0 : index
    %45 = vector.load %arg6[%c0_12, %c0_13, %c0_14] : memref<2x32x96xf32, #tpu.memory_space<vmem>>, vector<1x32x96xf32>
    %46 = vector.shape_cast %45 : vector<1x32x96xf32> to vector<32x96xf32>
    %cst_15 = arith.constant dense<0.000000e+00> : vector<16x96xf32>
    %47 = tpu.matmul %44, %46, %cst_15 {dimension_numbers = #tpu.dot_dimension_numbers<[1], [0], [0], [1], [0, 0, 1, 1], [], []>} : vector<16x32xf32>, vector<32x96xf32>, vector<16x96xf32> -> vector<16x96xf32>
    %c0_16 = arith.constant 0 : index
    %c0_17 = arith.constant 0 : index
    %c0_18 = arith.constant 0 : index
    %48 = vector.load %arg7[%c0_16, %c0_17, %c0_18] : memref<2x1x96xf32, #tpu.memory_space<vmem>>, vector<1x1x96xf32>
    %49 = vector.shape_cast %48 : vector<1x1x96xf32> to vector<1x96xf32>
    %50 = vector.broadcast %49 : vector<1x96xf32> to vector<16x96xf32>
    %51 = arith.addf %47, %50 : vector<16x96xf32>
    %52 = vector.extract_strided_slice %51 {offsets = [0, 0], sizes = [8, 32], strides = [1, 1]} : vector<16x96xf32> to vector<8x32xf32>
    %53 = vector.extract_strided_slice %51 {offsets = [0, 32], sizes = [8, 32], strides = [1, 1]} : vector<16x96xf32> to vector<8x32xf32>
    %54 = vector.extract_strided_slice %51 {offsets = [0, 64], sizes = [8, 32], strides = [1, 1]} : vector<16x96xf32> to vector<8x32xf32>
    %c0_19 = arith.constant 0 : index
    %c0_20 = arith.constant 0 : index
    %c0_21 = arith.constant 0 : index
    %55 = vector.load %arg1[%c0_19, %c0_20, %c0_21] : memref<2x1x8xf32, #tpu.memory_space<vmem>>, vector<1x1x8xf32>
    %56 = vector.shape_cast %55 : vector<1x1x8xf32> to vector<1x8xf32>
    %57 = vector.extract_strided_slice %52 {offsets = [0, 0], sizes = [8, 8], strides = [1, 1]} : vector<8x32xf32> to vector<8x8xf32>
    %58 = vector.extract_strided_slice %53 {offsets = [0, 0], sizes = [8, 8], strides = [1, 1]} : vector<8x32xf32> to vector<8x8xf32>
    %59 = vector.extract_strided_slice %54 {offsets = [0, 0], sizes = [8, 8], strides = [1, 1]} : vector<8x32xf32> to vector<8x8xf32>
    %cst_22 = arith.constant dense<0.000000e+00> : vector<8x8xf32>
    %60 = tpu.matmul %57, %58, %cst_22 {dimension_numbers = #tpu.dot_dimension_numbers<[1], [1], [0], [0], [0, 0, 1, 0], [], []>} : vector<8x8xf32>, vector<8x8xf32>, vector<8x8xf32> -> vector<8x8xf32>
    %cst_23 = arith.constant 0.353553385 : f32
    %61 = vector.broadcast %cst_23 : f32 to vector<8x8xf32>
    %62 = arith.mulf %60, %61 : vector<8x8xf32>
    %63 = vector.broadcast %56 : vector<1x8xf32> to vector<8x8xf32>
    %64 = arith.addf %62, %63 : vector<8x8xf32>
    %cst_24 = arith.constant dense<0xFF800000> : vector<8xf32>
    %65 = vector.multi_reduction <maximumf>, %64, %cst_24 [1] : vector<8x8xf32> to vector<8xf32>
    %66 = vector.shape_cast %65 : vector<8xf32> to vector<8x1xf32>
    %67 = vector.broadcast %66 : vector<8x1xf32> to vector<8x8xf32>
    %68 = arith.subf %64, %67 : vector<8x8xf32>
    %69 = math.exp %68 : vector<8x8xf32>
    %cst_25 = arith.constant dense<0.000000e+00> : vector<8xf32>
    %70 = vector.multi_reduction <add>, %69, %cst_25 [1] : vector<8x8xf32> to vector<8xf32>
    %71 = vector.shape_cast %70 : vector<8xf32> to vector<8x1xf32>
    %72 = vector.broadcast %71 : vector<8x1xf32> to vector<8x8xf32>
    %73 = arith.divf %69, %72 : vector<8x8xf32>
    %cst_26 = arith.constant dense<0.000000e+00> : vector<8x8xf32>
    %74 = tpu.matmul %73, %59, %cst_26 {dimension_numbers = #tpu.dot_dimension_numbers<[1], [0], [0], [1], [0, 0, 1, 1], [], []>} : vector<8x8xf32>, vector<8x8xf32>, vector<8x8xf32> -> vector<8x8xf32>
    %75 = vector.extract_strided_slice %52 {offsets = [0, 8], sizes = [8, 8], strides = [1, 1]} : vector<8x32xf32> to vector<8x8xf32>
    %76 = vector.extract_strided_slice %53 {offsets = [0, 8], sizes = [8, 8], strides = [1, 1]} : vector<8x32xf32> to vector<8x8xf32>
    %77 = vector.extract_strided_slice %54 {offsets = [0, 8], sizes = [8, 8], strides = [1, 1]} : vector<8x32xf32> to vector<8x8xf32>
    %cst_27 = arith.constant dense<0.000000e+00> : vector<8x8xf32>
    %78 = tpu.matmul %75, %76, %cst_27 {dimension_numbers = #tpu.dot_dimension_numbers<[1], [1], [0], [0], [0, 0, 1, 0], [], []>} : vector<8x8xf32>, vector<8x8xf32>, vector<8x8xf32> -> vector<8x8xf32>
    %cst_28 = arith.constant 0.353553385 : f32
    %79 = vector.broadcast %cst_28 : f32 to vector<8x8xf32>
    %80 = arith.mulf %78, %79 : vector<8x8xf32>
    %81 = vector.broadcast %56 : vector<1x8xf32> to vector<8x8xf32>
    %82 = arith.addf %80, %81 : vector<8x8xf32>
    %cst_29 = arith.constant dense<0xFF800000> : vector<8xf32>
    %83 = vector.multi_reduction <maximumf>, %82, %cst_29 [1] : vector<8x8xf32> to vector<8xf32>
    %84 = vector.shape_cast %83 : vector<8xf32> to vector<8x1xf32>
    %85 = vector.broadcast %84 : vector<8x1xf32> to vector<8x8xf32>
    %86 = arith.subf %82, %85 : vector<8x8xf32>
    %87 = math.exp %86 : vector<8x8xf32>
    %cst_30 = arith.constant dense<0.000000e+00> : vector<8xf32>
    %88 = vector.multi_reduction <add>, %87, %cst_30 [1] : vector<8x8xf32> to vector<8xf32>
    %89 = vector.shape_cast %88 : vector<8xf32> to vector<8x1xf32>
    %90 = vector.broadcast %89 : vector<8x1xf32> to vector<8x8xf32>
    %91 = arith.divf %87, %90 : vector<8x8xf32>
    %cst_31 = arith.constant dense<0.000000e+00> : vector<8x8xf32>
    %92 = tpu.matmul %91, %77, %cst_31 {dimension_numbers = #tpu.dot_dimension_numbers<[1], [0], [0], [1], [0, 0, 1, 1], [], []>} : vector<8x8xf32>, vector<8x8xf32>, vector<8x8xf32> -> vector<8x8xf32>
    %93 = vector.extract_strided_slice %52 {offsets = [0, 16], sizes = [8, 8], strides = [1, 1]} : vector<8x32xf32> to vector<8x8xf32>
    %94 = vector.extract_strided_slice %53 {offsets = [0, 16], sizes = [8, 8], strides = [1, 1]} : vector<8x32xf32> to vector<8x8xf32>
    %95 = vector.extract_strided_slice %54 {offsets = [0, 16], sizes = [8, 8], strides = [1, 1]} : vector<8x32xf32> to vector<8x8xf32>
    %cst_32 = arith.constant dense<0.000000e+00> : vector<8x8xf32>
    %96 = tpu.matmul %93, %94, %cst_32 {dimension_numbers = #tpu.dot_dimension_numbers<[1], [1], [0], [0], [0, 0, 1, 0], [], []>} : vector<8x8xf32>, vector<8x8xf32>, vector<8x8xf32> -> vector<8x8xf32>
    %cst_33 = arith.constant 0.353553385 : f32
    %97 = vector.broadcast %cst_33 : f32 to vector<8x8xf32>
    %98 = arith.mulf %96, %97 : vector<8x8xf32>
    %99 = vector.broadcast %56 : vector<1x8xf32> to vector<8x8xf32>
    %100 = arith.addf %98, %99 : vector<8x8xf32>
    %cst_34 = arith.constant dense<0xFF800000> : vector<8xf32>
    %101 = vector.multi_reduction <maximumf>, %100, %cst_34 [1] : vector<8x8xf32> to vector<8xf32>
    %102 = vector.shape_cast %101 : vector<8xf32> to vector<8x1xf32>
    %103 = vector.broadcast %102 : vector<8x1xf32> to vector<8x8xf32>
    %104 = arith.subf %100, %103 : vector<8x8xf32>
    %105 = math.exp %104 : vector<8x8xf32>
    %cst_35 = arith.constant dense<0.000000e+00> : vector<8xf32>
    %106 = vector.multi_reduction <add>, %105, %cst_35 [1] : vector<8x8xf32> to vector<8xf32>
    %107 = vector.shape_cast %106 : vector<8xf32> to vector<8x1xf32>
    %108 = vector.broadcast %107 : vector<8x1xf32> to vector<8x8xf32>
    %109 = arith.divf %105, %108 : vector<8x8xf32>
    %cst_36 = arith.constant dense<0.000000e+00> : vector<8x8xf32>
    %110 = tpu.matmul %109, %95, %cst_36 {dimension_numbers = #tpu.dot_dimension_numbers<[1], [0], [0], [1], [0, 0, 1, 1], [], []>} : vector<8x8xf32>, vector<8x8xf32>, vector<8x8xf32> -> vector<8x8xf32>
    %111 = vector.extract_strided_slice %52 {offsets = [0, 24], sizes = [8, 8], strides = [1, 1]} : vector<8x32xf32> to vector<8x8xf32>
    %112 = vector.extract_strided_slice %53 {offsets = [0, 24], sizes = [8, 8], strides = [1, 1]} : vector<8x32xf32> to vector<8x8xf32>
    %113 = vector.extract_strided_slice %54 {offsets = [0, 24], sizes = [8, 8], strides = [1, 1]} : vector<8x32xf32> to vector<8x8xf32>
    %cst_37 = arith.constant dense<0.000000e+00> : vector<8x8xf32>
    %114 = tpu.matmul %111, %112, %cst_37 {dimension_numbers = #tpu.dot_dimension_numbers<[1], [1], [0], [0], [0, 0, 1, 0], [], []>} : vector<8x8xf32>, vector<8x8xf32>, vector<8x8xf32> -> vector<8x8xf32>
    %cst_38 = arith.constant 0.353553385 : f32
    %115 = vector.broadcast %cst_38 : f32 to vector<8x8xf32>
    %116 = arith.mulf %114, %115 : vector<8x8xf32>
    %117 = vector.broadcast %56 : vector<1x8xf32> to vector<8x8xf32>
    %118 = arith.addf %116, %117 : vector<8x8xf32>
    %cst_39 = arith.constant dense<0xFF800000> : vector<8xf32>
    %119 = vector.multi_reduction <maximumf>, %118, %cst_39 [1] : vector<8x8xf32> to vector<8xf32>
    %120 = vector.shape_cast %119 : vector<8xf32> to vector<8x1xf32>
    %121 = vector.broadcast %120 : vector<8x1xf32> to vector<8x8xf32>
    %122 = arith.subf %118, %121 : vector<8x8xf32>
    %123 = math.exp %122 : vector<8x8xf32>
    %cst_40 = arith.constant dense<0.000000e+00> : vector<8xf32>
    %124 = vector.multi_reduction <add>, %123, %cst_40 [1] : vector<8x8xf32> to vector<8xf32>
    %125 = vector.shape_cast %124 : vector<8xf32> to vector<8x1xf32>
    %126 = vector.broadcast %125 : vector<8x1xf32> to vector<8x8xf32>
    %127 = arith.divf %123, %126 : vector<8x8xf32>
    %cst_41 = arith.constant dense<0.000000e+00> : vector<8x8xf32>
    %128 = tpu.matmul %127, %113, %cst_41 {dimension_numbers = #tpu.dot_dimension_numbers<[1], [0], [0], [1], [0, 0, 1, 1], [], []>} : vector<8x8xf32>, vector<8x8xf32>, vector<8x8xf32> -> vector<8x8xf32>
    %129 = tpu.concatenate %74, %92, %110, %128 in 1 : vector<8x8xf32>, vector<8x8xf32>, vector<8x8xf32>, vector<8x8xf32> -> vector<8x32xf32>
    %130 = vector.extract_strided_slice %51 {offsets = [8, 0], sizes = [8, 32], strides = [1, 1]} : vector<16x96xf32> to vector<8x32xf32>
    %131 = vector.extract_strided_slice %51 {offsets = [8, 32], sizes = [8, 32], strides = [1, 1]} : vector<16x96xf32> to vector<8x32xf32>
    %132 = vector.extract_strided_slice %51 {offsets = [8, 64], sizes = [8, 32], strides = [1, 1]} : vector<16x96xf32> to vector<8x32xf32>
    %c1 = arith.constant 1 : index
    %c0_42 = arith.constant 0 : index
    %c0_43 = arith.constant 0 : index
    %133 = vector.load %arg1[%c1, %c0_42, %c0_43] : memref<2x1x8xf32, #tpu.memory_space<vmem>>, vector<1x1x8xf32>
    %134 = vector.shape_cast %133 : vector<1x1x8xf32> to vector<1x8xf32>
    %135 = vector.extract_strided_slice %130 {offsets = [0, 0], sizes = [8, 8], strides = [1, 1]} : vector<8x32xf32> to vector<8x8xf32>
    %136 = vector.extract_strided_slice %131 {offsets = [0, 0], sizes = [8, 8], strides = [1, 1]} : vector<8x32xf32> to vector<8x8xf32>
    %137 = vector.extract_strided_slice %132 {offsets = [0, 0], sizes = [8, 8], strides = [1, 1]} : vector<8x32xf32> to vector<8x8xf32>
    %cst_44 = arith.constant dense<0.000000e+00> : vector<8x8xf32>
    %138 = tpu.matmul %135, %136, %cst_44 {dimension_numbers = #tpu.dot_dimension_numbers<[1], [1], [0], [0], [0, 0, 1, 0], [], []>} : vector<8x8xf32>, vector<8x8xf32>, vector<8x8xf32> -> vector<8x8xf32>
    %cst_45 = arith.constant 0.353553385 : f32
    %139 = vector.broadcast %cst_45 : f32 to vector<8x8xf32>
    %140 = arith.mulf %138, %139 : vector<8x8xf32>
    %141 = vector.broadcast %134 : vector<1x8xf32> to vector<8x8xf32>
    %142 = arith.addf %140, %141 : vector<8x8xf32>
    %cst_46 = arith.constant dense<0xFF800000> : vector<8xf32>
    %143 = vector.multi_reduction <maximumf>, %142, %cst_46 [1] : vector<8x8xf32> to vector<8xf32>
    %144 = vector.shape_cast %143 : vector<8xf32> to vector<8x1xf32>
    %145 = vector.broadcast %144 : vector<8x1xf32> to vector<8x8xf32>
    %146 = arith.subf %142, %145 : vector<8x8xf32>
    %147 = math.exp %146 : vector<8x8xf32>
    %cst_47 = arith.constant dense<0.000000e+00> : vector<8xf32>
    %148 = vector.multi_reduction <add>, %147, %cst_47 [1] : vector<8x8xf32> to vector<8xf32>
    %149 = vector.shape_cast %148 : vector<8xf32> to vector<8x1xf32>
    %150 = vector.broadcast %149 : vector<8x1xf32> to vector<8x8xf32>
    %151 = arith.divf %147, %150 : vector<8x8xf32>
    %cst_48 = arith.constant dense<0.000000e+00> : vector<8x8xf32>
    %152 = tpu.matmul %151, %137, %cst_48 {dimension_numbers = #tpu.dot_dimension_numbers<[1], [0], [0], [1], [0, 0, 1, 1], [], []>} : vector<8x8xf32>, vector<8x8xf32>, vector<8x8xf32> -> vector<8x8xf32>
    %153 = vector.extract_strided_slice %130 {offsets = [0, 8], sizes = [8, 8], strides = [1, 1]} : vector<8x32xf32> to vector<8x8xf32>
    %154 = vector.extract_strided_slice %131 {offsets = [0, 8], sizes = [8, 8], strides = [1, 1]} : vector<8x32xf32> to vector<8x8xf32>
    %155 = vector.extract_strided_slice %132 {offsets = [0, 8], sizes = [8, 8], strides = [1, 1]} : vector<8x32xf32> to vector<8x8xf32>
    %cst_49 = arith.constant dense<0.000000e+00> : vector<8x8xf32>
    %156 = tpu.matmul %153, %154, %cst_49 {dimension_numbers = #tpu.dot_dimension_numbers<[1], [1], [0], [0], [0, 0, 1, 0], [], []>} : vector<8x8xf32>, vector<8x8xf32>, vector<8x8xf32> -> vector<8x8xf32>
    %cst_50 = arith.constant 0.353553385 : f32
    %157 = vector.broadcast %cst_50 : f32 to vector<8x8xf32>
    %158 = arith.mulf %156, %157 : vector<8x8xf32>
    %159 = vector.broadcast %134 : vector<1x8xf32> to vector<8x8xf32>
    %160 = arith.addf %158, %159 : vector<8x8xf32>
    %cst_51 = arith.constant dense<0xFF800000> : vector<8xf32>
    %161 = vector.multi_reduction <maximumf>, %160, %cst_51 [1] : vector<8x8xf32> to vector<8xf32>
    %162 = vector.shape_cast %161 : vector<8xf32> to vector<8x1xf32>
    %163 = vector.broadcast %162 : vector<8x1xf32> to vector<8x8xf32>
    %164 = arith.subf %160, %163 : vector<8x8xf32>
    %165 = math.exp %164 : vector<8x8xf32>
    %cst_52 = arith.constant dense<0.000000e+00> : vector<8xf32>
    %166 = vector.multi_reduction <add>, %165, %cst_52 [1] : vector<8x8xf32> to vector<8xf32>
    %167 = vector.shape_cast %166 : vector<8xf32> to vector<8x1xf32>
    %168 = vector.broadcast %167 : vector<8x1xf32> to vector<8x8xf32>
    %169 = arith.divf %165, %168 : vector<8x8xf32>
    %cst_53 = arith.constant dense<0.000000e+00> : vector<8x8xf32>
    %170 = tpu.matmul %169, %155, %cst_53 {dimension_numbers = #tpu.dot_dimension_numbers<[1], [0], [0], [1], [0, 0, 1, 1], [], []>} : vector<8x8xf32>, vector<8x8xf32>, vector<8x8xf32> -> vector<8x8xf32>
    %171 = vector.extract_strided_slice %130 {offsets = [0, 16], sizes = [8, 8], strides = [1, 1]} : vector<8x32xf32> to vector<8x8xf32>
    %172 = vector.extract_strided_slice %131 {offsets = [0, 16], sizes = [8, 8], strides = [1, 1]} : vector<8x32xf32> to vector<8x8xf32>
    %173 = vector.extract_strided_slice %132 {offsets = [0, 16], sizes = [8, 8], strides = [1, 1]} : vector<8x32xf32> to vector<8x8xf32>
    %cst_54 = arith.constant dense<0.000000e+00> : vector<8x8xf32>
    %174 = tpu.matmul %171, %172, %cst_54 {dimension_numbers = #tpu.dot_dimension_numbers<[1], [1], [0], [0], [0, 0, 1, 0], [], []>} : vector<8x8xf32>, vector<8x8xf32>, vector<8x8xf32> -> vector<8x8xf32>
    %cst_55 = arith.constant 0.353553385 : f32
    %175 = vector.broadcast %cst_55 : f32 to vector<8x8xf32>
    %176 = arith.mulf %174, %175 : vector<8x8xf32>
    %177 = vector.broadcast %134 : vector<1x8xf32> to vector<8x8xf32>
    %178 = arith.addf %176, %177 : vector<8x8xf32>
    %cst_56 = arith.constant dense<0xFF800000> : vector<8xf32>
    %179 = vector.multi_reduction <maximumf>, %178, %cst_56 [1] : vector<8x8xf32> to vector<8xf32>
    %180 = vector.shape_cast %179 : vector<8xf32> to vector<8x1xf32>
    %181 = vector.broadcast %180 : vector<8x1xf32> to vector<8x8xf32>
    %182 = arith.subf %178, %181 : vector<8x8xf32>
    %183 = math.exp %182 : vector<8x8xf32>
    %cst_57 = arith.constant dense<0.000000e+00> : vector<8xf32>
    %184 = vector.multi_reduction <add>, %183, %cst_57 [1] : vector<8x8xf32> to vector<8xf32>
    %185 = vector.shape_cast %184 : vector<8xf32> to vector<8x1xf32>
    %186 = vector.broadcast %185 : vector<8x1xf32> to vector<8x8xf32>
    %187 = arith.divf %183, %186 : vector<8x8xf32>
    %cst_58 = arith.constant dense<0.000000e+00> : vector<8x8xf32>
    %188 = tpu.matmul %187, %173, %cst_58 {dimension_numbers = #tpu.dot_dimension_numbers<[1], [0], [0], [1], [0, 0, 1, 1], [], []>} : vector<8x8xf32>, vector<8x8xf32>, vector<8x8xf32> -> vector<8x8xf32>
    %189 = vector.extract_strided_slice %130 {offsets = [0, 24], sizes = [8, 8], strides = [1, 1]} : vector<8x32xf32> to vector<8x8xf32>
    %190 = vector.extract_strided_slice %131 {offsets = [0, 24], sizes = [8, 8], strides = [1, 1]} : vector<8x32xf32> to vector<8x8xf32>
    %191 = vector.extract_strided_slice %132 {offsets = [0, 24], sizes = [8, 8], strides = [1, 1]} : vector<8x32xf32> to vector<8x8xf32>
    %cst_59 = arith.constant dense<0.000000e+00> : vector<8x8xf32>
    %192 = tpu.matmul %189, %190, %cst_59 {dimension_numbers = #tpu.dot_dimension_numbers<[1], [1], [0], [0], [0, 0, 1, 0], [], []>} : vector<8x8xf32>, vector<8x8xf32>, vector<8x8xf32> -> vector<8x8xf32>
    %cst_60 = arith.constant 0.353553385 : f32
    %193 = vector.broadcast %cst_60 : f32 to vector<8x8xf32>
    %194 = arith.mulf %192, %193 : vector<8x8xf32>
    %195 = vector.broadcast %134 : vector<1x8xf32> to vector<8x8xf32>
    %196 = arith.addf %194, %195 : vector<8x8xf32>
    %cst_61 = arith.constant dense<0xFF800000> : vector<8xf32>
    %197 = vector.multi_reduction <maximumf>, %196, %cst_61 [1] : vector<8x8xf32> to vector<8xf32>
    %198 = vector.shape_cast %197 : vector<8xf32> to vector<8x1xf32>
    %199 = vector.broadcast %198 : vector<8x1xf32> to vector<8x8xf32>
    %200 = arith.subf %196, %199 : vector<8x8xf32>
    %201 = math.exp %200 : vector<8x8xf32>
    %cst_62 = arith.constant dense<0.000000e+00> : vector<8xf32>
    %202 = vector.multi_reduction <add>, %201, %cst_62 [1] : vector<8x8xf32> to vector<8xf32>
    %203 = vector.shape_cast %202 : vector<8xf32> to vector<8x1xf32>
    %204 = vector.broadcast %203 : vector<8x1xf32> to vector<8x8xf32>
    %205 = arith.divf %201, %204 : vector<8x8xf32>
    %cst_63 = arith.constant dense<0.000000e+00> : vector<8x8xf32>
    %206 = tpu.matmul %205, %191, %cst_63 {dimension_numbers = #tpu.dot_dimension_numbers<[1], [0], [0], [1], [0, 0, 1, 1], [], []>} : vector<8x8xf32>, vector<8x8xf32>, vector<8x8xf32> -> vector<8x8xf32>
    %207 = tpu.concatenate %152, %170, %188, %206 in 1 : vector<8x8xf32>, vector<8x8xf32>, vector<8x8xf32>, vector<8x8xf32> -> vector<8x32xf32>
    %208 = tpu.concatenate %129, %207 in 0 : vector<8x32xf32>, vector<8x32xf32> -> vector<16x32xf32>
    %c0_64 = arith.constant 0 : index
    %c0_65 = arith.constant 0 : index
    %c0_66 = arith.constant 0 : index
    %209 = vector.load %arg8[%c0_64, %c0_65, %c0_66] : memref<2x32x32xf32, #tpu.memory_space<vmem>>, vector<1x32x32xf32>
    %210 = vector.shape_cast %209 : vector<1x32x32xf32> to vector<32x32xf32>
    %cst_67 = arith.constant dense<0.000000e+00> : vector<16x32xf32>
    %211 = tpu.matmul %208, %210, %cst_67 {dimension_numbers = #tpu.dot_dimension_numbers<[1], [0], [0], [1], [0, 0, 1, 1], [], []>} : vector<16x32xf32>, vector<32x32xf32>, vector<16x32xf32> -> vector<16x32xf32>
    %c0_68 = arith.constant 0 : index
    %c0_69 = arith.constant 0 : index
    %c0_70 = arith.constant 0 : index
    %212 = vector.load %arg9[%c0_68, %c0_69, %c0_70] : memref<2x1x32xf32, #tpu.memory_space<vmem>>, vector<1x1x32xf32>
    %213 = vector.shape_cast %212 : vector<1x1x32xf32> to vector<1x32xf32>
    %214 = vector.broadcast %213 : vector<1x32xf32> to vector<16x32xf32>
    %215 = arith.addf %211, %214 : vector<16x32xf32>
    %216 = arith.addf %215, %44 : vector<16x32xf32>
    %c0_71 = arith.constant 0 : index
    %c0_72 = arith.constant 0 : index
    %c0_73 = arith.constant 0 : index
    %217 = vector.load %arg14[%c0_71, %c0_72, %c0_73] : memref<2x1x32xf32, #tpu.memory_space<vmem>>, vector<1x1x32xf32>
    %218 = vector.shape_cast %217 : vector<1x1x32xf32> to vector<1x32xf32>
    %c0_74 = arith.constant 0 : index
    %c0_75 = arith.constant 0 : index
    %c0_76 = arith.constant 0 : index
    %219 = vector.load %arg15[%c0_74, %c0_75, %c0_76] : memref<2x1x32xf32, #tpu.memory_space<vmem>>, vector<1x1x32xf32>
    %220 = vector.shape_cast %219 : vector<1x1x32xf32> to vector<1x32xf32>
    %cst_77 = arith.constant dense<0.000000e+00> : vector<16xf32>
    %221 = vector.multi_reduction <add>, %216, %cst_77 [1] : vector<16x32xf32> to vector<16xf32>
    %222 = vector.shape_cast %221 : vector<16xf32> to vector<16x1xf32>
    %cst_78 = arith.constant 3.200000e+01 : f32
    %223 = vector.broadcast %cst_78 : f32 to vector<16x1xf32>
    %224 = arith.divf %222, %223 : vector<16x1xf32>
    %225 = vector.broadcast %224 : vector<16x1xf32> to vector<16x32xf32>
    %226 = arith.subf %216, %225 : vector<16x32xf32>
    %227 = arith.mulf %226, %226 : vector<16x32xf32>
    %cst_79 = arith.constant dense<0.000000e+00> : vector<16xf32>
    %228 = vector.multi_reduction <add>, %227, %cst_79 [1] : vector<16x32xf32> to vector<16xf32>
    %229 = vector.shape_cast %228 : vector<16xf32> to vector<16x1xf32>
    %cst_80 = arith.constant 3.200000e+01 : f32
    %230 = vector.broadcast %cst_80 : f32 to vector<16x1xf32>
    %231 = arith.divf %229, %230 : vector<16x1xf32>
    %232 = vector.broadcast %224 : vector<16x1xf32> to vector<16x32xf32>
    %233 = arith.subf %216, %232 : vector<16x32xf32>
    %cst_81 = arith.constant 9.99999996E-13 : f32
    %234 = vector.broadcast %cst_81 : f32 to vector<16x1xf32>
    %235 = arith.addf %231, %234 : vector<16x1xf32>
    %236 = math.rsqrt %235 : vector<16x1xf32>
    %237 = vector.broadcast %236 : vector<16x1xf32> to vector<16x32xf32>
    %238 = arith.mulf %233, %237 : vector<16x32xf32>
    %239 = vector.broadcast %218 : vector<1x32xf32> to vector<16x32xf32>
    %240 = arith.mulf %238, %239 : vector<16x32xf32>
    %241 = vector.broadcast %220 : vector<1x32xf32> to vector<16x32xf32>
    %242 = arith.addf %240, %241 : vector<16x32xf32>
    %c0_82 = arith.constant 0 : index
    %c0_83 = arith.constant 0 : index
    %c0_84 = arith.constant 0 : index
    %243 = vector.load %arg10[%c0_82, %c0_83, %c0_84] : memref<2x32x128xf32, #tpu.memory_space<vmem>>, vector<1x32x128xf32>
    %244 = vector.shape_cast %243 : vector<1x32x128xf32> to vector<32x128xf32>
    %cst_85 = arith.constant dense<0.000000e+00> : vector<16x128xf32>
    %245 = tpu.matmul %242, %244, %cst_85 {dimension_numbers = #tpu.dot_dimension_numbers<[1], [0], [0], [1], [0, 0, 1, 1], [], []>} : vector<16x32xf32>, vector<32x128xf32>, vector<16x128xf32> -> vector<16x128xf32>
    %c0_86 = arith.constant 0 : index
    %c0_87 = arith.constant 0 : index
    %c0_88 = arith.constant 0 : index
    %246 = vector.load %arg11[%c0_86, %c0_87, %c0_88] : memref<2x1x128xf32, #tpu.memory_space<vmem>>, vector<1x1x128xf32>
    %247 = vector.shape_cast %246 : vector<1x1x128xf32> to vector<1x128xf32>
    %248 = vector.broadcast %247 : vector<1x128xf32> to vector<16x128xf32>
    %249 = arith.addf %245, %248 : vector<16x128xf32>
    %250 = arith.mulf %249, %249 : vector<16x128xf32>
    %251 = arith.mulf %249, %250 : vector<16x128xf32>
    %cst_89 = arith.constant 4.471500e-02 : f32
    %252 = vector.broadcast %cst_89 : f32 to vector<16x128xf32>
    %253 = arith.mulf %252, %251 : vector<16x128xf32>
    %254 = arith.addf %249, %253 : vector<16x128xf32>
    %cst_90 = arith.constant 0.797884583 : f32
    %255 = vector.broadcast %cst_90 : f32 to vector<16x128xf32>
    %256 = arith.mulf %255, %254 : vector<16x128xf32>
    %257 = math.tanh %256 : vector<16x128xf32>
    %cst_91 = arith.constant 1.000000e+00 : f32
    %258 = vector.broadcast %cst_91 : f32 to vector<16x128xf32>
    %259 = arith.addf %258, %257 : vector<16x128xf32>
    %cst_92 = arith.constant 5.000000e-01 : f32
    %260 = vector.broadcast %cst_92 : f32 to vector<16x128xf32>
    %261 = arith.mulf %260, %259 : vector<16x128xf32>
    %262 = arith.mulf %249, %261 : vector<16x128xf32>
    %c0_93 = arith.constant 0 : index
    %c0_94 = arith.constant 0 : index
    %c0_95 = arith.constant 0 : index
    %263 = vector.load %arg12[%c0_93, %c0_94, %c0_95] : memref<2x128x32xf32, #tpu.memory_space<vmem>>, vector<1x128x32xf32>
    %264 = vector.shape_cast %263 : vector<1x128x32xf32> to vector<128x32xf32>
    %cst_96 = arith.constant dense<0.000000e+00> : vector<16x32xf32>
    %265 = tpu.matmul %262, %264, %cst_96 {dimension_numbers = #tpu.dot_dimension_numbers<[1], [0], [0], [1], [0, 0, 1, 1], [], []>} : vector<16x128xf32>, vector<128x32xf32>, vector<16x32xf32> -> vector<16x32xf32>
    %c0_97 = arith.constant 0 : index
    %c0_98 = arith.constant 0 : index
    %c0_99 = arith.constant 0 : index
    %266 = vector.load %arg13[%c0_97, %c0_98, %c0_99] : memref<2x1x32xf32, #tpu.memory_space<vmem>>, vector<1x1x32xf32>
    %267 = vector.shape_cast %266 : vector<1x1x32xf32> to vector<1x32xf32>
    %268 = vector.broadcast %267 : vector<1x32xf32> to vector<16x32xf32>
    %269 = arith.addf %265, %268 : vector<16x32xf32>
    %270 = arith.addf %269, %242 : vector<16x32xf32>
    %c0_100 = arith.constant 0 : index
    %c0_101 = arith.constant 0 : index
    %c0_102 = arith.constant 0 : index
    %271 = vector.load %arg16[%c0_100, %c0_101, %c0_102] : memref<2x1x32xf32, #tpu.memory_space<vmem>>, vector<1x1x32xf32>
    %272 = vector.shape_cast %271 : vector<1x1x32xf32> to vector<1x32xf32>
    %c0_103 = arith.constant 0 : index
    %c0_104 = arith.constant 0 : index
    %c0_105 = arith.constant 0 : index
    %273 = vector.load %arg17[%c0_103, %c0_104, %c0_105] : memref<2x1x32xf32, #tpu.memory_space<vmem>>, vector<1x1x32xf32>
    %274 = vector.shape_cast %273 : vector<1x1x32xf32> to vector<1x32xf32>
    %cst_106 = arith.constant dense<0.000000e+00> : vector<16xf32>
    %275 = vector.multi_reduction <add>, %270, %cst_106 [1] : vector<16x32xf32> to vector<16xf32>
    %276 = vector.shape_cast %275 : vector<16xf32> to vector<16x1xf32>
    %cst_107 = arith.constant 3.200000e+01 : f32
    %277 = vector.broadcast %cst_107 : f32 to vector<16x1xf32>
    %278 = arith.divf %276, %277 : vector<16x1xf32>
    %279 = vector.broadcast %278 : vector<16x1xf32> to vector<16x32xf32>
    %280 = arith.subf %270, %279 : vector<16x32xf32>
    %281 = arith.mulf %280, %280 : vector<16x32xf32>
    %cst_108 = arith.constant dense<0.000000e+00> : vector<16xf32>
    %282 = vector.multi_reduction <add>, %281, %cst_108 [1] : vector<16x32xf32> to vector<16xf32>
    %283 = vector.shape_cast %282 : vector<16xf32> to vector<16x1xf32>
    %cst_109 = arith.constant 3.200000e+01 : f32
    %284 = vector.broadcast %cst_109 : f32 to vector<16x1xf32>
    %285 = arith.divf %283, %284 : vector<16x1xf32>
    %286 = vector.broadcast %278 : vector<16x1xf32> to vector<16x32xf32>
    %287 = arith.subf %270, %286 : vector<16x32xf32>
    %cst_110 = arith.constant 9.99999996E-13 : f32
    %288 = vector.broadcast %cst_110 : f32 to vector<16x1xf32>
    %289 = arith.addf %285, %288 : vector<16x1xf32>
    %290 = math.rsqrt %289 : vector<16x1xf32>
    %291 = vector.broadcast %290 : vector<16x1xf32> to vector<16x32xf32>
    %292 = arith.mulf %287, %291 : vector<16x32xf32>
    %293 = vector.broadcast %272 : vector<1x32xf32> to vector<16x32xf32>
    %294 = arith.mulf %292, %293 : vector<16x32xf32>
    %295 = vector.broadcast %274 : vector<1x32xf32> to vector<16x32xf32>
    %296 = arith.addf %294, %295 : vector<16x32xf32>
    %c1_111 = arith.constant 1 : index
    %c0_112 = arith.constant 0 : index
    %c0_113 = arith.constant 0 : index
    %297 = vector.load %arg6[%c1_111, %c0_112, %c0_113] : memref<2x32x96xf32, #tpu.memory_space<vmem>>, vector<1x32x96xf32>
    %298 = vector.shape_cast %297 : vector<1x32x96xf32> to vector<32x96xf32>
    %cst_114 = arith.constant dense<0.000000e+00> : vector<16x96xf32>
    %299 = tpu.matmul %296, %298, %cst_114 {dimension_numbers = #tpu.dot_dimension_numbers<[1], [0], [0], [1], [0, 0, 1, 1], [], []>} : vector<16x32xf32>, vector<32x96xf32>, vector<16x96xf32> -> vector<16x96xf32>
    %c1_115 = arith.constant 1 : index
    %c0_116 = arith.constant 0 : index
    %c0_117 = arith.constant 0 : index
    %300 = vector.load %arg7[%c1_115, %c0_116, %c0_117] : memref<2x1x96xf32, #tpu.memory_space<vmem>>, vector<1x1x96xf32>
    %301 = vector.shape_cast %300 : vector<1x1x96xf32> to vector<1x96xf32>
    %302 = vector.broadcast %301 : vector<1x96xf32> to vector<16x96xf32>
    %303 = arith.addf %299, %302 : vector<16x96xf32>
    %304 = vector.extract_strided_slice %303 {offsets = [0, 0], sizes = [8, 32], strides = [1, 1]} : vector<16x96xf32> to vector<8x32xf32>
    %305 = vector.extract_strided_slice %303 {offsets = [0, 32], sizes = [8, 32], strides = [1, 1]} : vector<16x96xf32> to vector<8x32xf32>
    %306 = vector.extract_strided_slice %303 {offsets = [0, 64], sizes = [8, 32], strides = [1, 1]} : vector<16x96xf32> to vector<8x32xf32>
    %c0_118 = arith.constant 0 : index
    %c0_119 = arith.constant 0 : index
    %c0_120 = arith.constant 0 : index
    %307 = vector.load %arg1[%c0_118, %c0_119, %c0_120] : memref<2x1x8xf32, #tpu.memory_space<vmem>>, vector<1x1x8xf32>
    %308 = vector.shape_cast %307 : vector<1x1x8xf32> to vector<1x8xf32>
    %309 = vector.extract_strided_slice %304 {offsets = [0, 0], sizes = [8, 8], strides = [1, 1]} : vector<8x32xf32> to vector<8x8xf32>
    %310 = vector.extract_strided_slice %305 {offsets = [0, 0], sizes = [8, 8], strides = [1, 1]} : vector<8x32xf32> to vector<8x8xf32>
    %311 = vector.extract_strided_slice %306 {offsets = [0, 0], sizes = [8, 8], strides = [1, 1]} : vector<8x32xf32> to vector<8x8xf32>
    %cst_121 = arith.constant dense<0.000000e+00> : vector<8x8xf32>
    %312 = tpu.matmul %309, %310, %cst_121 {dimension_numbers = #tpu.dot_dimension_numbers<[1], [1], [0], [0], [0, 0, 1, 0], [], []>} : vector<8x8xf32>, vector<8x8xf32>, vector<8x8xf32> -> vector<8x8xf32>
    %cst_122 = arith.constant 0.353553385 : f32
    %313 = vector.broadcast %cst_122 : f32 to vector<8x8xf32>
    %314 = arith.mulf %312, %313 : vector<8x8xf32>
    %315 = vector.broadcast %308 : vector<1x8xf32> to vector<8x8xf32>
    %316 = arith.addf %314, %315 : vector<8x8xf32>
    %cst_123 = arith.constant dense<0xFF800000> : vector<8xf32>
    %317 = vector.multi_reduction <maximumf>, %316, %cst_123 [1] : vector<8x8xf32> to vector<8xf32>
    %318 = vector.shape_cast %317 : vector<8xf32> to vector<8x1xf32>
    %319 = vector.broadcast %318 : vector<8x1xf32> to vector<8x8xf32>
    %320 = arith.subf %316, %319 : vector<8x8xf32>
    %321 = math.exp %320 : vector<8x8xf32>
    %cst_124 = arith.constant dense<0.000000e+00> : vector<8xf32>
    %322 = vector.multi_reduction <add>, %321, %cst_124 [1] : vector<8x8xf32> to vector<8xf32>
    %323 = vector.shape_cast %322 : vector<8xf32> to vector<8x1xf32>
    %324 = vector.broadcast %323 : vector<8x1xf32> to vector<8x8xf32>
    %325 = arith.divf %321, %324 : vector<8x8xf32>
    %cst_125 = arith.constant dense<0.000000e+00> : vector<8x8xf32>
    %326 = tpu.matmul %325, %311, %cst_125 {dimension_numbers = #tpu.dot_dimension_numbers<[1], [0], [0], [1], [0, 0, 1, 1], [], []>} : vector<8x8xf32>, vector<8x8xf32>, vector<8x8xf32> -> vector<8x8xf32>
    %327 = vector.extract_strided_slice %304 {offsets = [0, 8], sizes = [8, 8], strides = [1, 1]} : vector<8x32xf32> to vector<8x8xf32>
    %328 = vector.extract_strided_slice %305 {offsets = [0, 8], sizes = [8, 8], strides = [1, 1]} : vector<8x32xf32> to vector<8x8xf32>
    %329 = vector.extract_strided_slice %306 {offsets = [0, 8], sizes = [8, 8], strides = [1, 1]} : vector<8x32xf32> to vector<8x8xf32>
    %cst_126 = arith.constant dense<0.000000e+00> : vector<8x8xf32>
    %330 = tpu.matmul %327, %328, %cst_126 {dimension_numbers = #tpu.dot_dimension_numbers<[1], [1], [0], [0], [0, 0, 1, 0], [], []>} : vector<8x8xf32>, vector<8x8xf32>, vector<8x8xf32> -> vector<8x8xf32>
    %cst_127 = arith.constant 0.353553385 : f32
    %331 = vector.broadcast %cst_127 : f32 to vector<8x8xf32>
    %332 = arith.mulf %330, %331 : vector<8x8xf32>
    %333 = vector.broadcast %308 : vector<1x8xf32> to vector<8x8xf32>
    %334 = arith.addf %332, %333 : vector<8x8xf32>
    %cst_128 = arith.constant dense<0xFF800000> : vector<8xf32>
    %335 = vector.multi_reduction <maximumf>, %334, %cst_128 [1] : vector<8x8xf32> to vector<8xf32>
    %336 = vector.shape_cast %335 : vector<8xf32> to vector<8x1xf32>
    %337 = vector.broadcast %336 : vector<8x1xf32> to vector<8x8xf32>
    %338 = arith.subf %334, %337 : vector<8x8xf32>
    %339 = math.exp %338 : vector<8x8xf32>
    %cst_129 = arith.constant dense<0.000000e+00> : vector<8xf32>
    %340 = vector.multi_reduction <add>, %339, %cst_129 [1] : vector<8x8xf32> to vector<8xf32>
    %341 = vector.shape_cast %340 : vector<8xf32> to vector<8x1xf32>
    %342 = vector.broadcast %341 : vector<8x1xf32> to vector<8x8xf32>
    %343 = arith.divf %339, %342 : vector<8x8xf32>
    %cst_130 = arith.constant dense<0.000000e+00> : vector<8x8xf32>
    %344 = tpu.matmul %343, %329, %cst_130 {dimension_numbers = #tpu.dot_dimension_numbers<[1], [0], [0], [1], [0, 0, 1, 1], [], []>} : vector<8x8xf32>, vector<8x8xf32>, vector<8x8xf32> -> vector<8x8xf32>
    %345 = vector.extract_strided_slice %304 {offsets = [0, 16], sizes = [8, 8], strides = [1, 1]} : vector<8x32xf32> to vector<8x8xf32>
    %346 = vector.extract_strided_slice %305 {offsets = [0, 16], sizes = [8, 8], strides = [1, 1]} : vector<8x32xf32> to vector<8x8xf32>
    %347 = vector.extract_strided_slice %306 {offsets = [0, 16], sizes = [8, 8], strides = [1, 1]} : vector<8x32xf32> to vector<8x8xf32>
    %cst_131 = arith.constant dense<0.000000e+00> : vector<8x8xf32>
    %348 = tpu.matmul %345, %346, %cst_131 {dimension_numbers = #tpu.dot_dimension_numbers<[1], [1], [0], [0], [0, 0, 1, 0], [], []>} : vector<8x8xf32>, vector<8x8xf32>, vector<8x8xf32> -> vector<8x8xf32>
    %cst_132 = arith.constant 0.353553385 : f32
    %349 = vector.broadcast %cst_132 : f32 to vector<8x8xf32>
    %350 = arith.mulf %348, %349 : vector<8x8xf32>
    %351 = vector.broadcast %308 : vector<1x8xf32> to vector<8x8xf32>
    %352 = arith.addf %350, %351 : vector<8x8xf32>
    %cst_133 = arith.constant dense<0xFF800000> : vector<8xf32>
    %353 = vector.multi_reduction <maximumf>, %352, %cst_133 [1] : vector<8x8xf32> to vector<8xf32>
    %354 = vector.shape_cast %353 : vector<8xf32> to vector<8x1xf32>
    %355 = vector.broadcast %354 : vector<8x1xf32> to vector<8x8xf32>
    %356 = arith.subf %352, %355 : vector<8x8xf32>
    %357 = math.exp %356 : vector<8x8xf32>
    %cst_134 = arith.constant dense<0.000000e+00> : vector<8xf32>
    %358 = vector.multi_reduction <add>, %357, %cst_134 [1] : vector<8x8xf32> to vector<8xf32>
    %359 = vector.shape_cast %358 : vector<8xf32> to vector<8x1xf32>
    %360 = vector.broadcast %359 : vector<8x1xf32> to vector<8x8xf32>
    %361 = arith.divf %357, %360 : vector<8x8xf32>
    %cst_135 = arith.constant dense<0.000000e+00> : vector<8x8xf32>
    %362 = tpu.matmul %361, %347, %cst_135 {dimension_numbers = #tpu.dot_dimension_numbers<[1], [0], [0], [1], [0, 0, 1, 1], [], []>} : vector<8x8xf32>, vector<8x8xf32>, vector<8x8xf32> -> vector<8x8xf32>
    %363 = vector.extract_strided_slice %304 {offsets = [0, 24], sizes = [8, 8], strides = [1, 1]} : vector<8x32xf32> to vector<8x8xf32>
    %364 = vector.extract_strided_slice %305 {offsets = [0, 24], sizes = [8, 8], strides = [1, 1]} : vector<8x32xf32> to vector<8x8xf32>
    %365 = vector.extract_strided_slice %306 {offsets = [0, 24], sizes = [8, 8], strides = [1, 1]} : vector<8x32xf32> to vector<8x8xf32>
    %cst_136 = arith.constant dense<0.000000e+00> : vector<8x8xf32>
    %366 = tpu.matmul %363, %364, %cst_136 {dimension_numbers = #tpu.dot_dimension_numbers<[1], [1], [0], [0], [0, 0, 1, 0], [], []>} : vector<8x8xf32>, vector<8x8xf32>, vector<8x8xf32> -> vector<8x8xf32>
    %cst_137 = arith.constant 0.353553385 : f32
    %367 = vector.broadcast %cst_137 : f32 to vector<8x8xf32>
    %368 = arith.mulf %366, %367 : vector<8x8xf32>
    %369 = vector.broadcast %308 : vector<1x8xf32> to vector<8x8xf32>
    %370 = arith.addf %368, %369 : vector<8x8xf32>
    %cst_138 = arith.constant dense<0xFF800000> : vector<8xf32>
    %371 = vector.multi_reduction <maximumf>, %370, %cst_138 [1] : vector<8x8xf32> to vector<8xf32>
    %372 = vector.shape_cast %371 : vector<8xf32> to vector<8x1xf32>
    %373 = vector.broadcast %372 : vector<8x1xf32> to vector<8x8xf32>
    %374 = arith.subf %370, %373 : vector<8x8xf32>
    %375 = math.exp %374 : vector<8x8xf32>
    %cst_139 = arith.constant dense<0.000000e+00> : vector<8xf32>
    %376 = vector.multi_reduction <add>, %375, %cst_139 [1] : vector<8x8xf32> to vector<8xf32>
    %377 = vector.shape_cast %376 : vector<8xf32> to vector<8x1xf32>
    %378 = vector.broadcast %377 : vector<8x1xf32> to vector<8x8xf32>
    %379 = arith.divf %375, %378 : vector<8x8xf32>
    %cst_140 = arith.constant dense<0.000000e+00> : vector<8x8xf32>
    %380 = tpu.matmul %379, %365, %cst_140 {dimension_numbers = #tpu.dot_dimension_numbers<[1], [0], [0], [1], [0, 0, 1, 1], [], []>} : vector<8x8xf32>, vector<8x8xf32>, vector<8x8xf32> -> vector<8x8xf32>
    %381 = tpu.concatenate %326, %344, %362, %380 in 1 : vector<8x8xf32>, vector<8x8xf32>, vector<8x8xf32>, vector<8x8xf32> -> vector<8x32xf32>
    %382 = vector.extract_strided_slice %303 {offsets = [8, 0], sizes = [8, 32], strides = [1, 1]} : vector<16x96xf32> to vector<8x32xf32>
    %383 = vector.extract_strided_slice %303 {offsets = [8, 32], sizes = [8, 32], strides = [1, 1]} : vector<16x96xf32> to vector<8x32xf32>
    %384 = vector.extract_strided_slice %303 {offsets = [8, 64], sizes = [8, 32], strides = [1, 1]} : vector<16x96xf32> to vector<8x32xf32>
    %c1_141 = arith.constant 1 : index
    %c0_142 = arith.constant 0 : index
    %c0_143 = arith.constant 0 : index
    %385 = vector.load %arg1[%c1_141, %c0_142, %c0_143] : memref<2x1x8xf32, #tpu.memory_space<vmem>>, vector<1x1x8xf32>
    %386 = vector.shape_cast %385 : vector<1x1x8xf32> to vector<1x8xf32>
    %387 = vector.extract_strided_slice %382 {offsets = [0, 0], sizes = [8, 8], strides = [1, 1]} : vector<8x32xf32> to vector<8x8xf32>
    %388 = vector.extract_strided_slice %383 {offsets = [0, 0], sizes = [8, 8], strides = [1, 1]} : vector<8x32xf32> to vector<8x8xf32>
    %389 = vector.extract_strided_slice %384 {offsets = [0, 0], sizes = [8, 8], strides = [1, 1]} : vector<8x32xf32> to vector<8x8xf32>
    %cst_144 = arith.constant dense<0.000000e+00> : vector<8x8xf32>
    %390 = tpu.matmul %387, %388, %cst_144 {dimension_numbers = #tpu.dot_dimension_numbers<[1], [1], [0], [0], [0, 0, 1, 0], [], []>} : vector<8x8xf32>, vector<8x8xf32>, vector<8x8xf32> -> vector<8x8xf32>
    %cst_145 = arith.constant 0.353553385 : f32
    %391 = vector.broadcast %cst_145 : f32 to vector<8x8xf32>
    %392 = arith.mulf %390, %391 : vector<8x8xf32>
    %393 = vector.broadcast %386 : vector<1x8xf32> to vector<8x8xf32>
    %394 = arith.addf %392, %393 : vector<8x8xf32>
    %cst_146 = arith.constant dense<0xFF800000> : vector<8xf32>
    %395 = vector.multi_reduction <maximumf>, %394, %cst_146 [1] : vector<8x8xf32> to vector<8xf32>
    %396 = vector.shape_cast %395 : vector<8xf32> to vector<8x1xf32>
    %397 = vector.broadcast %396 : vector<8x1xf32> to vector<8x8xf32>
    %398 = arith.subf %394, %397 : vector<8x8xf32>
    %399 = math.exp %398 : vector<8x8xf32>
    %cst_147 = arith.constant dense<0.000000e+00> : vector<8xf32>
    %400 = vector.multi_reduction <add>, %399, %cst_147 [1] : vector<8x8xf32> to vector<8xf32>
    %401 = vector.shape_cast %400 : vector<8xf32> to vector<8x1xf32>
    %402 = vector.broadcast %401 : vector<8x1xf32> to vector<8x8xf32>
    %403 = arith.divf %399, %402 : vector<8x8xf32>
    %cst_148 = arith.constant dense<0.000000e+00> : vector<8x8xf32>
    %404 = tpu.matmul %403, %389, %cst_148 {dimension_numbers = #tpu.dot_dimension_numbers<[1], [0], [0], [1], [0, 0, 1, 1], [], []>} : vector<8x8xf32>, vector<8x8xf32>, vector<8x8xf32> -> vector<8x8xf32>
    %405 = vector.extract_strided_slice %382 {offsets = [0, 8], sizes = [8, 8], strides = [1, 1]} : vector<8x32xf32> to vector<8x8xf32>
    %406 = vector.extract_strided_slice %383 {offsets = [0, 8], sizes = [8, 8], strides = [1, 1]} : vector<8x32xf32> to vector<8x8xf32>
    %407 = vector.extract_strided_slice %384 {offsets = [0, 8], sizes = [8, 8], strides = [1, 1]} : vector<8x32xf32> to vector<8x8xf32>
    %cst_149 = arith.constant dense<0.000000e+00> : vector<8x8xf32>
    %408 = tpu.matmul %405, %406, %cst_149 {dimension_numbers = #tpu.dot_dimension_numbers<[1], [1], [0], [0], [0, 0, 1, 0], [], []>} : vector<8x8xf32>, vector<8x8xf32>, vector<8x8xf32> -> vector<8x8xf32>
    %cst_150 = arith.constant 0.353553385 : f32
    %409 = vector.broadcast %cst_150 : f32 to vector<8x8xf32>
    %410 = arith.mulf %408, %409 : vector<8x8xf32>
    %411 = vector.broadcast %386 : vector<1x8xf32> to vector<8x8xf32>
    %412 = arith.addf %410, %411 : vector<8x8xf32>
    %cst_151 = arith.constant dense<0xFF800000> : vector<8xf32>
    %413 = vector.multi_reduction <maximumf>, %412, %cst_151 [1] : vector<8x8xf32> to vector<8xf32>
    %414 = vector.shape_cast %413 : vector<8xf32> to vector<8x1xf32>
    %415 = vector.broadcast %414 : vector<8x1xf32> to vector<8x8xf32>
    %416 = arith.subf %412, %415 : vector<8x8xf32>
    %417 = math.exp %416 : vector<8x8xf32>
    %cst_152 = arith.constant dense<0.000000e+00> : vector<8xf32>
    %418 = vector.multi_reduction <add>, %417, %cst_152 [1] : vector<8x8xf32> to vector<8xf32>
    %419 = vector.shape_cast %418 : vector<8xf32> to vector<8x1xf32>
    %420 = vector.broadcast %419 : vector<8x1xf32> to vector<8x8xf32>
    %421 = arith.divf %417, %420 : vector<8x8xf32>
    %cst_153 = arith.constant dense<0.000000e+00> : vector<8x8xf32>
    %422 = tpu.matmul %421, %407, %cst_153 {dimension_numbers = #tpu.dot_dimension_numbers<[1], [0], [0], [1], [0, 0, 1, 1], [], []>} : vector<8x8xf32>, vector<8x8xf32>, vector<8x8xf32> -> vector<8x8xf32>
    %423 = vector.extract_strided_slice %382 {offsets = [0, 16], sizes = [8, 8], strides = [1, 1]} : vector<8x32xf32> to vector<8x8xf32>
    %424 = vector.extract_strided_slice %383 {offsets = [0, 16], sizes = [8, 8], strides = [1, 1]} : vector<8x32xf32> to vector<8x8xf32>
    %425 = vector.extract_strided_slice %384 {offsets = [0, 16], sizes = [8, 8], strides = [1, 1]} : vector<8x32xf32> to vector<8x8xf32>
    %cst_154 = arith.constant dense<0.000000e+00> : vector<8x8xf32>
    %426 = tpu.matmul %423, %424, %cst_154 {dimension_numbers = #tpu.dot_dimension_numbers<[1], [1], [0], [0], [0, 0, 1, 0], [], []>} : vector<8x8xf32>, vector<8x8xf32>, vector<8x8xf32> -> vector<8x8xf32>
    %cst_155 = arith.constant 0.353553385 : f32
    %427 = vector.broadcast %cst_155 : f32 to vector<8x8xf32>
    %428 = arith.mulf %426, %427 : vector<8x8xf32>
    %429 = vector.broadcast %386 : vector<1x8xf32> to vector<8x8xf32>
    %430 = arith.addf %428, %429 : vector<8x8xf32>
    %cst_156 = arith.constant dense<0xFF800000> : vector<8xf32>
    %431 = vector.multi_reduction <maximumf>, %430, %cst_156 [1] : vector<8x8xf32> to vector<8xf32>
    %432 = vector.shape_cast %431 : vector<8xf32> to vector<8x1xf32>
    %433 = vector.broadcast %432 : vector<8x1xf32> to vector<8x8xf32>
    %434 = arith.subf %430, %433 : vector<8x8xf32>
    %435 = math.exp %434 : vector<8x8xf32>
    %cst_157 = arith.constant dense<0.000000e+00> : vector<8xf32>
    %436 = vector.multi_reduction <add>, %435, %cst_157 [1] : vector<8x8xf32> to vector<8xf32>
    %437 = vector.shape_cast %436 : vector<8xf32> to vector<8x1xf32>
    %438 = vector.broadcast %437 : vector<8x1xf32> to vector<8x8xf32>
    %439 = arith.divf %435, %438 : vector<8x8xf32>
    %cst_158 = arith.constant dense<0.000000e+00> : vector<8x8xf32>
    %440 = tpu.matmul %439, %425, %cst_158 {dimension_numbers = #tpu.dot_dimension_numbers<[1], [0], [0], [1], [0, 0, 1, 1], [], []>} : vector<8x8xf32>, vector<8x8xf32>, vector<8x8xf32> -> vector<8x8xf32>
    %441 = vector.extract_strided_slice %382 {offsets = [0, 24], sizes = [8, 8], strides = [1, 1]} : vector<8x32xf32> to vector<8x8xf32>
    %442 = vector.extract_strided_slice %383 {offsets = [0, 24], sizes = [8, 8], strides = [1, 1]} : vector<8x32xf32> to vector<8x8xf32>
    %443 = vector.extract_strided_slice %384 {offsets = [0, 24], sizes = [8, 8], strides = [1, 1]} : vector<8x32xf32> to vector<8x8xf32>
    %cst_159 = arith.constant dense<0.000000e+00> : vector<8x8xf32>
    %444 = tpu.matmul %441, %442, %cst_159 {dimension_numbers = #tpu.dot_dimension_numbers<[1], [1], [0], [0], [0, 0, 1, 0], [], []>} : vector<8x8xf32>, vector<8x8xf32>, vector<8x8xf32> -> vector<8x8xf32>
    %cst_160 = arith.constant 0.353553385 : f32
    %445 = vector.broadcast %cst_160 : f32 to vector<8x8xf32>
    %446 = arith.mulf %444, %445 : vector<8x8xf32>
    %447 = vector.broadcast %386 : vector<1x8xf32> to vector<8x8xf32>
    %448 = arith.addf %446, %447 : vector<8x8xf32>
    %cst_161 = arith.constant dense<0xFF800000> : vector<8xf32>
    %449 = vector.multi_reduction <maximumf>, %448, %cst_161 [1] : vector<8x8xf32> to vector<8xf32>
    %450 = vector.shape_cast %449 : vector<8xf32> to vector<8x1xf32>
    %451 = vector.broadcast %450 : vector<8x1xf32> to vector<8x8xf32>
    %452 = arith.subf %448, %451 : vector<8x8xf32>
    %453 = math.exp %452 : vector<8x8xf32>
    %cst_162 = arith.constant dense<0.000000e+00> : vector<8xf32>
    %454 = vector.multi_reduction <add>, %453, %cst_162 [1] : vector<8x8xf32> to vector<8xf32>
    %455 = vector.shape_cast %454 : vector<8xf32> to vector<8x1xf32>
    %456 = vector.broadcast %455 : vector<8x1xf32> to vector<8x8xf32>
    %457 = arith.divf %453, %456 : vector<8x8xf32>
    %cst_163 = arith.constant dense<0.000000e+00> : vector<8x8xf32>
    %458 = tpu.matmul %457, %443, %cst_163 {dimension_numbers = #tpu.dot_dimension_numbers<[1], [0], [0], [1], [0, 0, 1, 1], [], []>} : vector<8x8xf32>, vector<8x8xf32>, vector<8x8xf32> -> vector<8x8xf32>
    %459 = tpu.concatenate %404, %422, %440, %458 in 1 : vector<8x8xf32>, vector<8x8xf32>, vector<8x8xf32>, vector<8x8xf32> -> vector<8x32xf32>
    %460 = tpu.concatenate %381, %459 in 0 : vector<8x32xf32>, vector<8x32xf32> -> vector<16x32xf32>
    %c1_164 = arith.constant 1 : index
    %c0_165 = arith.constant 0 : index
    %c0_166 = arith.constant 0 : index
    %461 = vector.load %arg8[%c1_164, %c0_165, %c0_166] : memref<2x32x32xf32, #tpu.memory_space<vmem>>, vector<1x32x32xf32>
    %462 = vector.shape_cast %461 : vector<1x32x32xf32> to vector<32x32xf32>
    %cst_167 = arith.constant dense<0.000000e+00> : vector<16x32xf32>
    %463 = tpu.matmul %460, %462, %cst_167 {dimension_numbers = #tpu.dot_dimension_numbers<[1], [0], [0], [1], [0, 0, 1, 1], [], []>} : vector<16x32xf32>, vector<32x32xf32>, vector<16x32xf32> -> vector<16x32xf32>
    %c1_168 = arith.constant 1 : index
    %c0_169 = arith.constant 0 : index
    %c0_170 = arith.constant 0 : index
    %464 = vector.load %arg9[%c1_168, %c0_169, %c0_170] : memref<2x1x32xf32, #tpu.memory_space<vmem>>, vector<1x1x32xf32>
    %465 = vector.shape_cast %464 : vector<1x1x32xf32> to vector<1x32xf32>
    %466 = vector.broadcast %465 : vector<1x32xf32> to vector<16x32xf32>
    %467 = arith.addf %463, %466 : vector<16x32xf32>
    %468 = arith.addf %467, %296 : vector<16x32xf32>
    %c1_171 = arith.constant 1 : index
    %c0_172 = arith.constant 0 : index
    %c0_173 = arith.constant 0 : index
    %469 = vector.load %arg14[%c1_171, %c0_172, %c0_173] : memref<2x1x32xf32, #tpu.memory_space<vmem>>, vector<1x1x32xf32>
    %470 = vector.shape_cast %469 : vector<1x1x32xf32> to vector<1x32xf32>
    %c1_174 = arith.constant 1 : index
    %c0_175 = arith.constant 0 : index
    %c0_176 = arith.constant 0 : index
    %471 = vector.load %arg15[%c1_174, %c0_175, %c0_176] : memref<2x1x32xf32, #tpu.memory_space<vmem>>, vector<1x1x32xf32>
    %472 = vector.shape_cast %471 : vector<1x1x32xf32> to vector<1x32xf32>
    %cst_177 = arith.constant dense<0.000000e+00> : vector<16xf32>
    %473 = vector.multi_reduction <add>, %468, %cst_177 [1] : vector<16x32xf32> to vector<16xf32>
    %474 = vector.shape_cast %473 : vector<16xf32> to vector<16x1xf32>
    %cst_178 = arith.constant 3.200000e+01 : f32
    %475 = vector.broadcast %cst_178 : f32 to vector<16x1xf32>
    %476 = arith.divf %474, %475 : vector<16x1xf32>
    %477 = vector.broadcast %476 : vector<16x1xf32> to vector<16x32xf32>
    %478 = arith.subf %468, %477 : vector<16x32xf32>
    %479 = arith.mulf %478, %478 : vector<16x32xf32>
    %cst_179 = arith.constant dense<0.000000e+00> : vector<16xf32>
    %480 = vector.multi_reduction <add>, %479, %cst_179 [1] : vector<16x32xf32> to vector<16xf32>
    %481 = vector.shape_cast %480 : vector<16xf32> to vector<16x1xf32>
    %cst_180 = arith.constant 3.200000e+01 : f32
    %482 = vector.broadcast %cst_180 : f32 to vector<16x1xf32>
    %483 = arith.divf %481, %482 : vector<16x1xf32>
    %484 = vector.broadcast %476 : vector<16x1xf32> to vector<16x32xf32>
    %485 = arith.subf %468, %484 : vector<16x32xf32>
    %cst_181 = arith.constant 9.99999996E-13 : f32
    %486 = vector.broadcast %cst_181 : f32 to vector<16x1xf32>
    %487 = arith.addf %483, %486 : vector<16x1xf32>
    %488 = math.rsqrt %487 : vector<16x1xf32>
    %489 = vector.broadcast %488 : vector<16x1xf32> to vector<16x32xf32>
    %490 = arith.mulf %485, %489 : vector<16x32xf32>
    %491 = vector.broadcast %470 : vector<1x32xf32> to vector<16x32xf32>
    %492 = arith.mulf %490, %491 : vector<16x32xf32>
    %493 = vector.broadcast %472 : vector<1x32xf32> to vector<16x32xf32>
    %494 = arith.addf %492, %493 : vector<16x32xf32>
    %c1_182 = arith.constant 1 : index
    %c0_183 = arith.constant 0 : index
    %c0_184 = arith.constant 0 : index
    %495 = vector.load %arg10[%c1_182, %c0_183, %c0_184] : memref<2x32x128xf32, #tpu.memory_space<vmem>>, vector<1x32x128xf32>
    %496 = vector.shape_cast %495 : vector<1x32x128xf32> to vector<32x128xf32>
    %cst_185 = arith.constant dense<0.000000e+00> : vector<16x128xf32>
    %497 = tpu.matmul %494, %496, %cst_185 {dimension_numbers = #tpu.dot_dimension_numbers<[1], [0], [0], [1], [0, 0, 1, 1], [], []>} : vector<16x32xf32>, vector<32x128xf32>, vector<16x128xf32> -> vector<16x128xf32>
    %c1_186 = arith.constant 1 : index
    %c0_187 = arith.constant 0 : index
    %c0_188 = arith.constant 0 : index
    %498 = vector.load %arg11[%c1_186, %c0_187, %c0_188] : memref<2x1x128xf32, #tpu.memory_space<vmem>>, vector<1x1x128xf32>
    %499 = vector.shape_cast %498 : vector<1x1x128xf32> to vector<1x128xf32>
    %500 = vector.broadcast %499 : vector<1x128xf32> to vector<16x128xf32>
    %501 = arith.addf %497, %500 : vector<16x128xf32>
    %502 = arith.mulf %501, %501 : vector<16x128xf32>
    %503 = arith.mulf %501, %502 : vector<16x128xf32>
    %cst_189 = arith.constant 4.471500e-02 : f32
    %504 = vector.broadcast %cst_189 : f32 to vector<16x128xf32>
    %505 = arith.mulf %504, %503 : vector<16x128xf32>
    %506 = arith.addf %501, %505 : vector<16x128xf32>
    %cst_190 = arith.constant 0.797884583 : f32
    %507 = vector.broadcast %cst_190 : f32 to vector<16x128xf32>
    %508 = arith.mulf %507, %506 : vector<16x128xf32>
    %509 = math.tanh %508 : vector<16x128xf32>
    %cst_191 = arith.constant 1.000000e+00 : f32
    %510 = vector.broadcast %cst_191 : f32 to vector<16x128xf32>
    %511 = arith.addf %510, %509 : vector<16x128xf32>
    %cst_192 = arith.constant 5.000000e-01 : f32
    %512 = vector.broadcast %cst_192 : f32 to vector<16x128xf32>
    %513 = arith.mulf %512, %511 : vector<16x128xf32>
    %514 = arith.mulf %501, %513 : vector<16x128xf32>
    %c1_193 = arith.constant 1 : index
    %c0_194 = arith.constant 0 : index
    %c0_195 = arith.constant 0 : index
    %515 = vector.load %arg12[%c1_193, %c0_194, %c0_195] : memref<2x128x32xf32, #tpu.memory_space<vmem>>, vector<1x128x32xf32>
    %516 = vector.shape_cast %515 : vector<1x128x32xf32> to vector<128x32xf32>
    %cst_196 = arith.constant dense<0.000000e+00> : vector<16x32xf32>
    %517 = tpu.matmul %514, %516, %cst_196 {dimension_numbers = #tpu.dot_dimension_numbers<[1], [0], [0], [1], [0, 0, 1, 1], [], []>} : vector<16x128xf32>, vector<128x32xf32>, vector<16x32xf32> -> vector<16x32xf32>
    %c1_197 = arith.constant 1 : index
    %c0_198 = arith.constant 0 : index
    %c0_199 = arith.constant 0 : index
    %518 = vector.load %arg13[%c1_197, %c0_198, %c0_199] : memref<2x1x32xf32, #tpu.memory_space<vmem>>, vector<1x1x32xf32>
    %519 = vector.shape_cast %518 : vector<1x1x32xf32> to vector<1x32xf32>
    %520 = vector.broadcast %519 : vector<1x32xf32> to vector<16x32xf32>
    %521 = arith.addf %517, %520 : vector<16x32xf32>
    %522 = arith.addf %521, %494 : vector<16x32xf32>
    %c1_200 = arith.constant 1 : index
    %c0_201 = arith.constant 0 : index
    %c0_202 = arith.constant 0 : index
    %523 = vector.load %arg16[%c1_200, %c0_201, %c0_202] : memref<2x1x32xf32, #tpu.memory_space<vmem>>, vector<1x1x32xf32>
    %524 = vector.shape_cast %523 : vector<1x1x32xf32> to vector<1x32xf32>
    %c1_203 = arith.constant 1 : index
    %c0_204 = arith.constant 0 : index
    %c0_205 = arith.constant 0 : index
    %525 = vector.load %arg17[%c1_203, %c0_204, %c0_205] : memref<2x1x32xf32, #tpu.memory_space<vmem>>, vector<1x1x32xf32>
    %526 = vector.shape_cast %525 : vector<1x1x32xf32> to vector<1x32xf32>
    %cst_206 = arith.constant dense<0.000000e+00> : vector<16xf32>
    %527 = vector.multi_reduction <add>, %522, %cst_206 [1] : vector<16x32xf32> to vector<16xf32>
    %528 = vector.shape_cast %527 : vector<16xf32> to vector<16x1xf32>
    %cst_207 = arith.constant 3.200000e+01 : f32
    %529 = vector.broadcast %cst_207 : f32 to vector<16x1xf32>
    %530 = arith.divf %528, %529 : vector<16x1xf32>
    %531 = vector.broadcast %530 : vector<16x1xf32> to vector<16x32xf32>
    %532 = arith.subf %522, %531 : vector<16x32xf32>
    %533 = arith.mulf %532, %532 : vector<16x32xf32>
    %cst_208 = arith.constant dense<0.000000e+00> : vector<16xf32>
    %534 = vector.multi_reduction <add>, %533, %cst_208 [1] : vector<16x32xf32> to vector<16xf32>
    %535 = vector.shape_cast %534 : vector<16xf32> to vector<16x1xf32>
    %cst_209 = arith.constant 3.200000e+01 : f32
    %536 = vector.broadcast %cst_209 : f32 to vector<16x1xf32>
    %537 = arith.divf %535, %536 : vector<16x1xf32>
    %538 = vector.broadcast %530 : vector<16x1xf32> to vector<16x32xf32>
    %539 = arith.subf %522, %538 : vector<16x32xf32>
    %cst_210 = arith.constant 9.99999996E-13 : f32
    %540 = vector.broadcast %cst_210 : f32 to vector<16x1xf32>
    %541 = arith.addf %537, %540 : vector<16x1xf32>
    %542 = math.rsqrt %541 : vector<16x1xf32>
    %543 = vector.broadcast %542 : vector<16x1xf32> to vector<16x32xf32>
    %544 = arith.mulf %539, %543 : vector<16x32xf32>
    %545 = vector.broadcast %524 : vector<1x32xf32> to vector<16x32xf32>
    %546 = arith.mulf %544, %545 : vector<16x32xf32>
    %547 = vector.broadcast %526 : vector<1x32xf32> to vector<16x32xf32>
    %548 = arith.addf %546, %547 : vector<16x32xf32>
    %c0_211 = arith.constant 0 : index
    %c0_212 = arith.constant 0 : index
    %549 = vector.load %arg18[%c0_211, %c0_212] : memref<32x8xf32, #tpu.memory_space<vmem>>, vector<32x8xf32>
    %cst_213 = arith.constant dense<0.000000e+00> : vector<16x8xf32>
    %550 = tpu.matmul %548, %549, %cst_213 {dimension_numbers = #tpu.dot_dimension_numbers<[1], [0], [0], [1], [0, 0, 1, 1], [], []>} : vector<16x32xf32>, vector<32x8xf32>, vector<16x8xf32> -> vector<16x8xf32>
    %c0_214 = arith.constant 0 : index
    %c0_215 = arith.constant 0 : index
    %551 = vector.load %arg19[%c0_214, %c0_215] : memref<1x8xf32, #tpu.memory_space<vmem>>, vector<1x8xf32>
    %552 = vector.broadcast %551 : vector<1x8xf32> to vector<16x8xf32>
    %553 = arith.addf %550, %552 : vector<16x8xf32>
    %554 = vector.extract_strided_slice %553 {offsets = [0, 0], sizes = [1, 8], strides = [1, 1]} : vector<16x8xf32> to vector<1x8xf32>
    %555 = vector.extract_strided_slice %553 {offsets = [8, 0], sizes = [1, 8], strides = [1, 1]} : vector<16x8xf32> to vector<1x8xf32>
    %556 = tpu.concatenate %554, %555 in 0 : vector<1x8xf32>, vector<1x8xf32> -> vector<2x8xf32>
    %557 = vector.extract_strided_slice %553 {offsets = [1, 0], sizes = [1, 8], strides = [1, 1]} : vector<16x8xf32> to vector<1x8xf32>
    %558 = vector.extract_strided_slice %553 {offsets = [9, 0], sizes = [1, 8], strides = [1, 1]} : vector<16x8xf32> to vector<1x8xf32>
    %559 = tpu.concatenate %557, %558 in 0 : vector<1x8xf32>, vector<1x8xf32> -> vector<2x8xf32>
    %560 = vector.extract_strided_slice %553 {offsets = [2, 0], sizes = [1, 8], strides = [1, 1]} : vector<16x8xf32> to vector<1x8xf32>
    %561 = vector.extract_strided_slice %553 {offsets = [10, 0], sizes = [1, 8], strides = [1, 1]} : vector<16x8xf32> to vector<1x8xf32>
    %562 = tpu.concatenate %560, %561 in 0 : vector<1x8xf32>, vector<1x8xf32> -> vector<2x8xf32>
    %563 = vector.extract_strided_slice %553 {offsets = [3, 0], sizes = [1, 8], strides = [1, 1]} : vector<16x8xf32> to vector<1x8xf32>
    %564 = vector.extract_strided_slice %553 {offsets = [11, 0], sizes = [1, 8], strides = [1, 1]} : vector<16x8xf32> to vector<1x8xf32>
    %565 = tpu.concatenate %563, %564 in 0 : vector<1x8xf32>, vector<1x8xf32> -> vector<2x8xf32>
    %566 = vector.extract_strided_slice %553 {offsets = [4, 0], sizes = [1, 8], strides = [1, 1]} : vector<16x8xf32> to vector<1x8xf32>
    %567 = vector.extract_strided_slice %553 {offsets = [12, 0], sizes = [1, 8], strides = [1, 1]} : vector<16x8xf32> to vector<1x8xf32>
    %568 = tpu.concatenate %566, %567 in 0 : vector<1x8xf32>, vector<1x8xf32> -> vector<2x8xf32>
    %569 = vector.extract_strided_slice %553 {offsets = [5, 0], sizes = [1, 8], strides = [1, 1]} : vector<16x8xf32> to vector<1x8xf32>
    %570 = vector.extract_strided_slice %553 {offsets = [13, 0], sizes = [1, 8], strides = [1, 1]} : vector<16x8xf32> to vector<1x8xf32>
    %571 = tpu.concatenate %569, %570 in 0 : vector<1x8xf32>, vector<1x8xf32> -> vector<2x8xf32>
    %572 = vector.extract_strided_slice %553 {offsets = [6, 0], sizes = [1, 8], strides = [1, 1]} : vector<16x8xf32> to vector<1x8xf32>
    %573 = vector.extract_strided_slice %553 {offsets = [14, 0], sizes = [1, 8], strides = [1, 1]} : vector<16x8xf32> to vector<1x8xf32>
    %574 = tpu.concatenate %572, %573 in 0 : vector<1x8xf32>, vector<1x8xf32> -> vector<2x8xf32>
    %575 = vector.extract_strided_slice %553 {offsets = [7, 0], sizes = [1, 8], strides = [1, 1]} : vector<16x8xf32> to vector<1x8xf32>
    %576 = vector.extract_strided_slice %553 {offsets = [15, 0], sizes = [1, 8], strides = [1, 1]} : vector<16x8xf32> to vector<1x8xf32>
    %577 = tpu.concatenate %575, %576 in 0 : vector<1x8xf32>, vector<1x8xf32> -> vector<2x8xf32>
    %c0_216 = arith.constant 0 : index
    %c0_217 = arith.constant 0 : index
    %578 = vector.load %arg2[%c0_216, %c0_217] : memref<2x8xi32, #tpu.memory_space<vmem>>, vector<2x8xi32>
    %c-100_i32 = arith.constant -100 : i32
    %579 = vector.broadcast %c-100_i32 : i32 to vector<2x8xi32>
    %580 = arith.cmpi eq, %578, %579 : vector<2x8xi32>
    %c2_i32 = arith.constant 2 : i32
    %581 = vector.broadcast %c2_i32 : i32 to vector<2x8xi32>
    %582 = arith.select %580, %581, %578 : vector<2x8xi1>, vector<2x8xi32>
    %c0_218 = arith.constant 0 : index
    %c0_219 = arith.constant 0 : index
    %583 = vector.load %arg20[%c0_218, %c0_219] : memref<8x8xf32, #tpu.memory_space<vmem>>, vector<8x8xf32>
    %c0_220 = arith.constant 0 : index
    %c0_221 = arith.constant 0 : index
    %584 = vector.load %arg21[%c0_220, %c0_221] : memref<1x8xf32, #tpu.memory_space<vmem>>, vector<1x8xf32>
    %585 = vector.extract_strided_slice %583 {offsets = [0, 0], sizes = [1, 8], strides = [1, 1]} : vector<8x8xf32> to vector<1x8xf32>
    %586 = tpu.iota {dimensions = array<i32: 1>} : vector<2x8xi32>
    %587 = vector.shape_cast %583 : vector<8x8xf32> to vector<1x8x8xf32>
    %588 = vector.shape_cast %587 : vector<1x8x8xf32> to vector<1x8x8xf32>
    %589 = vector.broadcast %588 : vector<1x8x8xf32> to vector<2x8x8xf32>
    %590 = tpu.iota {dimensions = array<i32: 1>} : vector<2x8x8xi32>
    %591 = vector.extract_strided_slice %582 {offsets = [0, 0], sizes = [2, 1], strides = [1, 1]} : vector<2x8xi32> to vector<2x1xi32>
    %592 = vector.broadcast %591 : vector<2x1xi32> to vector<2x8xi32>
    %593 = arith.cmpi eq, %586, %592 : vector<2x8xi32>
    %594 = arith.extui %593 : vector<2x8xi1> to vector<2x8xi32>
    %595 = arith.sitofp %594 : vector<2x8xi32> to vector<2x8xf32>
    %596 = vector.broadcast %585 : vector<1x8xf32> to vector<2x8xf32>
    %597 = arith.addf %596, %556 : vector<2x8xf32>
    %598 = arith.mulf %597, %595 : vector<2x8xf32>
    %cst_222 = arith.constant dense<0.000000e+00> : vector<2xf32>
    %599 = vector.multi_reduction <add>, %598, %cst_222 [1] : vector<2x8xf32> to vector<2xf32>
    %600 = vector.shape_cast %599 : vector<2xf32> to vector<2x1xf32>
    %601 = vector.broadcast %585 : vector<1x8xf32> to vector<2x8xf32>
    %602 = arith.addf %601, %556 : vector<2x8xf32>
    %603 = vector.extract_strided_slice %582 {offsets = [0, 1], sizes = [2, 1], strides = [1, 1]} : vector<2x8xi32> to vector<2x1xi32>
    %604 = vector.broadcast %603 : vector<2x1xi32> to vector<2x8xi32>
    %605 = arith.cmpi eq, %586, %604 : vector<2x8xi32>
    %606 = arith.extui %605 : vector<2x8xi1> to vector<2x8xi32>
    %607 = arith.sitofp %606 : vector<2x8xi32> to vector<2x8xf32>
    %608 = arith.mulf %559, %607 : vector<2x8xf32>
    %cst_223 = arith.constant dense<0.000000e+00> : vector<2xf32>
    %609 = vector.multi_reduction <add>, %608, %cst_223 [1] : vector<2x8xf32> to vector<2xf32>
    %610 = vector.shape_cast %609 : vector<2xf32> to vector<2x1xf32>
    %611 = arith.addf %600, %610 : vector<2x1xf32>
    %cst_224 = arith.constant dense<0.000000e+00> : vector<2x8xf32>
    %612 = tpu.matmul %595, %583, %cst_224 {dimension_numbers = #tpu.dot_dimension_numbers<[1], [0], [0], [1], [0, 0, 1, 1], [], []>} : vector<2x8xf32>, vector<8x8xf32>, vector<2x8xf32> -> vector<2x8xf32>
    %613 = arith.mulf %612, %607 : vector<2x8xf32>
    %cst_225 = arith.constant dense<0.000000e+00> : vector<2xf32>
    %614 = vector.multi_reduction <add>, %613, %cst_225 [1] : vector<2x8xf32> to vector<2xf32>
    %615 = vector.shape_cast %614 : vector<2xf32> to vector<2x1xf32>
    %616 = arith.addf %611, %615 : vector<2x1xf32>
    %617 = vector.shape_cast %559 : vector<2x8xf32> to vector<2x1x8xf32>
    %618 = vector.broadcast %617 : vector<2x1x8xf32> to vector<2x8x8xf32>
    %619 = arith.addf %589, %618 : vector<2x8x8xf32>
    %620 = vector.shape_cast %602 : vector<2x8xf32> to vector<2x8x1xf32>
    %621 = vector.broadcast %620 : vector<2x8x1xf32> to vector<2x8x8xf32>
    %622 = arith.addf %621, %619 : vector<2x8x8xf32>
    %cst_226 = arith.constant dense<0xFF800000> : vector<2x8xf32>
    %623 = vector.multi_reduction <maximumf>, %622, %cst_226 [1] : vector<2x8x8xf32> to vector<2x8xf32>
    %624 = vector.shape_cast %623 : vector<2x8xf32> to vector<2x1x8xf32>
    %625 = vector.broadcast %624 : vector<2x1x8xf32> to vector<2x8x8xf32>
    %626 = arith.subf %622, %625 : vector<2x8x8xf32>
    %627 = math.exp %626 : vector<2x8x8xf32>
    %cst_227 = arith.constant dense<0.000000e+00> : vector<2x8xf32>
    %628 = vector.multi_reduction <add>, %627, %cst_227 [1] : vector<2x8x8xf32> to vector<2x8xf32>
    %629 = math.log %628 : vector<2x8xf32>
    %630 = arith.addf %623, %629 : vector<2x8xf32>
    %631 = vector.shape_cast %602 : vector<2x8xf32> to vector<2x8x1xf32>
    %632 = vector.broadcast %631 : vector<2x8x1xf32> to vector<2x8x8xf32>
    %633 = arith.addf %632, %619 : vector<2x8x8xf32>
    %cst_228 = arith.constant dense<0xFF800000> : vector<2x8xf32>
    %634 = vector.multi_reduction <maximumf>, %633, %cst_228 [1] : vector<2x8x8xf32> to vector<2x8xf32>
    %635 = vector.shape_cast %634 : vector<2x8xf32> to vector<2x1x8xf32>
    %636 = vector.broadcast %635 : vector<2x1x8xf32> to vector<2x8x8xf32>
    %637 = arith.cmpf oeq, %633, %636 : vector<2x8x8xf32>
    %c8_i32 = arith.constant 8 : i32
    %638 = vector.broadcast %c8_i32 : i32 to vector<2x8x8xi32>
    %639 = arith.select %637, %590, %638 : vector<2x8x8xi1>, vector<2x8x8xi32>
    %cst_229 = arith.constant dense<2147483647> : vector<2x8xi32>
    %640 = vector.multi_reduction <minsi>, %639, %cst_229 [1] : vector<2x8x8xi32> to vector<2x8xi32>
    %641 = vector.extract_strided_slice %582 {offsets = [0, 2], sizes = [2, 1], strides = [1, 1]} : vector<2x8xi32> to vector<2x1xi32>
    %642 = vector.broadcast %641 : vector<2x1xi32> to vector<2x8xi32>
    %643 = arith.cmpi eq, %586, %642 : vector<2x8xi32>
    %644 = arith.extui %643 : vector<2x8xi1> to vector<2x8xi32>
    %645 = arith.sitofp %644 : vector<2x8xi32> to vector<2x8xf32>
    %646 = arith.mulf %562, %645 : vector<2x8xf32>
    %cst_230 = arith.constant dense<0.000000e+00> : vector<2xf32>
    %647 = vector.multi_reduction <add>, %646, %cst_230 [1] : vector<2x8xf32> to vector<2xf32>
    %648 = vector.shape_cast %647 : vector<2xf32> to vector<2x1xf32>
    %649 = arith.addf %616, %648 : vector<2x1xf32>
    %cst_231 = arith.constant dense<0.000000e+00> : vector<2x8xf32>
    %650 = tpu.matmul %607, %583, %cst_231 {dimension_numbers = #tpu.dot_dimension_numbers<[1], [0], [0], [1], [0, 0, 1, 1], [], []>} : vector<2x8xf32>, vector<8x8xf32>, vector<2x8xf32> -> vector<2x8xf32>
    %651 = arith.mulf %650, %645 : vector<2x8xf32>
    %cst_232 = arith.constant dense<0.000000e+00> : vector<2xf32>
    %652 = vector.multi_reduction <add>, %651, %cst_232 [1] : vector<2x8xf32> to vector<2xf32>
    %653 = vector.shape_cast %652 : vector<2xf32> to vector<2x1xf32>
    %654 = arith.addf %649, %653 : vector<2x1xf32>
    %655 = vector.shape_cast %562 : vector<2x8xf32> to vector<2x1x8xf32>
    %656 = vector.broadcast %655 : vector<2x1x8xf32> to vector<2x8x8xf32>
    %657 = arith.addf %589, %656 : vector<2x8x8xf32>
    %658 = vector.shape_cast %630 : vector<2x8xf32> to vector<2x8x1xf32>
    %659 = vector.broadcast %658 : vector<2x8x1xf32> to vector<2x8x8xf32>
    %660 = arith.addf %659, %657 : vector<2x8x8xf32>
    %cst_233 = arith.constant dense<0xFF800000> : vector<2x8xf32>
    %661 = vector.multi_reduction <maximumf>, %660, %cst_233 [1] : vector<2x8x8xf32> to vector<2x8xf32>
    %662 = vector.shape_cast %661 : vector<2x8xf32> to vector<2x1x8xf32>
    %663 = vector.broadcast %662 : vector<2x1x8xf32> to vector<2x8x8xf32>
    %664 = arith.subf %660, %663 : vector<2x8x8xf32>
    %665 = math.exp %664 : vector<2x8x8xf32>
    %cst_234 = arith.constant dense<0.000000e+00> : vector<2x8xf32>
    %666 = vector.multi_reduction <add>, %665, %cst_234 [1] : vector<2x8x8xf32> to vector<2x8xf32>
    %667 = math.log %666 : vector<2x8xf32>
    %668 = arith.addf %661, %667 : vector<2x8xf32>
    %669 = vector.shape_cast %634 : vector<2x8xf32> to vector<2x8x1xf32>
    %670 = vector.broadcast %669 : vector<2x8x1xf32> to vector<2x8x8xf32>
    %671 = arith.addf %670, %657 : vector<2x8x8xf32>
    %cst_235 = arith.constant dense<0xFF800000> : vector<2x8xf32>
    %672 = vector.multi_reduction <maximumf>, %671, %cst_235 [1] : vector<2x8x8xf32> to vector<2x8xf32>
    %673 = vector.shape_cast %672 : vector<2x8xf32> to vector<2x1x8xf32>
    %674 = vector.broadcast %673 : vector<2x1x8xf32> to vector<2x8x8xf32>
    %675 = arith.cmpf oeq, %671, %674 : vector<2x8x8xf32>
    %c8_i32_236 = arith.constant 8 : i32
    %676 = vector.broadcast %c8_i32_236 : i32 to vector<2x8x8xi32>
    %677 = arith.select %675, %590, %676 : vector<2x8x8xi1>, vector<2x8x8xi32>
    %cst_237 = arith.constant dense<2147483647> : vector<2x8xi32>
    %678 = vector.multi_reduction <minsi>, %677, %cst_237 [1] : vector<2x8x8xi32> to vector<2x8xi32>
    %679 = vector.extract_strided_slice %582 {offsets = [0, 3], sizes = [2, 1], strides = [1, 1]} : vector<2x8xi32> to vector<2x1xi32>
    %680 = vector.broadcast %679 : vector<2x1xi32> to vector<2x8xi32>
    %681 = arith.cmpi eq, %586, %680 : vector<2x8xi32>
    %682 = arith.extui %681 : vector<2x8xi1> to vector<2x8xi32>
    %683 = arith.sitofp %682 : vector<2x8xi32> to vector<2x8xf32>
    %684 = arith.mulf %565, %683 : vector<2x8xf32>
    %cst_238 = arith.constant dense<0.000000e+00> : vector<2xf32>
    %685 = vector.multi_reduction <add>, %684, %cst_238 [1] : vector<2x8xf32> to vector<2xf32>
    %686 = vector.shape_cast %685 : vector<2xf32> to vector<2x1xf32>
    %687 = arith.addf %654, %686 : vector<2x1xf32>
    %cst_239 = arith.constant dense<0.000000e+00> : vector<2x8xf32>
    %688 = tpu.matmul %645, %583, %cst_239 {dimension_numbers = #tpu.dot_dimension_numbers<[1], [0], [0], [1], [0, 0, 1, 1], [], []>} : vector<2x8xf32>, vector<8x8xf32>, vector<2x8xf32> -> vector<2x8xf32>
    %689 = arith.mulf %688, %683 : vector<2x8xf32>
    %cst_240 = arith.constant dense<0.000000e+00> : vector<2xf32>
    %690 = vector.multi_reduction <add>, %689, %cst_240 [1] : vector<2x8xf32> to vector<2xf32>
    %691 = vector.shape_cast %690 : vector<2xf32> to vector<2x1xf32>
    %692 = arith.addf %687, %691 : vector<2x1xf32>
    %693 = vector.shape_cast %565 : vector<2x8xf32> to vector<2x1x8xf32>
    %694 = vector.broadcast %693 : vector<2x1x8xf32> to vector<2x8x8xf32>
    %695 = arith.addf %589, %694 : vector<2x8x8xf32>
    %696 = vector.shape_cast %668 : vector<2x8xf32> to vector<2x8x1xf32>
    %697 = vector.broadcast %696 : vector<2x8x1xf32> to vector<2x8x8xf32>
    %698 = arith.addf %697, %695 : vector<2x8x8xf32>
    %cst_241 = arith.constant dense<0xFF800000> : vector<2x8xf32>
    %699 = vector.multi_reduction <maximumf>, %698, %cst_241 [1] : vector<2x8x8xf32> to vector<2x8xf32>
    %700 = vector.shape_cast %699 : vector<2x8xf32> to vector<2x1x8xf32>
    %701 = vector.broadcast %700 : vector<2x1x8xf32> to vector<2x8x8xf32>
    %702 = arith.subf %698, %701 : vector<2x8x8xf32>
    %703 = math.exp %702 : vector<2x8x8xf32>
    %cst_242 = arith.constant dense<0.000000e+00> : vector<2x8xf32>
    %704 = vector.multi_reduction <add>, %703, %cst_242 [1] : vector<2x8x8xf32> to vector<2x8xf32>
    %705 = math.log %704 : vector<2x8xf32>
    %706 = arith.addf %699, %705 : vector<2x8xf32>
    %707 = vector.shape_cast %672 : vector<2x8xf32> to vector<2x8x1xf32>
    %708 = vector.broadcast %707 : vector<2x8x1xf32> to vector<2x8x8xf32>
    %709 = arith.addf %708, %695 : vector<2x8x8xf32>
    %cst_243 = arith.constant dense<0xFF800000> : vector<2x8xf32>
    %710 = vector.multi_reduction <maximumf>, %709, %cst_243 [1] : vector<2x8x8xf32> to vector<2x8xf32>
    %711 = vector.shape_cast %710 : vector<2x8xf32> to vector<2x1x8xf32>
    %712 = vector.broadcast %711 : vector<2x1x8xf32> to vector<2x8x8xf32>
    %713 = arith.cmpf oeq, %709, %712 : vector<2x8x8xf32>
    %c8_i32_244 = arith.constant 8 : i32
    %714 = vector.broadcast %c8_i32_244 : i32 to vector<2x8x8xi32>
    %715 = arith.select %713, %590, %714 : vector<2x8x8xi1>, vector<2x8x8xi32>
    %cst_245 = arith.constant dense<2147483647> : vector<2x8xi32>
    %716 = vector.multi_reduction <minsi>, %715, %cst_245 [1] : vector<2x8x8xi32> to vector<2x8xi32>
    %717 = vector.extract_strided_slice %582 {offsets = [0, 4], sizes = [2, 1], strides = [1, 1]} : vector<2x8xi32> to vector<2x1xi32>
    %718 = vector.broadcast %717 : vector<2x1xi32> to vector<2x8xi32>
    %719 = arith.cmpi eq, %586, %718 : vector<2x8xi32>
    %720 = arith.extui %719 : vector<2x8xi1> to vector<2x8xi32>
    %721 = arith.sitofp %720 : vector<2x8xi32> to vector<2x8xf32>
    %722 = arith.mulf %568, %721 : vector<2x8xf32>
    %cst_246 = arith.constant dense<0.000000e+00> : vector<2xf32>
    %723 = vector.multi_reduction <add>, %722, %cst_246 [1] : vector<2x8xf32> to vector<2xf32>
    %724 = vector.shape_cast %723 : vector<2xf32> to vector<2x1xf32>
    %725 = arith.addf %692, %724 : vector<2x1xf32>
    %cst_247 = arith.constant dense<0.000000e+00> : vector<2x8xf32>
    %726 = tpu.matmul %683, %583, %cst_247 {dimension_numbers = #tpu.dot_dimension_numbers<[1], [0], [0], [1], [0, 0, 1, 1], [], []>} : vector<2x8xf32>, vector<8x8xf32>, vector<2x8xf32> -> vector<2x8xf32>
    %727 = arith.mulf %726, %721 : vector<2x8xf32>
    %cst_248 = arith.constant dense<0.000000e+00> : vector<2xf32>
    %728 = vector.multi_reduction <add>, %727, %cst_248 [1] : vector<2x8xf32> to vector<2xf32>
    %729 = vector.shape_cast %728 : vector<2xf32> to vector<2x1xf32>
    %730 = arith.addf %725, %729 : vector<2x1xf32>
    %731 = vector.shape_cast %568 : vector<2x8xf32> to vector<2x1x8xf32>
    %732 = vector.broadcast %731 : vector<2x1x8xf32> to vector<2x8x8xf32>
    %733 = arith.addf %589, %732 : vector<2x8x8xf32>
    %734 = vector.shape_cast %706 : vector<2x8xf32> to vector<2x8x1xf32>
    %735 = vector.broadcast %734 : vector<2x8x1xf32> to vector<2x8x8xf32>
    %736 = arith.addf %735, %733 : vector<2x8x8xf32>
    %cst_249 = arith.constant dense<0xFF800000> : vector<2x8xf32>
    %737 = vector.multi_reduction <maximumf>, %736, %cst_249 [1] : vector<2x8x8xf32> to vector<2x8xf32>
    %738 = vector.shape_cast %737 : vector<2x8xf32> to vector<2x1x8xf32>
    %739 = vector.broadcast %738 : vector<2x1x8xf32> to vector<2x8x8xf32>
    %740 = arith.subf %736, %739 : vector<2x8x8xf32>
    %741 = math.exp %740 : vector<2x8x8xf32>
    %cst_250 = arith.constant dense<0.000000e+00> : vector<2x8xf32>
    %742 = vector.multi_reduction <add>, %741, %cst_250 [1] : vector<2x8x8xf32> to vector<2x8xf32>
    %743 = math.log %742 : vector<2x8xf32>
    %744 = arith.addf %737, %743 : vector<2x8xf32>
    %745 = vector.shape_cast %710 : vector<2x8xf32> to vector<2x8x1xf32>
    %746 = vector.broadcast %745 : vector<2x8x1xf32> to vector<2x8x8xf32>
    %747 = arith.addf %746, %733 : vector<2x8x8xf32>
    %cst_251 = arith.constant dense<0xFF800000> : vector<2x8xf32>
    %748 = vector.multi_reduction <maximumf>, %747, %cst_251 [1] : vector<2x8x8xf32> to vector<2x8xf32>
    %749 = vector.shape_cast %748 : vector<2x8xf32> to vector<2x1x8xf32>
    %750 = vector.broadcast %749 : vector<2x1x8xf32> to vector<2x8x8xf32>
    %751 = arith.cmpf oeq, %747, %750 : vector<2x8x8xf32>
    %c8_i32_252 = arith.constant 8 : i32
    %752 = vector.broadcast %c8_i32_252 : i32 to vector<2x8x8xi32>
    %753 = arith.select %751, %590, %752 : vector<2x8x8xi1>, vector<2x8x8xi32>
    %cst_253 = arith.constant dense<2147483647> : vector<2x8xi32>
    %754 = vector.multi_reduction <minsi>, %753, %cst_253 [1] : vector<2x8x8xi32> to vector<2x8xi32>
    %755 = vector.extract_strided_slice %582 {offsets = [0, 5], sizes = [2, 1], strides = [1, 1]} : vector<2x8xi32> to vector<2x1xi32>
    %756 = vector.broadcast %755 : vector<2x1xi32> to vector<2x8xi32>
    %757 = arith.cmpi eq, %586, %756 : vector<2x8xi32>
    %758 = arith.extui %757 : vector<2x8xi1> to vector<2x8xi32>
    %759 = arith.sitofp %758 : vector<2x8xi32> to vector<2x8xf32>
    %760 = arith.mulf %571, %759 : vector<2x8xf32>
    %cst_254 = arith.constant dense<0.000000e+00> : vector<2xf32>
    %761 = vector.multi_reduction <add>, %760, %cst_254 [1] : vector<2x8xf32> to vector<2xf32>
    %762 = vector.shape_cast %761 : vector<2xf32> to vector<2x1xf32>
    %763 = arith.addf %730, %762 : vector<2x1xf32>
    %cst_255 = arith.constant dense<0.000000e+00> : vector<2x8xf32>
    %764 = tpu.matmul %721, %583, %cst_255 {dimension_numbers = #tpu.dot_dimension_numbers<[1], [0], [0], [1], [0, 0, 1, 1], [], []>} : vector<2x8xf32>, vector<8x8xf32>, vector<2x8xf32> -> vector<2x8xf32>
    %765 = arith.mulf %764, %759 : vector<2x8xf32>
    %cst_256 = arith.constant dense<0.000000e+00> : vector<2xf32>
    %766 = vector.multi_reduction <add>, %765, %cst_256 [1] : vector<2x8xf32> to vector<2xf32>
    %767 = vector.shape_cast %766 : vector<2xf32> to vector<2x1xf32>
    %768 = arith.addf %763, %767 : vector<2x1xf32>
    %769 = vector.shape_cast %571 : vector<2x8xf32> to vector<2x1x8xf32>
    %770 = vector.broadcast %769 : vector<2x1x8xf32> to vector<2x8x8xf32>
    %771 = arith.addf %589, %770 : vector<2x8x8xf32>
    %772 = vector.shape_cast %744 : vector<2x8xf32> to vector<2x8x1xf32>
    %773 = vector.broadcast %772 : vector<2x8x1xf32> to vector<2x8x8xf32>
    %774 = arith.addf %773, %771 : vector<2x8x8xf32>
    %cst_257 = arith.constant dense<0xFF800000> : vector<2x8xf32>
    %775 = vector.multi_reduction <maximumf>, %774, %cst_257 [1] : vector<2x8x8xf32> to vector<2x8xf32>
    %776 = vector.shape_cast %775 : vector<2x8xf32> to vector<2x1x8xf32>
    %777 = vector.broadcast %776 : vector<2x1x8xf32> to vector<2x8x8xf32>
    %778 = arith.subf %774, %777 : vector<2x8x8xf32>
    %779 = math.exp %778 : vector<2x8x8xf32>
    %cst_258 = arith.constant dense<0.000000e+00> : vector<2x8xf32>
    %780 = vector.multi_reduction <add>, %779, %cst_258 [1] : vector<2x8x8xf32> to vector<2x8xf32>
    %781 = math.log %780 : vector<2x8xf32>
    %782 = arith.addf %775, %781 : vector<2x8xf32>
    %783 = vector.shape_cast %748 : vector<2x8xf32> to vector<2x8x1xf32>
    %784 = vector.broadcast %783 : vector<2x8x1xf32> to vector<2x8x8xf32>
    %785 = arith.addf %784, %771 : vector<2x8x8xf32>
    %cst_259 = arith.constant dense<0xFF800000> : vector<2x8xf32>
    %786 = vector.multi_reduction <maximumf>, %785, %cst_259 [1] : vector<2x8x8xf32> to vector<2x8xf32>
    %787 = vector.shape_cast %786 : vector<2x8xf32> to vector<2x1x8xf32>
    %788 = vector.broadcast %787 : vector<2x1x8xf32> to vector<2x8x8xf32>
    %789 = arith.cmpf oeq, %785, %788 : vector<2x8x8xf32>
    %c8_i32_260 = arith.constant 8 : i32
    %790 = vector.broadcast %c8_i32_260 : i32 to vector<2x8x8xi32>
    %791 = arith.select %789, %590, %790 : vector<2x8x8xi1>, vector<2x8x8xi32>
    %cst_261 = arith.constant dense<2147483647> : vector<2x8xi32>
    %792 = vector.multi_reduction <minsi>, %791, %cst_261 [1] : vector<2x8x8xi32> to vector<2x8xi32>
    %793 = vector.extract_strided_slice %582 {offsets = [0, 6], sizes = [2, 1], strides = [1, 1]} : vector<2x8xi32> to vector<2x1xi32>
    %794 = vector.broadcast %793 : vector<2x1xi32> to vector<2x8xi32>
    %795 = arith.cmpi eq, %586, %794 : vector<2x8xi32>
    %796 = arith.extui %795 : vector<2x8xi1> to vector<2x8xi32>
    %797 = arith.sitofp %796 : vector<2x8xi32> to vector<2x8xf32>
    %798 = arith.mulf %574, %797 : vector<2x8xf32>
    %cst_262 = arith.constant dense<0.000000e+00> : vector<2xf32>
    %799 = vector.multi_reduction <add>, %798, %cst_262 [1] : vector<2x8xf32> to vector<2xf32>
    %800 = vector.shape_cast %799 : vector<2xf32> to vector<2x1xf32>
    %801 = arith.addf %768, %800 : vector<2x1xf32>
    %cst_263 = arith.constant dense<0.000000e+00> : vector<2x8xf32>
    %802 = tpu.matmul %759, %583, %cst_263 {dimension_numbers = #tpu.dot_dimension_numbers<[1], [0], [0], [1], [0, 0, 1, 1], [], []>} : vector<2x8xf32>, vector<8x8xf32>, vector<2x8xf32> -> vector<2x8xf32>
    %803 = arith.mulf %802, %797 : vector<2x8xf32>
    %cst_264 = arith.constant dense<0.000000e+00> : vector<2xf32>
    %804 = vector.multi_reduction <add>, %803, %cst_264 [1] : vector<2x8xf32> to vector<2xf32>
    %805 = vector.shape_cast %804 : vector<2xf32> to vector<2x1xf32>
    %806 = arith.addf %801, %805 : vector<2x1xf32>
    %807 = vector.shape_cast %574 : vector<2x8xf32> to vector<2x1x8xf32>
    %808 = vector.broadcast %807 : vector<2x1x8xf32> to vector<2x8x8xf32>
    %809 = arith.addf %589, %808 : vector<2x8x8xf32>
    %810 = vector.shape_cast %782 : vector<2x8xf32> to vector<2x8x1xf32>
    %811 = vector.broadcast %810 : vector<2x8x1xf32> to vector<2x8x8xf32>
    %812 = arith.addf %811, %809 : vector<2x8x8xf32>
    %cst_265 = arith.constant dense<0xFF800000> : vector<2x8xf32>
    %813 = vector.multi_reduction <maximumf>, %812, %cst_265 [1] : vector<2x8x8xf32> to vector<2x8xf32>
    %814 = vector.shape_cast %813 : vector<2x8xf32> to vector<2x1x8xf32>
    %815 = vector.broadcast %814 : vector<2x1x8xf32> to vector<2x8x8xf32>
    %816 = arith.subf %812, %815 : vector<2x8x8xf32>
    %817 = math.exp %816 : vector<2x8x8xf32>
    %cst_266 = arith.constant dense<0.000000e+00> : vector<2x8xf32>
    %818 = vector.multi_reduction <add>, %817, %cst_266 [1] : vector<2x8x8xf32> to vector<2x8xf32>
    %819 = math.log %818 : vector<2x8xf32>
    %820 = arith.addf %813, %819 : vector<2x8xf32>
    %821 = vector.shape_cast %786 : vector<2x8xf32> to vector<2x8x1xf32>
    %822 = vector.broadcast %821 : vector<2x8x1xf32> to vector<2x8x8xf32>
    %823 = arith.addf %822, %809 : vector<2x8x8xf32>
    %cst_267 = arith.constant dense<0xFF800000> : vector<2x8xf32>
    %824 = vector.multi_reduction <maximumf>, %823, %cst_267 [1] : vector<2x8x8xf32> to vector<2x8xf32>
    %825 = vector.shape_cast %824 : vector<2x8xf32> to vector<2x1x8xf32>
    %826 = vector.broadcast %825 : vector<2x1x8xf32> to vector<2x8x8xf32>
    %827 = arith.cmpf oeq, %823, %826 : vector<2x8x8xf32>
    %c8_i32_268 = arith.constant 8 : i32
    %828 = vector.broadcast %c8_i32_268 : i32 to vector<2x8x8xi32>
    %829 = arith.select %827, %590, %828 : vector<2x8x8xi1>, vector<2x8x8xi32>
    %cst_269 = arith.constant dense<2147483647> : vector<2x8xi32>
    %830 = vector.multi_reduction <minsi>, %829, %cst_269 [1] : vector<2x8x8xi32> to vector<2x8xi32>
    %831 = vector.extract_strided_slice %582 {offsets = [0, 7], sizes = [2, 1], strides = [1, 1]} : vector<2x8xi32> to vector<2x1xi32>
    %832 = vector.broadcast %831 : vector<2x1xi32> to vector<2x8xi32>
    %833 = arith.cmpi eq, %586, %832 : vector<2x8xi32>
    %834 = arith.extui %833 : vector<2x8xi1> to vector<2x8xi32>
    %835 = arith.sitofp %834 : vector<2x8xi32> to vector<2x8xf32>
    %836 = arith.mulf %577, %835 : vector<2x8xf32>
    %cst_270 = arith.constant dense<0.000000e+00> : vector<2xf32>
    %837 = vector.multi_reduction <add>, %836, %cst_270 [1] : vector<2x8xf32> to vector<2xf32>
    %838 = vector.shape_cast %837 : vector<2xf32> to vector<2x1xf32>
    %839 = arith.addf %806, %838 : vector<2x1xf32>
    %cst_271 = arith.constant dense<0.000000e+00> : vector<2x8xf32>
    %840 = tpu.matmul %797, %583, %cst_271 {dimension_numbers = #tpu.dot_dimension_numbers<[1], [0], [0], [1], [0, 0, 1, 1], [], []>} : vector<2x8xf32>, vector<8x8xf32>, vector<2x8xf32> -> vector<2x8xf32>
    %841 = arith.mulf %840, %835 : vector<2x8xf32>
    %cst_272 = arith.constant dense<0.000000e+00> : vector<2xf32>
    %842 = vector.multi_reduction <add>, %841, %cst_272 [1] : vector<2x8xf32> to vector<2xf32>
    %843 = vector.shape_cast %842 : vector<2xf32> to vector<2x1xf32>
    %844 = arith.addf %839, %843 : vector<2x1xf32>
    %845 = vector.shape_cast %577 : vector<2x8xf32> to vector<2x1x8xf32>
    %846 = vector.broadcast %845 : vector<2x1x8xf32> to vector<2x8x8xf32>
    %847 = arith.addf %589, %846 : vector<2x8x8xf32>
    %848 = vector.shape_cast %820 : vector<2x8xf32> to vector<2x8x1xf32>
    %849 = vector.broadcast %848 : vector<2x8x1xf32> to vector<2x8x8xf32>
    %850 = arith.addf %849, %847 : vector<2x8x8xf32>
    %cst_273 = arith.constant dense<0xFF800000> : vector<2x8xf32>
    %851 = vector.multi_reduction <maximumf>, %850, %cst_273 [1] : vector<2x8x8xf32> to vector<2x8xf32>
    %852 = vector.shape_cast %851 : vector<2x8xf32> to vector<2x1x8xf32>
    %853 = vector.broadcast %852 : vector<2x1x8xf32> to vector<2x8x8xf32>
    %854 = arith.subf %850, %853 : vector<2x8x8xf32>
    %855 = math.exp %854 : vector<2x8x8xf32>
    %cst_274 = arith.constant dense<0.000000e+00> : vector<2x8xf32>
    %856 = vector.multi_reduction <add>, %855, %cst_274 [1] : vector<2x8x8xf32> to vector<2x8xf32>
    %857 = math.log %856 : vector<2x8xf32>
    %858 = arith.addf %851, %857 : vector<2x8xf32>
    %859 = vector.shape_cast %824 : vector<2x8xf32> to vector<2x8x1xf32>
    %860 = vector.broadcast %859 : vector<2x8x1xf32> to vector<2x8x8xf32>
    %861 = arith.addf %860, %847 : vector<2x8x8xf32>
    %cst_275 = arith.constant dense<0xFF800000> : vector<2x8xf32>
    %862 = vector.multi_reduction <maximumf>, %861, %cst_275 [1] : vector<2x8x8xf32> to vector<2x8xf32>
    %863 = vector.shape_cast %862 : vector<2x8xf32> to vector<2x1x8xf32>
    %864 = vector.broadcast %863 : vector<2x1x8xf32> to vector<2x8x8xf32>
    %865 = arith.cmpf oeq, %861, %864 : vector<2x8x8xf32>
    %c8_i32_276 = arith.constant 8 : i32
    %866 = vector.broadcast %c8_i32_276 : i32 to vector<2x8x8xi32>
    %867 = arith.select %865, %590, %866 : vector<2x8x8xi1>, vector<2x8x8xi32>
    %cst_277 = arith.constant dense<2147483647> : vector<2x8xi32>
    %868 = vector.multi_reduction <minsi>, %867, %cst_277 [1] : vector<2x8x8xi32> to vector<2x8xi32>
    %869 = vector.broadcast %584 : vector<1x8xf32> to vector<2x8xf32>
    %870 = arith.mulf %835, %869 : vector<2x8xf32>
    %cst_278 = arith.constant dense<0.000000e+00> : vector<2xf32>
    %871 = vector.multi_reduction <add>, %870, %cst_278 [1] : vector<2x8xf32> to vector<2xf32>
    %872 = vector.shape_cast %871 : vector<2xf32> to vector<2x1xf32>
    %873 = arith.addf %844, %872 : vector<2x1xf32>
    %874 = vector.broadcast %584 : vector<1x8xf32> to vector<2x8xf32>
    %875 = arith.addf %858, %874 : vector<2x8xf32>
    %cst_279 = arith.constant dense<0xFF800000> : vector<2xf32>
    %876 = vector.multi_reduction <maximumf>, %875, %cst_279 [1] : vector<2x8xf32> to vector<2xf32>
    %877 = vector.shape_cast %876 : vector<2xf32> to vector<2x1xf32>
    %878 = vector.broadcast %877 : vector<2x1xf32> to vector<2x8xf32>
    %879 = arith.subf %875, %878 : vector<2x8xf32>
    %880 = math.exp %879 : vector<2x8xf32>
    %cst_280 = arith.constant dense<0.000000e+00> : vector<2xf32>
    %881 = vector.multi_reduction <add>, %880, %cst_280 [1] : vector<2x8xf32> to vector<2xf32>
    %882 = vector.shape_cast %881 : vector<2xf32> to vector<2x1xf32>
    %883 = math.log %882 : vector<2x1xf32>
    %884 = arith.addf %877, %883 : vector<2x1xf32>
    %885 = arith.subf %884, %873 : vector<2x1xf32>
    %886 = vector.shape_cast %885 : vector<2x1xf32> to vector<1x2x1xf32>
    %cst_281 = arith.constant dense<0.000000e+00> : vector<1xf32>
    %887 = vector.multi_reduction <add>, %886, %cst_281 [1, 2] : vector<1x2x1xf32> to vector<1xf32>
    %888 = vector.shape_cast %887 : vector<1xf32> to vector<1x1x1xf32>
    %889 = vector.extract %888[0, 0, 0] : f32 from vector<1x1x1xf32>
    %890 = vector.broadcast %889 : f32 to vector<1x1xf32>
    %c0_282 = arith.constant 0 : index
    %c0_283 = arith.constant 0 : index
    %891 = vector.load %arg22[%c0_282, %c0_283] : memref<1x1xf32, #tpu.memory_space<vmem>>, vector<1x1xf32>
    tpu.vector_store %arg22[%c0_282, %c0_283], %890 {strides = array<i32>} : memref<1x1xf32, #tpu.memory_space<vmem>>, vector<1x1xf32>,
    %892 = vector.broadcast %584 : vector<1x8xf32> to vector<2x8xf32>
    %893 = arith.addf %862, %892 : vector<2x8xf32>
    %cst_284 = arith.constant dense<0xFF800000> : vector<2xf32>
    %894 = vector.multi_reduction <maximumf>, %893, %cst_284 [1] : vector<2x8xf32> to vector<2xf32>
    %895 = vector.shape_cast %894 : vector<2xf32> to vector<2x1xf32>
    %896 = vector.broadcast %895 : vector<2x1xf32> to vector<2x8xf32>
    %897 = arith.cmpf oeq, %893, %896 : vector<2x8xf32>
    %c8_i32_285 = arith.constant 8 : i32
    %898 = vector.broadcast %c8_i32_285 : i32 to vector<2x8xi32>
    %899 = arith.select %897, %586, %898 : vector<2x8xi1>, vector<2x8xi32>
    %cst_286 = arith.constant dense<2147483647> : vector<2xi32>
    %900 = vector.multi_reduction <minsi>, %899, %cst_286 [1] : vector<2x8xi32> to vector<2xi32>
    %901 = vector.shape_cast %900 : vector<2xi32> to vector<2x1xi32>
    %902 = vector.broadcast %901 : vector<2x1xi32> to vector<2x8xi32>
    %903 = arith.cmpi eq, %586, %902 : vector<2x8xi32>
    %904 = arith.extui %903 : vector<2x8xi1> to vector<2x8xi32>
    %905 = arith.muli %868, %904 : vector<2x8xi32>
    %cst_287 = arith.constant dense<0> : vector<2xi32>
    %906 = vector.multi_reduction <add>, %905, %cst_287 [1] : vector<2x8xi32> to vector<2xi32>
    %907 = vector.shape_cast %906 : vector<2xi32> to vector<2x1xi32>
    %908 = vector.broadcast %907 : vector<2x1xi32> to vector<2x8xi32>
    %909 = arith.cmpi eq, %586, %908 : vector<2x8xi32>
    %910 = arith.extui %909 : vector<2x8xi1> to vector<2x8xi32>
    %911 = arith.muli %830, %910 : vector<2x8xi32>
    %cst_288 = arith.constant dense<0> : vector<2xi32>
    %912 = vector.multi_reduction <add>, %911, %cst_288 [1] : vector<2x8xi32> to vector<2xi32>
    %913 = vector.shape_cast %912 : vector<2xi32> to vector<2x1xi32>
    %914 = vector.broadcast %913 : vector<2x1xi32> to vector<2x8xi32>
    %915 = arith.cmpi eq, %586, %914 : vector<2x8xi32>
    %916 = arith.extui %915 : vector<2x8xi1> to vector<2x8xi32>
    %917 = arith.muli %792, %916 : vector<2x8xi32>
    %cst_289 = arith.constant dense<0> : vector<2xi32>
    %918 = vector.multi_reduction <add>, %917, %cst_289 [1] : vector<2x8xi32> to vector<2xi32>
    %919 = vector.shape_cast %918 : vector<2xi32> to vector<2x1xi32>
    %920 = vector.broadcast %919 : vector<2x1xi32> to vector<2x8xi32>
    %921 = arith.cmpi eq, %586, %920 : vector<2x8xi32>
    %922 = arith.extui %921 : vector<2x8xi1> to vector<2x8xi32>
    %923 = arith.muli %754, %922 : vector<2x8xi32>
    %cst_290 = arith.constant dense<0> : vector<2xi32>
    %924 = vector.multi_reduction <add>, %923, %cst_290 [1] : vector<2x8xi32> to vector<2xi32>
    %925 = vector.shape_cast %924 : vector<2xi32> to vector<2x1xi32>
    %926 = vector.broadcast %925 : vector<2x1xi32> to vector<2x8xi32>
    %927 = arith.cmpi eq, %586, %926 : vector<2x8xi32>
    %928 = arith.extui %927 : vector<2x8xi1> to vector<2x8xi32>
    %929 = arith.muli %716, %928 : vector<2x8xi32>
    %cst_291 = arith.constant dense<0> : vector<2xi32>
    %930 = vector.multi_reduction <add>, %929, %cst_291 [1] : vector<2x8xi32> to vector<2xi32>
    %931 = vector.shape_cast %930 : vector<2xi32> to vector<2x1xi32>
    %932 = vector.broadcast %931 : vector<2x1xi32> to vector<2x8xi32>
    %933 = arith.cmpi eq, %586, %932 : vector<2x8xi32>
    %934 = arith.extui %933 : vector<2x8xi1> to vector<2x8xi32>
    %935 = arith.muli %678, %934 : vector<2x8xi32>
    %cst_292 = arith.constant dense<0> : vector<2xi32>
    %936 = vector.multi_reduction <add>, %935, %cst_292 [1] : vector<2x8xi32> to vector<2xi32>
    %937 = vector.shape_cast %936 : vector<2xi32> to vector<2x1xi32>
    %938 = vector.broadcast %937 : vector<2x1xi32> to vector<2x8xi32>
    %939 = arith.cmpi eq, %586, %938 : vector<2x8xi32>
    %940 = arith.extui %939 : vector<2x8xi1> to vector<2x8xi32>
    %941 = arith.muli %640, %940 : vector<2x8xi32>
    %cst_293 = arith.constant dense<0> : vector<2xi32>
    %942 = vector.multi_reduction <add>, %941, %cst_293 [1] : vector<2x8xi32> to vector<2xi32>
    %943 = vector.shape_cast %942 : vector<2xi32> to vector<2x1xi32>
    %944 = tpu.concatenate %943, %937, %931, %925, %919, %913, %907, %901 in 1 : vector<2x1xi32>, vector<2x1xi32>, vector<2x1xi32>, vector<2x1xi32>, vector<2x1xi32>, vector<2x1xi32>, vector<2x1xi32>, vector<2x1xi32> -> vector<2x8xi32>
    %c0_294 = arith.constant 0 : index
    %c0_295 = arith.constant 0 : index
    %945 = vector.load %arg23[%c0_294, %c0_295] : memref<2x8xi32, #tpu.memory_space<vmem>>, vector<2x8xi32>
    tpu.vector_store %arg23[%c0_294, %c0_295], %944 {strides = array<i32>} : memref<2x8xi32, #tpu.memory_space<vmem>>, vector<2x8xi32>,
    return
  }
}

</mosaic_0001>

<bundles_post_ra>
// kernel: kobert_crf_forward.1
= control target key start
LH: loop header
LB: loop body
LE: loop exit
PB: predicated region body
PF: predicated region fallthrough
CT: control target
= control target key end

     0   :  { %s8401_s0 = inlined_call_operand.vmem [shape: s32[16,2], index: 0, kind: input, shape index: {}]   ;;  %s8402_s1 = inlined_call_operand.vmem [shape: f32[2,1,8], index: 1, kind: input, shape index: {}]   ;;  %s8403_s2 = inlined_call_operand.vmem [shape: s32[2,8], index: 2, kind: input, shape index: {}]   ;;  %s8404_s3 = inlined_call_operand.vmem [shape: f32[80,32], index: 3, kind: input, shape index: {}]   ;;  %s8405_s4 = inlined_call_operand.vmem [shape: f32[1,32], index: 4, kind: input, shape index: {}]   ;;  %s8406_s5 = inlined_call_operand.vmem [shape: f32[1,32], index: 5, kind: input, shape index: {}]   ;;  %s8407_s6 = inlined_call_operand.vmem [shape: f32[2,32,96], index: 6, kind: input, shape index: {}]   ;;  %s8408_s7 = inlined_call_operand.vmem [shape: f32[2,1,96], index: 7, kind: input, shape index: {}]   ;;  %s8409_s8 = inlined_call_operand.vmem [shape: f32[2,32,32], index: 8, kind: input, shape index: {}]   ;;  %s8410_s9 = inlined_call_operand.vmem [shape: f32[2,1,32], index: 9, kind: input, shape index: {}]   ;;  %s8411_s10 = inlined_call_operand.vmem [shape: f32[2,32,128], index: 10, kind: input, shape index: {}]   ;;  %s8412_s11 = inlined_call_operand.vmem [shape: f32[2,1,128], index: 11, kind: input, shape index: {}]   ;;  %s8413_s12 = inlined_call_operand.vmem [shape: f32[2,128,32], index: 12, kind: input, shape index: {}]   ;;  %s8414_s13 = inlined_call_operand.vmem [shape: f32[2,1,32], index: 13, kind: input, shape index: {}]   ;;  %s8415_s14 = inlined_call_operand.vmem [shape: f32[2,1,32], index: 14, kind: input, shape index: {}]   ;;  %s8416_s15 = inlined_call_operand.vmem [shape: f32[2,1,32], index: 15, kind: input, shape index: {}]   ;;  %s8417_s16 = inlined_call_operand.vmem [shape: f32[2,1,32], index: 16, kind: input, shape index: {}]   ;;  %s8418_s17 = inlined_call_operand.vmem [shape: f32[2,1,32], index: 17, kind: input, shape index: {}]   ;;  %s8419_s18 = inlined_call_operand.vmem [shape: f32[32,8], index: 18, kind: input, shape index: {}]   ;;  %s8420_s19 = inlined_call_operand.vmem [shape: f32[1,8], index: 19, kind: input, shape index: {}]   ;;  %s8421_s20 = inlined_call_operand.vmem [shape: f32[8,8], index: 20, kind: input, shape index: {}]   ;;  %s8422_s21 = inlined_call_operand.vmem [shape: f32[1,8], index: 21, kind: input, shape index: {}]   ;;  %s8423_s22 = inlined_call_operand.hbm [shape: f32[1,1], index: 22, kind: output, shape index: {0}]   ;;  %s8424_s23 = inlined_call_operand.vmem [shape: s32[2,8], index: 23, kind: output, shape index: {1}]  }
   0x1   :  { %8462 = sst [smem:[#allocation9_spill]] %s8401_s0 }
   0x2   :  { %8463 = sst [smem:[#allocation10_spill]] %s8402_s1 }
   0x3   :  { %8464 = sst [smem:[#allocation11_spill]] %s8403_s2 }
   0x4   :  { %8465 = sst [smem:[#allocation12_spill]] %s8404_s3 }
   0x5   :  { %8466 = sst [smem:[#allocation13_spill]] %s8405_s4 }
   0x6   :  { %8467 = sst [smem:[#allocation14_spill]] %s8406_s5 }
   0x7   :  { %8468 = sst [smem:[#allocation15_spill]] %s8407_s6 }
   0x8   :  { %8469 = sst [smem:[#allocation16_spill]] %s8408_s7 }
   0x9   :  { %s8470_s24 = sld [smem:[#allocation9_spill]]  ;;  %s8471_s2 = sld [smem:[#allocation12_spill]]  ;;  %v8456_v3 = vmov 0  }
   0xa   :  { %6748 = vset.pattern.permute.xlu1 %v8456_v3  ;;  %6746 = vset.pattern.permute.xlu0 %v8456_v3 }
   0xf   :  { %v75_v0 = vld [vmem:[%s8470_s24 + $0x8] sm:$0xff]  ;;  %v74_v1 = vld [vmem:[%s8470_s24] sm:$0xff]  ;;  %v113_v5 = vld [vmem:[%s8471_s2 + $0x10] sm:$0xff] }
  0x10   :  { %v111_v2 = vld [vmem:[%s8471_s2] sm:$0xff]  ;;  %v112_v4 = vld [vmem:[%s8471_s2 + $0x8] sm:$0xff]  ;;  %v114_v6 = vld [vmem:[%s8471_s2 + $0x18] sm:$0xff]  ;;  %89 = vperm.xlu1 %6748, %v75_v0   ;;  %86 = vperm.xlu0 %6746, %v74_v1  }
  0x11   :  { %v6578_v7 = vpack.c.bf16 %v112_v4, %v111_v2  ;;  %v115_v8 = vld [vmem:[%s8471_s2 + $0x20] sm:$0xff]  ;;  %v116_v9 = vld [vmem:[%s8471_s2 + $0x28] sm:$0xff] }
  0x12   :  { %29 = vsyncpa [#allocation3], 0  ;;  %v6582_v10 = vpack.c.bf16 %v114_v6, %v113_v5  ;;  %v6940_v11 = vmov 1   ;;  %v6586_v12 = vpack.c.bf16 %v116_v9, %v115_v8  ;;  %v117_v13 = vld [vmem:[%s8471_s2 + $0x30] sm:$0xff]  ;;  %v118_v14 = vld [vmem:[%s8471_s2 + $0x38] sm:$0xff]  ;;  %v8454_v19 = vmov 0.0  }
  0x13   :  { %6579 = vmatprep.subr.bf16.mxu0 %v6578_v7  ;;  %v6590_v15 = vpack.c.bf16 %v118_v14, %v117_v13  ;;  %v119_v16 = vld [vmem:[%s8471_s2 + $0x40] sm:$0xff]  ;;  %v120_v17 = vld [vmem:[%s8471_s2 + $0x48] sm:$0xff]  ;;  %v76_v20 = vlaneseq  ;;  %vm121_vm9 = vcmask 654336   ;;  %vm205_vm11 = vcmask 261120   ;;  %s8472_s3 = sld [smem:[#allocation15_spill]]  ;;  %s8473_s6 = sld [smem:[#allocation13_spill]] }
  0x14   :  { %6581 = vmatpush3.bf16.msra.mxu0 %v6578_v7  ;;  %6749 = vset.pattern.permute.xlu1 %v6940_v11  ;;  %v6594_v18 = vpack.c.bf16 %v120_v17, %v119_v16  ;;  %s8474_s28 = sld [smem:[#allocation14_spill]]  ;;  %vm6942_vm12 = vmmov 0   ;;  %s8475_s0 = sld [smem:[#allocation16_spill]]  ;;  %vm345_vm13 = vcmask 64512   ;;  %vm1029_vm14 = vcmask 130048  }
  0x15   :  { %6747 = vset.pattern.permute.xlu0 %v6940_v11  ;;  %97 = vperm.xlu1 %6749, %v75_v0   ;;  %v7125_v21 = vshrl.u32 %v76_v20, 7  ;;  %v7129_v28 = vand.u32 127, %v76_v20  ;;  %s6943_s4 = smov 96   ;;  %s8448_s30 = smov 88   ;;  %vm1031_vm15 = vcmask 195584  }
  0x16   :  { %94 = vperm.xlu0 %6747, %v74_v1   ;;  %6583 = vmatprep.subr.bf16.mxu0 %v6582_v10  ;;  %s8446_s24 = smov 120   ;;  %s8440_s25 = smov 112  }
  0x17   :  { %v80_v22 = vadd.s32 8, %v7125_v21  ;;  %v81_v24 = vand.u32 7, %v7125_v21  ;;  %s8438_s5 = smov 104   ;;  %s8442_s1 = smov 80  }
  0x18   :  { %6585 = vmatpush3.bf16.msra.mxu0 %v6582_v10  ;;  %s8436_s26 = smov 72   ;;  %s8476_s7 = sld [smem:[#allocation10_spill]] }
  0x19   :  { %6587 = vmatprep.subr.bf16.mxu0 %v6586_v12  ;;  %6750 = vset.pattern.permute.xlu1 %v8456_v3  ;;  %v82_v23 = vand.u32 7, %v80_v22  ;;  %v83_v29 = vadd.s32 72, %v81_v24  ;;  %v249_v48 = vld [vmem:[%s8472_s3] sm:$0xff]  ;;  %v250_v49 = vld [vmem:[%s8472_s3 + $0x8] sm:$0xff]  ;;  %v251_v50 = vld [vmem:[%s8472_s3 + $0x10] sm:$0xff]  ;;  %s8430_s27 = smov 48  }
  0x1a   :  { %v6598_v51 = vpack.c.bf16 %v250_v49, %v249_v48  ;;  %v252_v52 = vld [vmem:[%s8472_s3 + $0x18] sm:$0xff]  ;;  %v5909_v61 = vld [vmem:[%s8473_s6] ss:$0 sm:$0xff]  ;;  %s8434_s6 = smov 56   ;;  %s8432_s2 = smov 40  }
  0x1b   :  { %v84_v27 = vadd.s32 72, %v82_v23  ;;  %vm103_vm5 = vcmp.eq.s32.totalorder %v7129_v28, %v83_v29  ;;  %v6602_v53 = vpack.c.bf16 %v252_v52, %v251_v50  ;;  %v5910_v1 = vld [vmem:[%s8474_s28] ss:$0 sm:$0xff]  ;;  %s8444_s28 = smov 64   ;;  %s6954_s29 = smov 8  }
  0x1c   :  { %6589 = vmatpush3.bf16.msra.mxu0 %v6586_v12  ;;  %6599 = vmatprep.subr.bf16.mxu1 %v6598_v51  ;;  %v5911_v7 = vld [vmem:[%s8475_s0] ss:$0 sm:$0xff] }
  0x1d   :  { %6591 = vmatprep.subr.bf16.mxu0 %v6590_v15  ;;  %vm104_vm0 = vcmp.eq.s32.totalorder %v7129_v28, %v84_v27  ;;  %6601 = vmatpush3.bf16.msra.mxu1 %v6598_v51 }
  0x1e   :  { %6603 = vmatprep.subr.bf16.mxu1 %v6602_v53  ;;  %v7206_v14 = vld [vmem:[%s8476_s7] ss:$0 sm:$0xff] }
  0x20   :  { %6593 = vmatpush3.bf16.msra.mxu0 %v6590_v15 }
  0x21   :  { %6595 = vmatprep.subr.bf16.mxu0 %v6594_v18  ;;  %6605 = vmatpush3.bf16.msra.mxu1 %v6602_v53 }
  0x22   :  { %6247 = vmatprep.subr.mxu1 %v8454_v19 }
  0x24   :  { %6597 = vmatpush3.bf16.msra.mxu0 %v6594_v18 }
  0x25   :  { %6262 = vmatprep.subr.mxu0 %v8454_v19 }
  0x8f   :  { %v87_v25 = vpop.permute.xlu0 %86  ;;  %v90_v26 = vpop.permute.xlu1 %89 }
  0x90   :  { %vm92_vm1 = vcmp.eq.s32.totalorder %v7129_v28, %v90_v26  ;;  %vm91_vm6 = vcmp.eq.s32.totalorder %v7129_v28, %v87_v25 }
  0x94   :  { %v98_v30 = vpop.permute.xlu1 %97 }
  0x95   :  { %v95_v31 = vpop.permute.xlu0 %94  ;;  %vm100_vm2 = vcmp.eq.s32.totalorder %v7129_v28, %v98_v30 }
  0x96   :  { %vm99_vm3 = vcmp.eq.s32.totalorder %v7129_v28, %v95_v31  ;;  %vm102_vm4 = vmor %vm92_vm1, %vm100_vm2  ;;  %vm5655_vm2 = vcmask 1041409   ;;  %vm4123_vm1 = vcmask 58368  }
  0x97   :  { %vm106_vm7 = vmor %vm102_vm4, %vm104_vm0  ;;  %vm4070_vm0 = vcmask 1040384  }
  0x98   :  { %vm101_vm8 = vmor %vm91_vm6, %vm99_vm3  ;;  %v5906_v32 = vsel %vm106_vm7, 1.0, %v8454_v19 }
  0x99   :  { %vm105_vm10 = vmor %vm101_vm8, %vm103_vm5 }
  0x9a   :  { %v5905_v33 = vsel %vm105_vm10, 1.0, %v8454_v19 }
  0x9b   :  { %6233 = vmatprep.mubr.msk.f32.mxu0 %vm121_vm9, %v5905_v33 }
  0x9c   :  { %6234 = vmatmul.mubr.msk.f32.vlgmr.msra.gmra.mrb[0].mxu0 %vm121_vm9, %v5906_v32 }
  0x9d   :  { %6264 = vmatprep.mubr.msk.f32.mxu0 %vm6942_vm12, %v8454_v19 }
 0x16f   :  { %v6235_v34 = vpop.f32.mrb[0].mxu0 }
 0x170   :  { %v194_v35 = vpop.f32.mrb[1].mxu0  ;;  %v209_v36 = vsel %vm205_vm11, %v6235_v34, 0.0 }
 0x171   :  { %210 = vadd.xlane.f32.xlu0 %v209_v36  ;;  %v206_v37 = vsel %vm205_vm11, %v194_v35, 0.0 }
 0x172   :  { %207 = vadd.xlane.f32.xlu1 %v206_v37 }
 0x1fe   :  { %v211_v38 = vpop.xlane.xlu0 %210 }
 0x1ff   :  { %v214_v39 = vmul.f32 0.03125, %v211_v38  ;;  %v208_v40 = vpop.xlane.xlu1 %207 }
 0x200   :  { %v213_v41 = vmul.f32 0.03125, %v208_v40 }
 0x201   :  { %v216_v42 = vsub.f32 %v6235_v34, %v214_v39 }
 0x202   :  { %v215_v43 = vsub.f32 %v194_v35, %v213_v41 }
 0x203   :  { %v218_v44 = vmul.f32 %v216_v42, %v216_v42 }
 0x204   :  { %v217_v45 = vmul.f32 %v215_v43, %v215_v43 }
 0x205   :  { %v222_v46 = vsel %vm205_vm11, %v218_v44, 0.0 }
 0x206   :  { %223 = vadd.xlane.f32.xlu1 %v222_v46  ;;  %v219_v47 = vsel %vm205_vm11, %v217_v45, 0.0 }
 0x207   :  { %220 = vadd.xlane.f32.xlu0 %v219_v47 }
 0x293   :  { %v224_v54 = vpop.xlane.xlu1 %223 }
 0x294   :  { %v226_v55 = vmul.f32 0.03125, %v224_v54  ;;  %v221_v56 = vpop.xlane.xlu0 %220 }
 0x295   :  { %v225_v57 = vmul.f32 0.03125, %v221_v56 }
 0x296   :  { %v228_v58 = vadd.f32 1e-12, %v226_v55 }
 0x297   :  { %v227_v59 = vadd.f32 1e-12, %v225_v57 }
 0x298   :  { %6757 = vrsqrt.f32 %v228_v58 }
 0x299   :  { %6759 = vrsqrt.f32 %v227_v59 }
 0x2a2   :  { %v6758_v60 = vpop.eup %6757 }
 0x2a3   :  { %v6760_v62 = vpop.eup %6759  ;;  %v232_v63 = vmul.f32 %v6758_v60, %v216_v42 }
 0x2a4   :  { %v231_v0 = vmul.f32 %v6760_v62, %v215_v43 }
 0x2a5   :  { %v240_v2 = vmul.f32 %v5909_v61, %v232_v63 }
 0x2a6   :  { %v239_v4 = vmul.f32 %v5909_v61, %v231_v0  ;;  %v7272_v61 = vld [vmem:[%s8476_s7 + $0x1] ss:$0 sm:$0xff] }
 0x2a7   :  { %v7164_v6 = vadd.f32 %v5910_v1, %v240_v2 }
 0x2a8   :  { %v7162_v5 = vadd.f32 %v5910_v1, %v239_v4 }
 0x2aa   :  { %6244 = vmatprep.mubr.msk.f32.mxu1 %vm205_vm11, %v7162_v5 }
 0x2ab   :  { %6245 = vmatmul.mubr.msk.f32.vlgmr.msra.gmra.mrb[0].mxu1 %vm205_vm11, %v7164_v6 }
 0x2ac   :  { %6249 = vmatprep.mubr.msk.f32.mxu1 %vm6942_vm12, %v8454_v19 }
 0x37e   :  { %v6246_v8 = vpop.f32.mrb[0].mxu1 }
 0x37f   :  { %v332_v9 = vpop.f32.mrb[1].mxu1  ;;  %v7189_v11 = vadd.f32 %v6246_v8, %v5911_v7 }
 0x380   :  { %v7177_v10 = vadd.f32 %v5911_v7, %v332_v9 }
 0x382   :  { %343 = vrot.lane.b32.xlu0 %v7177_v10, %s6943_s4 }
 0x386   :  { %517 = vrot.lane.b32.xlu0 %v7177_v10, %s8448_s30 }
 0x38a   :  { %515 = vrot.lane.b32.xlu0 %v7177_v10, %s8446_s24 }
 0x38e   :  { %682 = vrot.lane.b32.xlu0 %v7177_v10, %s8440_s25 }
 0x392   :  { %849 = vrot.lane.b32.xlu0 %v7177_v10, %s8438_s5 }
 0x396   :  { %1209 = vrot.lane.b32.xlu0 %v7189_v11, %s8448_s30  ;;  %s8478_s30 = smov 120  }
 0x39a   :  { %1376 = vrot.lane.b32.xlu0 %v7189_v11, %s8442_s1 }
 0x39e   :  { %1543 = vrot.lane.b32.xlu0 %v7189_v11, %s8436_s26 }
 0x3f4   :  { %v344_v12 = vpop.permute.xlu0 %343 }
 0x3f5   :  { %6248 = vmatpush3.xpose.msk.msra.mxu1 %vm345_vm13, %v344_v12 }
 0x3f6   :  { %6252 = vmatprep.subr.mxu1 %v8454_v19 }
 0x3f8   :  { %6250 = vmatmul.mubr.msk.f32.vlgmr.msra.gmra.mrb[2].mxu1 %vm345_vm13, %v7177_v10  ;;  %v518_v30 = vpop.permute.xlu0 %517 }
 0x3f9   :  { %6254 = vmatprep.mubr.msk.f32.mxu1 %vm6942_vm12, %v8454_v19 }
 0x3fc   :  { %v516_v31 = vpop.permute.xlu0 %515 }
 0x400   :  { %v683_v34 = vpop.permute.xlu0 %682 }
 0x404   :  { %v850_v36 = vpop.permute.xlu0 %849 }
 0x408   :  { %v1210_v38 = vpop.permute.xlu0 %1209 }
 0x40c   :  { %v1377_v40 = vpop.permute.xlu0 %1376 }
 0x410   :  { %v1544_v42 = vpop.permute.xlu0 %1543 }
 0x4cb   :  { %v416_v13 = vpop.f32.mrb[2].mxu1 }
 0x4cc   :  { %v420_v15 = vmul.f32 0.35355338, %v416_v13  ;;  %v6251_v16 = vpop.f32.mrb[3].mxu1 }
 0x4ce   :  { %v427_v17 = vadd.f32 %v7206_v14, %v420_v15 }
 0x4d0   :  { %v428_v18 = vsel %vm345_vm13, %v427_v17, -inf }
 0x4d1   :  { %429 = vmax.xlane.f32.xlu1 %v428_v18 }
 0x4e2   :  { %439 = vrot.lane.b32.xlu1 %v7177_v10, %s8444_s28 }
 0x4e6   :  { %684 = vrot.lane.b32.xlu1 %v7177_v10, %s8442_s1  ;;  %s8483_s1 = smov 72  }
 0x55e   :  { %v430_v20 = vpop.xlane.xlu1 %429 }
 0x55f   :  { %v431_v22 = vsub.f32 %v427_v17, %v430_v20 }
 0x561   :  { %v432_v23 = vmul.f32 1.442695, %v431_v22 }
 0x562   :  { %v440_v24 = vpop.permute.xlu1 %439 }
 0x563   :  { %6761 = vpow2.f32 %v432_v23  ;;  %6253 = vmatpush3.msra.mxu1 %v440_v24 }
 0x564   :  { %6257 = vmatprep.subr.mxu1 %v8454_v19 }
 0x566   :  { %v685_v27 = vpop.permute.xlu1 %684 }
 0x56d   :  { %v6762_v25 = vpop.eup %6761 }
 0x56e   :  { %v434_v26 = vsel %vm345_vm13, %v6762_v25, 0.0 }
 0x56f   :  { %435 = vadd.xlane.f32.xlu1 %v434_v26 }
 0x580   :  { %851 = vrot.lane.b32.xlu1 %v7177_v10, %s8436_s26  ;;  %s8484_s26 = smov 56  }
 0x584   :  { %1036 = vrot.lane.b32.xlu1 %v7189_v11, %s6943_s4 }
 0x588   :  { %1207 = vrot.lane.b32.xlu1 %v7189_v11, %s8446_s24  ;;  %s8480_s24 = smov 80  }
 0x58c   :  { %1374 = vrot.lane.b32.xlu1 %v7189_v11, %s8440_s25  ;;  %s8481_s25 = smov 112  }
 0x590   :  { %1541 = vrot.lane.b32.xlu1 %v7189_v11, %s8438_s5  ;;  %s8482_s5 = smov 104  }
 0x5fc   :  { %v436_v29 = vpop.xlane.xlu1 %435 }
 0x5fd   :  { %6763 = vrcp.f32 %v436_v29 }
 0x600   :  { %v852_v35 = vpop.permute.xlu1 %851 }
 0x604   :  { %v1037_v37 = vpop.permute.xlu1 %1036 }
 0x607   :  { %v6764_v32 = vpop.eup %6763 }
 0x608   :  { %v438_v33 = vmul.f32 %v6764_v32, %v6762_v25  ;;  %v1208_v39 = vpop.permute.xlu1 %1207 }
 0x60a   :  { %6255 = vmatmul.mubr.msk.f32.vlgmr.msra.gmra.mrb[4].mxu1 %vm345_vm13, %v438_v33 }
 0x60b   :  { %6258 = vmatpush3.xpose.msk.msra.mxu1 %vm345_vm13, %v518_v30  ;;  %6259 = vmatprep.mubr.msk.f32.mxu1 %vm6942_vm12, %v8454_v19 }
 0x60c   :  { %6267 = vmatprep.subr.mxu1 %v8454_v19  ;;  %v1375_v41 = vpop.permute.xlu1 %1374 }
 0x60e   :  { %6260 = vmatmul.mubr.msk.f32.vlgmr.msra.gmra.mrb[6].mxu1 %vm345_vm13, %v516_v31 }
 0x60f   :  { %6268 = vmatpush3.xpose.msk.msra.mxu1 %vm345_vm13, %v685_v27  ;;  %6269 = vmatprep.mubr.msk.f32.mxu1 %vm6942_vm12, %v8454_v19 }
 0x610   :  { %6277 = vmatprep.subr.mxu1 %v8454_v19  ;;  %v1542_v43 = vpop.permute.xlu1 %1541 }
 0x612   :  { %6270 = vmatmul.mubr.msk.f32.vlgmr.msra.gmra.mrb[8].mxu1 %vm345_vm13, %v683_v34 }
 0x613   :  { %6278 = vmatpush3.xpose.msk.msra.mxu1 %vm345_vm13, %v852_v35  ;;  %6279 = vmatprep.mubr.msk.f32.mxu1 %vm6942_vm12, %v8454_v19 }
 0x614   :  { %6287 = vmatprep.subr.mxu1 %v8454_v19 }
 0x616   :  { %6280 = vmatmul.mubr.msk.f32.vlgmr.msra.gmra.mrb[10].mxu1 %vm345_vm13, %v850_v36 }
 0x617   :  { %6288 = vmatpush3.xpose.msk.msra.mxu1 %vm345_vm13, %v1037_v37  ;;  %6289 = vmatprep.mubr.msk.f32.mxu1 %vm6942_vm12, %v8454_v19 }
 0x618   :  { %6297 = vmatprep.subr.mxu1 %v8454_v19 }
 0x61a   :  { %6290 = vmatmul.mubr.msk.f32.vlgmr.msra.gmra.mrb[12].mxu1 %vm345_vm13, %v7189_v11 }
 0x61b   :  { %6298 = vmatpush3.xpose.msk.msra.mxu1 %vm345_vm13, %v1210_v38  ;;  %6299 = vmatprep.mubr.msk.f32.mxu1 %vm6942_vm12, %v8454_v19 }
 0x61c   :  { %6307 = vmatprep.subr.mxu1 %v8454_v19 }
 0x61e   :  { %6300 = vmatmul.mubr.msk.f32.vlgmr.msra.gmra.mrb[14].mxu1 %vm345_vm13, %v1208_v39 }
 0x61f   :  { %6308 = vmatpush3.xpose.msk.msra.mxu1 %vm345_vm13, %v1377_v40  ;;  %6309 = vmatprep.mubr.msk.f32.mxu1 %vm6942_vm12, %v8454_v19 }
 0x620   :  { %6317 = vmatprep.subr.mxu1 %v8454_v19 }
 0x622   :  { %6310 = vmatmul.mubr.msk.f32.vlgmr.msra.gmra.mrb[16].mxu1 %vm345_vm13, %v1375_v41 }
 0x623   :  { %6318 = vmatpush3.xpose.msk.msra.mxu1 %vm345_vm13, %v1544_v42  ;;  %6319 = vmatprep.mubr.msk.f32.mxu1 %vm6942_vm12, %v8454_v19 }
 0x626   :  { %6320 = vmatmul.mubr.msk.f32.vlgmr.msra.gmra.mrb[18].mxu1 %vm345_vm13, %v1542_v43 }
 0x6dd   :  { %v7262_v44 = vpop.f32.mrb[4].mxu1 }
 0x6de   :  { %v6256_v45 = vpop.f32.mrb[5].mxu1 }
 0x6e1   :  { %v589_v46 = vpop.f32.mrb[6].mxu1 }
 0x6e2   :  { %v593_v47 = vmul.f32 0.35355338, %v589_v46  ;;  %v6261_v48 = vpop.f32.mrb[7].mxu1 }
 0x6e4   :  { %v594_v49 = vadd.f32 %v7206_v14, %v593_v47 }
 0x6e5   :  { %v756_v50 = vpop.f32.mrb[8].mxu1 }
 0x6e6   :  { %v760_v51 = vmul.f32 0.35355338, %v756_v50  ;;  %v6271_v52 = vpop.f32.mrb[9].mxu1  ;;  %v595_v53 = vsel %vm345_vm13, %v594_v49, -inf }
 0x6e7   :  { %596 = vmax.xlane.f32.xlu0 %v595_v53 }
 0x6e8   :  { %v761_v54 = vadd.f32 %v7206_v14, %v760_v51 }
 0x6e9   :  { %v923_v55 = vpop.f32.mrb[10].mxu1 }
 0x6ea   :  { %v927_v56 = vmul.f32 0.35355338, %v923_v55  ;;  %v6281_v57 = vpop.f32.mrb[11].mxu1  ;;  %v762_v58 = vsel %vm345_vm13, %v761_v54, -inf }
 0x6eb   :  { %763 = vmax.xlane.f32.xlu1 %v762_v58 }
 0x6ec   :  { %v928_v59 = vadd.f32 %v7206_v14, %v927_v56 }
 0x6ed   :  { %v1108_v60 = vpop.f32.mrb[12].mxu1 }
 0x6ee   :  { %v1112_v62 = vmul.f32 0.35355338, %v1108_v60  ;;  %v6291_v63 = vpop.f32.mrb[13].mxu1  ;;  %v929_v0 = vsel %vm345_vm13, %v928_v59, -inf }
 0x6ef   :  { %930 = vmax.xlane.f32.xlu0 %v929_v0 }
 0x6f0   :  { %v1119_v1 = vadd.f32 %v7272_v61, %v1112_v62 }
 0x6f1   :  { %v1281_v2 = vpop.f32.mrb[14].mxu1 }
 0x6f2   :  { %v1285_v4 = vmul.f32 0.35355338, %v1281_v2  ;;  %v6301_v7 = vpop.f32.mrb[15].mxu1  ;;  %v1120_v8 = vsel %vm345_vm13, %v1119_v1, -inf }
 0x6f3   :  { %1121 = vmax.xlane.f32.xlu0 %v1120_v8 }
 0x6f4   :  { %v7278_v9 = vadd.f32 %v7272_v61, %v1285_v4 }
 0x6f5   :  { %v1448_v12 = vpop.f32.mrb[16].mxu1 }
 0x6f6   :  { %v1452_v13 = vmul.f32 0.35355338, %v1448_v12  ;;  %v6311_v15 = vpop.f32.mrb[17].mxu1  ;;  %v1287_v16 = vsel %vm345_vm13, %v7278_v9, -inf }
 0x6f7   :  { %1288 = vmax.xlane.f32.xlu1 %v1287_v16 }
 0x6f8   :  { %v1453_v17 = vadd.f32 %v7272_v61, %v1452_v13 }
 0x6f9   :  { %v1615_v18 = vpop.f32.mrb[18].mxu1 }
 0x6fa   :  { %v1619_v20 = vmul.f32 0.35355338, %v1615_v18  ;;  %v6321_v22 = vpop.f32.mrb[19].mxu1  ;;  %v1454_v23 = vsel %vm345_vm13, %v1453_v17, -inf }
 0x6fb   :  { %1455 = vmax.xlane.f32.xlu0 %v1454_v23 }
 0x6fc   :  { %v1620_v24 = vadd.f32 %v7272_v61, %v1619_v20 }
 0x6fe   :  { %v1621_v25 = vsel %vm345_vm13, %v1620_v24, -inf }
 0x6ff   :  { %1622 = vmax.xlane.f32.xlu1 %v1621_v25 }
 0x710   :  { %606 = vrot.lane.b32.xlu1 %v7177_v10, %s8434_s6 }
 0x711   :  { %773 = vrot.lane.b32.xlu0 %v7177_v10, %s8430_s27 }
 0x714   :  { %940 = vrot.lane.b32.xlu1 %v7177_v10, %s8432_s2 }
 0x718   :  { %1131 = vrot.lane.b32.xlu1 %v7189_v11, %s8444_s28 }
 0x774   :  { %v597_v26 = vpop.xlane.xlu0 %596 }
 0x775   :  { %v598_v27 = vsub.f32 %v594_v49, %v597_v26 }
 0x777   :  { %v599_v29 = vmul.f32 1.442695, %v598_v27 }
 0x778   :  { %v764_v30 = vpop.xlane.xlu1 %763 }
 0x779   :  { %6765 = vpow2.f32 %v599_v29  ;;  %v765_v31 = vsub.f32 %v761_v54, %v764_v30 }
 0x77b   :  { %v766_v32 = vmul.f32 1.442695, %v765_v31 }
 0x77c   :  { %v931_v33 = vpop.xlane.xlu0 %930 }
 0x77d   :  { %6767 = vpow2.f32 %v766_v32  ;;  %v932_v34 = vsub.f32 %v928_v59, %v931_v33 }
 0x77f   :  { %v933_v35 = vmul.f32 1.442695, %v932_v34 }
 0x780   :  { %v1122_v36 = vpop.xlane.xlu0 %1121 }
 0x781   :  { %6769 = vpow2.f32 %v933_v35  ;;  %v1123_v37 = vsub.f32 %v1119_v1, %v1122_v36 }
 0x783   :  { %v6766_v38 = vpop.eup %6765  ;;  %v1124_v39 = vmul.f32 1.442695, %v1123_v37 }
 0x784   :  { %v601_v10 = vsel %vm345_vm13, %v6766_v38, 0.0  ;;  %v1289_v41 = vpop.xlane.xlu1 %1288 }
 0x785   :  { %6771 = vpow2.f32 %v1124_v39  ;;  %602 = vadd.xlane.f32.xlu0 %v601_v10  ;;  %v1290_v55 = vsub.f32 %v7278_v9, %v1289_v41 }
 0x787   :  { %v6768_v40 = vpop.eup %6767  ;;  %v1291_v56 = vmul.f32 1.442695, %v1290_v55 }
 0x788   :  { %v1456_v42 = vpop.xlane.xlu0 %1455  ;;  %v768_v43 = vsel %vm345_vm13, %v6768_v40, 0.0 }
 0x789   :  { %v1457_v45 = vsub.f32 %v1453_v17, %v1456_v42  ;;  %769 = vadd.xlane.f32.xlu1 %v768_v43  ;;  %v1723_v42 = vld [vmem:[%s8409_s8] sm:$0xff]  ;;  %v1724_v43 = vld [vmem:[%s8409_s8 + $0x8] sm:$0xff] }
 0x78b   :  { %v6770_v46 = vpop.eup %6769  ;;  %v1458_v47 = vmul.f32 1.442695, %v1457_v45  ;;  %v6606_v45 = vpack.c.bf16 %v1724_v43, %v1723_v42 }
 0x78c   :  { %v1623_v48 = vpop.xlane.xlu1 %1622  ;;  %v935_v49 = vsel %vm345_vm13, %v6770_v46, 0.0  ;;  %v774_v1 = vpop.permute.xlu0 %773 }
 0x78d   :  { %6773 = vpow2.f32 %v1458_v47  ;;  %936 = vadd.xlane.f32.xlu0 %v935_v49  ;;  %v1624_v57 = vsub.f32 %v1620_v24, %v1623_v48  ;;  %6607 = vmatprep.subr.bf16.mxu1 %v6606_v45  ;;  %v1726_v47 = vld [vmem:[%s8409_s8 + $0x18] sm:$0xff] }
 0x78e   :  { %6775 = vpow2.f32 %v1291_v56  ;;  %6609 = vmatpush3.bf16.msra.mxu1 %v6606_v45  ;;  %v5945_v45 = vld [vmem:[%s8416_s15] ss:$0 sm:$0xff] }
 0x78f   :  { %v6772_v50 = vpop.eup %6771  ;;  %v1625_v58 = vmul.f32 1.442695, %v1624_v57 }
 0x790   :  { %v607_v51 = vpop.permute.xlu1 %606  ;;  %v1126_v52 = vsel %vm345_vm13, %v6772_v50, 0.0 }
 0x791   :  { %6263 = vmatpush3.msra.mxu0 %v607_v51  ;;  %1127 = vadd.xlane.f32.xlu1 %v1126_v52  ;;  %6777 = vpow2.f32 %v1625_v58 }
 0x792   :  { %6272 = vmatprep.subr.mxu0 %v8454_v19 }
 0x794   :  { %v941_v0 = vpop.permute.xlu1 %940 }
 0x797   :  { %v7299_v53 = vpop.eup %6773 }
 0x798   :  { %v1460_v54 = vsel %vm345_vm13, %v7299_v53, 0.0  ;;  %v6776_v59 = vpop.eup %6775  ;;  %v1132_v2 = vpop.permute.xlu1 %1131 }
 0x799   :  { %1461 = vadd.xlane.f32.xlu1 %v1460_v54  ;;  %v1293_v60 = vsel %vm345_vm13, %v6776_v59, 0.0 }
 0x79b   :  { %v6778_v62 = vpop.eup %6777 }
 0x79c   :  { %v1627_v63 = vsel %vm345_vm13, %v6778_v62, 0.0 }
 0x7a3   :  { %1298 = vrot.lane.b32.xlu0 %v7189_v11, %s8434_s6  ;;  %s8477_s6 = smov 88  }
 0x7aa   :  { %1465 = vrot.lane.b32.xlu1 %v7189_v11, %s8430_s27  ;;  %s8452_s27 = smov 16  }
 0x7c2   :  { %1294 = vadd.xlane.f32.xlu0 %v1293_v60 }
 0x7c6   :  { %1628 = vadd.xlane.f32.xlu0 %v1627_v63 }
 0x7dc   :  { %1632 = vrot.lane.b32.xlu0 %v7189_v11, %s8432_s2  ;;  %s8450_s2 = smov 24  }
 0x812   :  { %v603_v4 = vpop.xlane.xlu0 %602 }
 0x813   :  { %6779 = vrcp.f32 %v603_v4 }
 0x816   :  { %v770_v7 = vpop.xlane.xlu1 %769 }
 0x817   :  { %6781 = vrcp.f32 %v770_v7 }
 0x81a   :  { %v937_v8 = vpop.xlane.xlu0 %936 }
 0x81b   :  { %6783 = vrcp.f32 %v937_v8 }
 0x81d   :  { %v6780_v9 = vpop.eup %6779 }
 0x81e   :  { %v1128_v12 = vpop.xlane.xlu1 %1127  ;;  %v605_v13 = vmul.f32 %v6780_v9, %v6766_v38  ;;  %v1299_v22 = vpop.permute.xlu0 %1298 }
 0x81f   :  { %6785 = vrcp.f32 %v1128_v12 }
 0x820   :  { %6265 = vmatmul.mubr.msk.f32.vlgmr.msra.gmra.mrb[2].mxu0 %vm345_vm13, %v605_v13 }
 0x821   :  { %v6782_v15 = vpop.eup %6781  ;;  %6273 = vmatpush3.msra.mxu0 %v774_v1  ;;  %6274 = vmatprep.mubr.msk.f32.mxu0 %vm6942_vm12, %v8454_v19 }
 0x822   :  { %6282 = vmatprep.subr.mxu0 %v8454_v19  ;;  %v772_v11 = vmul.f32 %v6782_v15, %v6768_v40 }
 0x824   :  { %6275 = vmatmul.mubr.msk.f32.vlgmr.msra.gmra.mrb[4].mxu0 %vm345_vm13, %v772_v11 }
 0x825   :  { %v6784_v16 = vpop.eup %6783  ;;  %6283 = vmatpush3.msra.mxu0 %v941_v0  ;;  %6284 = vmatprep.mubr.msk.f32.mxu0 %vm6942_vm12, %v8454_v19 }
 0x826   :  { %6292 = vmatprep.subr.mxu0 %v8454_v19  ;;  %v939_v17 = vmul.f32 %v6784_v16, %v6770_v46  ;;  %v1462_v23 = vpop.xlane.xlu1 %1461  ;;  %v1725_v46 = vld [vmem:[%s8409_s8 + $0x10] sm:$0xff] }
 0x827   :  { %v6610_v48 = vpack.c.bf16 %v1726_v47, %v1725_v46 }
 0x828   :  { %6285 = vmatmul.mubr.msk.f32.vlgmr.msra.gmra.mrb[6].mxu0 %vm345_vm13, %v939_v17 }
 0x829   :  { %v6786_v18 = vpop.eup %6785  ;;  %6293 = vmatpush3.msra.mxu0 %v1132_v2  ;;  %6294 = vmatprep.mubr.msk.f32.mxu0 %vm6942_vm12, %v8454_v19 }
 0x82a   :  { %6302 = vmatprep.subr.mxu0 %v8454_v19  ;;  %v1130_v20 = vmul.f32 %v6786_v18, %v6772_v50  ;;  %v1466_v30 = vpop.permute.xlu1 %1465  ;;  %6611 = vmatprep.subr.bf16.mxu1 %v6610_v48 }
 0x82b   :  { %6613 = vmatpush3.bf16.msra.mxu1 %v6610_v48 }
 0x82c   :  { %6295 = vmatmul.mubr.msk.f32.vlgmr.msra.gmra.mrb[8].mxu0 %vm345_vm13, %v1130_v20 }
 0x82d   :  { %6303 = vmatpush3.msra.mxu0 %v1299_v22  ;;  %6304 = vmatprep.mubr.msk.f32.mxu0 %vm6942_vm12, %v8454_v19 }
 0x82e   :  { %6312 = vmatprep.subr.mxu0 %v8454_v19 }
 0x84f   :  { %v1295_v24 = vpop.xlane.xlu0 %1294 }
 0x850   :  { %6787 = vrcp.f32 %v1295_v24 }
 0x851   :  { %6789 = vrcp.f32 %v1462_v23 }
 0x853   :  { %v1629_v25 = vpop.xlane.xlu0 %1628 }
 0x854   :  { %6791 = vrcp.f32 %v1629_v25 }
 0x857   :  { %v1633_v33 = vpop.permute.xlu0 %1632 }
 0x85a   :  { %v6788_v26 = vpop.eup %6787 }
 0x85b   :  { %v1297_v27 = vmul.f32 %v6788_v26, %v6776_v59  ;;  %v6790_v29 = vpop.eup %6789 }
 0x85c   :  { %v1464_v31 = vmul.f32 %v6790_v29, %v7299_v53  ;;  %v1862_v29 = vld [vmem:[%s8411_s10 + $0x8] sm:$0xff] }
 0x85d   :  { %6305 = vmatmul.mubr.msk.f32.vlgmr.msra.gmra.mrb[10].mxu0 %vm345_vm13, %v1297_v27 }
 0x85e   :  { %6313 = vmatpush3.msra.mxu0 %v1466_v30  ;;  %6314 = vmatprep.mubr.msk.f32.mxu0 %vm6942_vm12, %v8454_v19  ;;  %v6792_v32 = vpop.eup %6791  ;;  %v1863_v30 = vld [vmem:[%s8411_s10 + $0x10] sm:$0xff] }
 0x85f   :  { %6322 = vmatprep.subr.mxu0 %v8454_v19  ;;  %v1631_v34 = vmul.f32 %v6792_v32, %v6778_v62  ;;  %v1864_v32 = vld [vmem:[%s8411_s10 + $0x18] sm:$0xff] }
 0x861   :  { %6315 = vmatmul.mubr.msk.f32.vlgmr.msra.gmra.mrb[12].mxu0 %vm345_vm13, %v1464_v31 }
 0x862   :  { %6323 = vmatpush3.msra.mxu0 %v1633_v33  ;;  %6324 = vmatprep.mubr.msk.f32.mxu0 %vm6942_vm12, %v8454_v19  ;;  %v6618_v33 = vpack.c.bf16 %v1864_v32, %v1863_v30 }
 0x865   :  { %6325 = vmatmul.mubr.msk.f32.vlgmr.msra.gmra.mrb[14].mxu0 %vm345_vm13, %v1631_v34 }
 0x8f3   :  { %v678_v35 = vpop.f32.mrb[2].mxu0 }
 0x8f4   :  { %1017 = vrot.lane.b32.xlu1 %v678_v35, %s6954_s29  ;;  %v6266_v36 = vpop.f32.mrb[3].mxu0 }
 0x8f7   :  { %v845_v37 = vpop.f32.mrb[4].mxu0 }
 0x8f8   :  { %1021 = vrot.lane.b32.xlu0 %v845_v37, %s8452_s27  ;;  %v6276_v38 = vpop.f32.mrb[5].mxu0 }
 0x8fb   :  { %v1012_v39 = vpop.f32.mrb[6].mxu0 }
 0x8fc   :  { %1025 = vrot.lane.b32.xlu0 %v1012_v39, %s8450_s2  ;;  %v6286_v10 = vpop.f32.mrb[7].mxu0 }
 0x8ff   :  { %v1203_v40 = vpop.f32.mrb[8].mxu0 }
 0x900   :  { %v6296_v41 = vpop.f32.mrb[9].mxu0 }
 0x930   :  { %v1370_v49 = vpop.f32.mrb[10].mxu0 }
 0x931   :  { %1709 = vrot.lane.b32.xlu1 %v1370_v49, %s6954_s29  ;;  %v6306_v50 = vpop.f32.mrb[11].mxu0 }
 0x932   :  { %v1971_v50 = vld [vmem:[%s8413_s12] sm:$0xff] }
 0x934   :  { %v1537_v51 = vpop.f32.mrb[12].mxu0 }
 0x935   :  { %1713 = vrot.lane.b32.xlu1 %v1537_v51, %s8452_s27  ;;  %v6316_v52 = vpop.f32.mrb[13].mxu0  ;;  %v1972_v51 = vld [vmem:[%s8413_s12 + $0x8] sm:$0xff]  ;;  %s8486_s27 = smov 48  }
 0x936   :  { %v6622_v52 = vpack.c.bf16 %v1972_v51, %v1971_v50 }
 0x938   :  { %v1704_v53 = vpop.f32.mrb[14].mxu0  ;;  %6623 = vmatprep.subr.bf16.mxu1 %v6622_v52 }
 0x939   :  { %1717 = vrot.lane.b32.xlu0 %v1704_v53, %s8450_s2  ;;  %v6326_v54 = vpop.f32.mrb[15].mxu0  ;;  %v1973_v53 = vld [vmem:[%s8413_s12 + $0x10] sm:$0xff]  ;;  %s8494_s2 = sld [smem:[#allocation11_spill]] }
 0x93a   :  { %v1974_v54 = vld [vmem:[%s8413_s12 + $0x18] sm:$0xff] }
 0x966   :  { %v1018_v55 = vpop.permute.xlu1 %1017 }
 0x967   :  { %v1028_v57 = vsel %vm345_vm13, %v7262_v44, %v1018_v55  ;;  %v5941_v44 = vld [vmem:[%s8410_s9] ss:$0 sm:$0xff]  ;;  %v6626_v55 = vpack.c.bf16 %v1974_v54, %v1973_v53 }
 0x96a   :  { %v1022_v56 = vpop.permute.xlu0 %1021 }
 0x96b   :  { %v1030_v58 = vsel %vm1029_vm14, %v1028_v57, %v1022_v56  ;;  %v1975_v56 = vld [vmem:[%s8413_s12 + $0x20] sm:$0xff]  ;;  %v1976_v57 = vld [vmem:[%s8413_s12 + $0x28] sm:$0xff] }
 0x96e   :  { %v1026_v59 = vpop.permute.xlu0 %1025 }
 0x96f   :  { %v1032_v60 = vsel %vm1031_vm15, %v1030_v58, %v1026_v59  ;;  %v6630_v58 = vpack.c.bf16 %v1976_v57, %v1975_v56  ;;  %v1977_v59 = vld [vmem:[%s8413_s12 + $0x30] sm:$0xff] }
 0x970   :  { %6335 = vmatprep.mubr.msk.f32.mxu1 %vm205_vm11, %v1032_v60  ;;  %v1978_v60 = vld [vmem:[%s8413_s12 + $0x38] sm:$0xff] }
 0x9a3   :  { %v1710_v62 = vpop.permute.xlu1 %1709 }
 0x9a4   :  { %v1720_v0 = vsel %vm345_vm13, %v1203_v40, %v1710_v62  ;;  %v5944_v40 = vld [vmem:[%s8415_s14] ss:$0 sm:$0xff]  ;;  %v6634_v62 = vpack.c.bf16 %v1978_v60, %v1977_v59  ;;  %v5953_v59 = vld [vmem:[%s8472_s3 + $0x28] sm:$0xff]  ;;  %v5954_v60 = vld [vmem:[%s8472_s3 + $0x30] sm:$0xff] }
 0x9a7   :  { %v1714_v63 = vpop.permute.xlu1 %1713 }
 0x9a8   :  { %v1721_v1 = vsel %vm1029_vm14, %v1720_v0, %v1714_v63  ;;  %v1979_v63 = vld [vmem:[%s8413_s12 + $0x40] sm:$0xff]  ;;  %v1980_v0 = vld [vmem:[%s8413_s12 + $0x48] sm:$0xff] }
 0x9ab   :  { %v1718_v2 = vpop.permute.xlu0 %1717 }
 0x9ac   :  { %v1722_v4 = vsel %vm1031_vm15, %v1721_v1, %v1718_v2  ;;  %v1981_v1 = vld [vmem:[%s8413_s12 + $0x50] sm:$0xff]  ;;  %v6638_v2 = vpack.c.bf16 %v1980_v0, %v1979_v63  ;;  %v5955_v63 = vld [vmem:[%s8472_s3 + $0x38] sm:$0xff] }
 0x9ad   :  { %6336 = vmatmul.mubr.msk.f32.vlgmr.msra.gmra.mrb[20].mxu1 %vm205_vm11, %v1722_v4  ;;  %v1982_v4 = vld [vmem:[%s8413_s12 + $0x58] sm:$0xff]  ;;  %v6658_v0 = vpack.c.bf16 %v5955_v63, %v5954_v60 }
 0x9ae   :  { %6625 = vmatpush3.bf16.msra.mxu1 %v6622_v52 }
 0x9af   :  { %6627 = vmatprep.subr.bf16.mxu1 %v6626_v55 }
 0x9b2   :  { %6629 = vmatpush3.bf16.msra.mxu1 %v6626_v55 }
 0x9b3   :  { %6631 = vmatprep.subr.bf16.mxu1 %v6630_v58 }
 0x9b6   :  { %6633 = vmatpush3.bf16.msra.mxu1 %v6630_v58 }
 0x9b7   :  { %6635 = vmatprep.subr.bf16.mxu1 %v6634_v62 }
 0x9ba   :  { %6637 = vmatpush3.bf16.msra.mxu1 %v6634_v62 }
 0x9bb   :  { %6639 = vmatprep.subr.bf16.mxu1 %v6638_v2 }
 0x9be   :  { %6641 = vmatpush3.bf16.msra.mxu1 %v6638_v2 }
 0xa80   :  { %v6337_v7 = vpop.f32.mrb[20].mxu1 }
 0xa81   :  { %v1812_v8 = vadd.f32 %v6337_v7, %v5941_v44  ;;  %v1806_v9 = vpop.f32.mrb[21].mxu1  ;;  %v1983_v7 = vld [vmem:[%s8413_s12 + $0x60] sm:$0xff] }
 0xa82   :  { %v1807_v12 = vadd.f32 %v5941_v44, %v1806_v9  ;;  %v6642_v44 = vpack.c.bf16 %v1982_v4, %v1981_v1 }
 0xa83   :  { %v1816_v13 = vadd.f32 %v1812_v8, %v7164_v6  ;;  %v1984_v8 = vld [vmem:[%s8413_s12 + $0x68] sm:$0xff] }
 0xa84   :  { %v1815_v15 = vadd.f32 %v1807_v12, %v7162_v5  ;;  %v1861_v5 = vld [vmem:[%s8411_s10] sm:$0xff]  ;;  %6643 = vmatprep.subr.bf16.mxu1 %v6642_v44  ;;  %v6646_v9 = vpack.c.bf16 %v1984_v8, %v1983_v7  ;;  %v1985_v12 = vld [vmem:[%s8413_s12 + $0x70] sm:$0xff] }
 0xa85   :  { %v1822_v11 = vsel %vm205_vm11, %v1816_v13, 0.0  ;;  %v6614_v31 = vpack.c.bf16 %v1862_v29, %v1861_v5  ;;  %6645 = vmatpush3.bf16.msra.mxu1 %v6642_v44 }
 0xa86   :  { %1823 = vadd.xlane.f32.xlu0 %v1822_v11  ;;  %v1819_v16 = vsel %vm205_vm11, %v1815_v15, 0.0  ;;  %6647 = vmatprep.subr.bf16.mxu1 %v6646_v9  ;;  %v5946_v11 = vld [vmem:[%s8412_s11] ss:$0 sm:$0xff] }
 0xa87   :  { %1820 = vadd.xlane.f32.xlu1 %v1819_v16  ;;  %6615 = vmatprep.subr.bf16.mxu0 %v6614_v31 }
 0xa88   :  { %6617 = vmatpush3.bf16.msra.mxu0 %v6614_v31 }
 0xa89   :  { %6619 = vmatprep.subr.bf16.mxu0 %v6618_v33  ;;  %6649 = vmatpush3.bf16.msra.mxu1 %v6646_v9 }
 0xa8c   :  { %6621 = vmatpush3.bf16.msra.mxu0 %v6618_v33 }
 0xb13   :  { %v1824_v17 = vpop.xlane.xlu0 %1823 }
 0xb14   :  { %v1826_v18 = vmul.f32 0.03125, %v1824_v17  ;;  %v1821_v20 = vpop.xlane.xlu1 %1820 }
 0xb15   :  { %v1825_v22 = vmul.f32 0.03125, %v1821_v20 }
 0xb16   :  { %v1828_v23 = vsub.f32 %v1816_v13, %v1826_v18  ;;  %v1986_v13 = vld [vmem:[%s8413_s12 + $0x78] sm:$0xff] }
 0xb17   :  { %v1827_v24 = vsub.f32 %v1815_v15, %v1825_v22  ;;  %v6650_v15 = vpack.c.bf16 %v1986_v13, %v1985_v12  ;;  %v5950_v12 = vld [vmem:[%s8417_s16] ss:$0 sm:$0xff] }
 0xb18   :  { %v1830_v25 = vmul.f32 %v1828_v23, %v1828_v23 }
 0xb19   :  { %v1829_v26 = vmul.f32 %v1827_v24, %v1827_v24  ;;  %6651 = vmatprep.subr.bf16.mxu1 %v6650_v15 }
 0xb1a   :  { %v1834_v27 = vsel %vm205_vm11, %v1830_v25, 0.0  ;;  %6653 = vmatpush3.bf16.msra.mxu1 %v6650_v15 }
 0xb1b   :  { %1835 = vadd.xlane.f32.xlu1 %v1834_v27  ;;  %v1831_v6 = vsel %vm205_vm11, %v1829_v26, 0.0  ;;  %6425 = vmatprep.subr.mxu1 %v8454_v19 }
 0xb1c   :  { %1832 = vadd.xlane.f32.xlu0 %v1831_v6 }
 0xba8   :  { %v1836_v34 = vpop.xlane.xlu1 %1835 }
 0xba9   :  { %v1838_v35 = vmul.f32 0.03125, %v1836_v34  ;;  %v1833_v36 = vpop.xlane.xlu0 %1832 }
 0xbaa   :  { %v1837_v37 = vmul.f32 0.03125, %v1833_v36 }
 0xbab   :  { %v1840_v38 = vadd.f32 1e-12, %v1838_v35 }
 0xbac   :  { %v1839_v39 = vadd.f32 1e-12, %v1837_v37 }
 0xbad   :  { %6793 = vrsqrt.f32 %v1840_v38 }
 0xbae   :  { %6795 = vrsqrt.f32 %v1839_v39  ;;  %v5949_v39 = vld [vmem:[%s8414_s13] ss:$0 sm:$0xff] }
 0xbb7   :  { %v6794_v10 = vpop.eup %6793 }
 0xbb8   :  { %v6796_v41 = vpop.eup %6795  ;;  %v1844_v42 = vmul.f32 %v6794_v10, %v1828_v23 }
 0xbb9   :  { %v1843_v43 = vmul.f32 %v6796_v41, %v1827_v24 }
 0xbba   :  { %v1852_v46 = vmul.f32 %v5944_v40, %v1844_v42 }
 0xbbb   :  { %v1851_v47 = vmul.f32 %v5944_v40, %v1843_v43 }
 0xbbc   :  { %v7393_v49 = vadd.f32 %v5945_v45, %v1852_v46 }
 0xbbd   :  { %v7391_v48 = vadd.f32 %v5945_v45, %v1851_v47 }
 0xbbf   :  { %6346 = vmatprep.mubr.msk.f32.mxu0 %vm205_vm11, %v7391_v48 }
 0xbc0   :  { %6347 = vmatmul.mubr.msk.f32.vlgmr.msra.gmra.mrb[16].mxu0 %vm205_vm11, %v7393_v49 }
 0xc93   :  { %v6348_v16 = vpop.f32.mrb[16].mxu0 }
 0xc94   :  { %v1950_v17 = vadd.f32 %v6348_v16, %v5946_v11  ;;  %v1944_v18 = vpop.f32.mrb[17].mxu0  ;;  %v5951_v16 = vld [vmem:[%s8418_s17] ss:$0 sm:$0xff] }
 0xc95   :  { %v1945_v20 = vadd.f32 %v5946_v11, %v1944_v18 }
 0xc96   :  { %v1954_v22 = vmul.f32 %v1950_v17, %v1950_v17 }
 0xc97   :  { %v1953_v23 = vmul.f32 %v1945_v20, %v1945_v20 }
 0xc98   :  { %v1956_v24 = vmul.f32 %v1954_v22, %v1950_v17 }
 0xc99   :  { %v1955_v25 = vmul.f32 %v1953_v23, %v1945_v20  ;;  %v5957_v23 = vld [vmem:[%s8475_s0 + $0x1] ss:$0 sm:$0xff]  ;;  %s8479_s0 = smov 64  }
 0xc9a   :  { %v1958_v26 = vmul.f32 0.044715, %v1956_v24 }
 0xc9b   :  { %v1957_v27 = vmul.f32 0.044715, %v1955_v25 }
 0xc9c   :  { %v1960_v6 = vadd.f32 %v1958_v26, %v1950_v17 }
 0xc9d   :  { %v1959_v5 = vadd.f32 %v1957_v27, %v1945_v20 }
 0xc9e   :  { %v1962_v29 = vmul.f32 0.7978846, %v1960_v6 }
 0xc9f   :  { %v1961_v30 = vmul.f32 0.7978846, %v1959_v5 }
 0xca0   :  { %6797 = vtanh.f32 %v1962_v29 }
 0xca1   :  { %6799 = vtanh.f32 %v1961_v30 }
 0xcaa   :  { %v6798_v31 = vpop.eup %6797 }
 0xcab   :  { %v6800_v32 = vpop.eup %6799  ;;  %v1966_v33 = vadd.f32 1.0, %v6798_v31 }
 0xcac   :  { %v1965_v34 = vadd.f32 1.0, %v6800_v32 }
 0xcad   :  { %v1968_v35 = vmul.f32 0.5, %v1966_v33 }
 0xcae   :  { %v1967_v36 = vmul.f32 0.5, %v1965_v34 }
 0xcaf   :  { %v1970_v38 = vmul.f32 %v1968_v35, %v1950_v17 }
 0xcb0   :  { %v1969_v37 = vmul.f32 %v1967_v36, %v1945_v20 }
 0xcb2   :  { %6381 = vmatprep.mubr.f32.mxu1 %v1969_v37 }
 0xcb3   :  { %6382 = vmatmul.mubr.f32.vlgmr.msra.gmra.mrb[22].mxu1 %v1970_v38 }
 0xcb4   :  { %6427 = vmatprep.mubr.msk.f32.mxu1 %vm6942_vm12, %v8454_v19 }
 0xd86   :  { %v6383_v10 = vpop.f32.mrb[22].mxu1 }
 0xd87   :  { %v2066_v40 = vadd.f32 %v6383_v10, %v5949_v39  ;;  %v2060_v41 = vpop.f32.mrb[23].mxu1 }
 0xd88   :  { %v2061_v42 = vadd.f32 %v5949_v39, %v2060_v41 }
 0xd89   :  { %v2070_v43 = vadd.f32 %v2066_v40, %v7393_v49 }
 0xd8a   :  { %v2069_v45 = vadd.f32 %v2061_v42, %v7391_v48  ;;  %v5952_v48 = vld [vmem:[%s8472_s3 + $0x20] sm:$0xff]  ;;  %s8488_s3 = smov 24  }
 0xd8b   :  { %v2076_v46 = vsel %vm205_vm11, %v2070_v43, 0.0  ;;  %v6654_v62 = vpack.c.bf16 %v5953_v59, %v5952_v48 }
 0xd8c   :  { %2077 = vadd.xlane.f32.xlu1 %v2076_v46  ;;  %v2073_v47 = vsel %vm205_vm11, %v2069_v45, 0.0 }
 0xd8d   :  { %2074 = vadd.xlane.f32.xlu0 %v2073_v47  ;;  %6655 = vmatprep.subr.bf16.mxu0 %v6654_v62 }
 0xd8e   :  { %6657 = vmatpush3.bf16.msra.mxu0 %v6654_v62 }
 0xd8f   :  { %6659 = vmatprep.subr.bf16.mxu0 %v6658_v0 }
 0xd92   :  { %6661 = vmatpush3.bf16.msra.mxu0 %v6658_v0 }
 0xd93   :  { %6395 = vmatprep.subr.mxu0 %v8454_v19 }
 0xe19   :  { %v2078_v50 = vpop.xlane.xlu1 %2077 }
 0xe1a   :  { %v2080_v51 = vmul.f32 0.03125, %v2078_v50  ;;  %v2075_v52 = vpop.xlane.xlu0 %2074 }
 0xe1b   :  { %v2079_v53 = vmul.f32 0.03125, %v2075_v52 }
 0xe1c   :  { %v2082_v54 = vsub.f32 %v2070_v43, %v2080_v51 }
 0xe1d   :  { %v2081_v55 = vsub.f32 %v2069_v45, %v2079_v53 }
 0xe1e   :  { %v2084_v56 = vmul.f32 %v2082_v54, %v2082_v54 }
 0xe1f   :  { %v2083_v57 = vmul.f32 %v2081_v55, %v2081_v55 }
 0xe20   :  { %v2088_v58 = vsel %vm205_vm11, %v2084_v56, 0.0 }
 0xe21   :  { %2089 = vadd.xlane.f32.xlu1 %v2088_v58  ;;  %v2085_v49 = vsel %vm205_vm11, %v2083_v57, 0.0 }
 0xe22   :  { %2086 = vadd.xlane.f32.xlu0 %v2085_v49 }
 0xeae   :  { %v2090_v1 = vpop.xlane.xlu1 %2089 }
 0xeaf   :  { %v2092_v2 = vmul.f32 0.03125, %v2090_v1  ;;  %v2087_v4 = vpop.xlane.xlu0 %2086 }
 0xeb0   :  { %v2091_v44 = vmul.f32 0.03125, %v2087_v4 }
 0xeb1   :  { %v2094_v7 = vadd.f32 1e-12, %v2092_v2 }
 0xeb2   :  { %v2093_v8 = vadd.f32 1e-12, %v2091_v44 }
 0xeb3   :  { %6801 = vrsqrt.f32 %v2094_v7 }
 0xeb4   :  { %6803 = vrsqrt.f32 %v2093_v8 }
 0xebd   :  { %v6802_v9 = vpop.eup %6801 }
 0xebe   :  { %v6804_v13 = vpop.eup %6803  ;;  %v2098_v15 = vmul.f32 %v6802_v9, %v2082_v54 }
 0xebf   :  { %v2097_v11 = vmul.f32 %v6804_v13, %v2081_v55 }
 0xec0   :  { %v2106_v17 = vmul.f32 %v5950_v12, %v2098_v15 }
 0xec1   :  { %v2105_v18 = vmul.f32 %v5950_v12, %v2097_v11 }
 0xec2   :  { %v7483_v22 = vadd.f32 %v5951_v16, %v2106_v17 }
 0xec3   :  { %v7481_v20 = vadd.f32 %v5951_v16, %v2105_v18  ;;  %v6911_v16 = vld [vmem:[%s8476_s7] ss:$0 sm:$0xff] }
 0xec5   :  { %6392 = vmatprep.mubr.msk.f32.mxu0 %vm205_vm11, %v7481_v20 }
 0xec6   :  { %6393 = vmatmul.mubr.msk.f32.vlgmr.msra.gmra.mrb[18].mxu0 %vm205_vm11, %v7483_v22 }
 0xec7   :  { %6397 = vmatprep.mubr.msk.f32.mxu0 %vm6942_vm12, %v8454_v19 }
 0xf99   :  { %v6394_v24 = vpop.f32.mrb[18].mxu0 }
 0xf9a   :  { %v7494_v25 = vadd.f32 %v6394_v24, %v5957_v23  ;;  %v2200_v26 = vpop.f32.mrb[19].mxu0 }
 0xf9b   :  { %v7496_v27 = vadd.f32 %v5957_v23, %v2200_v26 }
 0xf9d   :  { %2210 = vrot.lane.b32.xlu0 %v7496_v27, %s6943_s4 }
 0xfa1   :  { %2377 = vrot.lane.b32.xlu0 %v7496_v27, %s8477_s6 }
 0xfa5   :  { %2375 = vrot.lane.b32.xlu0 %v7496_v27, %s8478_s30 }
0x100f   :  { %v2211_v6 = vpop.permute.xlu0 %2210 }
0x1010   :  { %6396 = vmatpush3.xpose.msk.msra.mxu0 %vm345_vm13, %v2211_v6 }
0x1011   :  { %6400 = vmatprep.subr.mxu0 %v8454_v19 }
0x1013   :  { %6398 = vmatmul.mubr.msk.f32.vlgmr.msra.gmra.mrb[20].mxu0 %vm345_vm13, %v7496_v27  ;;  %v2378_v40 = vpop.permute.xlu0 %2377 }
0x1014   :  { %6402 = vmatprep.mubr.msk.f32.mxu0 %vm6942_vm12, %v8454_v19 }
0x1017   :  { %v2376_v42 = vpop.permute.xlu0 %2375 }
0x10e6   :  { %v2282_v5 = vpop.f32.mrb[20].mxu0 }
0x10e7   :  { %v2286_v29 = vmul.f32 0.35355338, %v2282_v5  ;;  %v6399_v30 = vpop.f32.mrb[21].mxu0 }
0x10e9   :  { %v2287_v31 = vadd.f32 %v7206_v14, %v2286_v29 }
0x10eb   :  { %v2288_v32 = vsel %vm345_vm13, %v2287_v31, -inf }
0x10ec   :  { %2289 = vmax.xlane.f32.xlu1 %v2288_v32 }
0x1179   :  { %v2290_v33 = vpop.xlane.xlu1 %2289 }
0x117a   :  { %v2291_v34 = vsub.f32 %v2287_v31, %v2290_v33 }
0x117c   :  { %v2292_v35 = vmul.f32 1.442695, %v2291_v34 }
0x117e   :  { %6805 = vpow2.f32 %v2292_v35 }
0x1188   :  { %v6806_v36 = vpop.eup %6805 }
0x1189   :  { %v2294_v37 = vsel %vm345_vm13, %v6806_v36, 0.0 }
0x118a   :  { %2295 = vadd.xlane.f32.xlu1 %v2294_v37 }
0x119b   :  { %2299 = vrot.lane.b32.xlu1 %v7496_v27, %s8479_s0 }
0x1217   :  { %v2296_v38 = vpop.xlane.xlu1 %2295 }
0x1218   :  { %6807 = vrcp.f32 %v2296_v38 }
0x121b   :  { %v2300_v39 = vpop.permute.xlu1 %2299 }
0x121c   :  { %6401 = vmatpush3.msra.mxu0 %v2300_v39 }
0x121d   :  { %6405 = vmatprep.subr.mxu0 %v8454_v19 }
0x1222   :  { %v6808_v10 = vpop.eup %6807 }
0x1223   :  { %v2298_v41 = vmul.f32 %v6808_v10, %v6806_v36 }
0x1225   :  { %6403 = vmatmul.mubr.msk.f32.vlgmr.msra.gmra.mrb[22].mxu0 %vm345_vm13, %v2298_v41 }
0x1226   :  { %6406 = vmatpush3.xpose.msk.msra.mxu0 %vm345_vm13, %v2378_v40  ;;  %6407 = vmatprep.mubr.msk.f32.mxu0 %vm6942_vm12, %v8454_v19 }
0x1227   :  { %6410 = vmatprep.subr.mxu0 %v8454_v19 }
0x1229   :  { %6408 = vmatmul.mubr.msk.f32.vlgmr.msra.gmra.mrb[24].mxu0 %vm345_vm13, %v2376_v42 }
0x122a   :  { %6412 = vmatprep.mubr.msk.f32.mxu0 %vm6942_vm12, %v8454_v19 }
0x12f8   :  { %v7524_v43 = vpop.f32.mrb[22].mxu0 }
0x12f9   :  { %v6404_v45 = vpop.f32.mrb[23].mxu0 }
0x12fc   :  { %v2449_v46 = vpop.f32.mrb[24].mxu0 }
0x12fd   :  { %v2453_v47 = vmul.f32 0.35355338, %v2449_v46  ;;  %v6409_v50 = vpop.f32.mrb[25].mxu0 }
0x12fe   :  { %v6912_v50 = vld [vmem:[%s8476_s7 + $0x1] ss:$0 sm:$0xff]  ;;  %s8485_s7 = smov 40  }
0x12ff   :  { %v2454_v51 = vadd.f32 %v7206_v14, %v2453_v47 }
0x1301   :  { %v2455_v52 = vsel %vm345_vm13, %v2454_v51, -inf }
0x1302   :  { %2456 = vmax.xlane.f32.xlu1 %v2455_v52 }
0x1313   :  { %2544 = vrot.lane.b32.xlu1 %v7496_v27, %s8480_s24 }
0x1317   :  { %2542 = vrot.lane.b32.xlu1 %v7496_v27, %s8481_s25 }
0x131b   :  { %2709 = vrot.lane.b32.xlu1 %v7496_v27, %s8482_s5 }
0x131f   :  { %3059 = vrot.lane.b32.xlu1 %v7494_v25, %s8477_s6  ;;  %s6964_s6 = smov [#allocation2]  }
0x1323   :  { %3226 = vrot.lane.b32.xlu1 %v7494_v25, %s8480_s24 }
0x1327   :  { %3393 = vrot.lane.b32.xlu1 %v7494_v25, %s8483_s1 }
0x138f   :  { %v2457_v14 = vpop.xlane.xlu1 %2456 }
0x1390   :  { %v2458_v53 = vsub.f32 %v2454_v51, %v2457_v14 }
0x1392   :  { %v2459_v54 = vmul.f32 1.442695, %v2458_v53 }
0x1393   :  { %v2545_v57 = vpop.permute.xlu1 %2544 }
0x1394   :  { %6809 = vpow2.f32 %v2459_v54 }
0x1397   :  { %v2543_v58 = vpop.permute.xlu1 %2542 }
0x139b   :  { %v2710_v59 = vpop.permute.xlu1 %2709 }
0x139e   :  { %v6810_v55 = vpop.eup %6809 }
0x139f   :  { %v2461_v56 = vsel %vm345_vm13, %v6810_v55, 0.0  ;;  %v3060_v63 = vpop.permute.xlu1 %3059 }
0x13a0   :  { %2462 = vadd.xlane.f32.xlu0 %v2461_v56 }
0x13a3   :  { %v3227_v4 = vpop.permute.xlu1 %3226 }
0x13a7   :  { %v3394_v7 = vpop.permute.xlu1 %3393 }
0x13b6   :  { %2466 = vrot.lane.b32.xlu0 %v7496_v27, %s8484_s26 }
0x13ba   :  { %2711 = vrot.lane.b32.xlu0 %v7496_v27, %s8483_s1 }
0x13be   :  { %2892 = vrot.lane.b32.xlu0 %v7494_v25, %s6943_s4 }
0x13c2   :  { %3057 = vrot.lane.b32.xlu0 %v7494_v25, %s8478_s30 }
0x13c6   :  { %3224 = vrot.lane.b32.xlu0 %v7494_v25, %s8481_s25  ;;  %s8487_s25 = smov 16  }
0x13ca   :  { %3391 = vrot.lane.b32.xlu0 %v7494_v25, %s8482_s5 }
0x142d   :  { %v2463_v49 = vpop.xlane.xlu0 %2462 }
0x142e   :  { %6811 = vrcp.f32 %v2463_v49 }
0x1431   :  { %v2467_v48 = vpop.permute.xlu0 %2466 }
0x1432   :  { %6411 = vmatpush3.msra.mxu0 %v2467_v48 }
0x1433   :  { %6415 = vmatprep.subr.mxu0 %v8454_v19 }
0x1435   :  { %v2712_v60 = vpop.permute.xlu0 %2711 }
0x1436   :  { %6426 = vmatpush3.xpose.msk.msra.mxu1 %vm345_vm13, %v2712_v60 }
0x1437   :  { %6435 = vmatprep.subr.mxu1 %v8454_v19 }
0x1438   :  { %v6812_v62 = vpop.eup %6811 }
0x1439   :  { %v2893_v0 = vpop.permute.xlu0 %2892  ;;  %6428 = vmatmul.mubr.msk.f32.vlgmr.msra.gmra.mrb[24].mxu1 %vm345_vm13, %v2710_v59  ;;  %v2465_v1 = vmul.f32 %v6812_v62, %v6810_v55 }
0x143a   :  { %6436 = vmatpush3.xpose.msk.msra.mxu1 %vm345_vm13, %v2893_v0  ;;  %6437 = vmatprep.mubr.msk.f32.mxu1 %vm6942_vm12, %v8454_v19 }
0x143b   :  { %6413 = vmatmul.mubr.msk.f32.vlgmr.msra.gmra.mrb[26].mxu0 %vm345_vm13, %v2465_v1  ;;  %6445 = vmatprep.subr.mxu1 %v8454_v19 }
0x143c   :  { %6416 = vmatpush3.xpose.msk.msra.mxu0 %vm345_vm13, %v2545_v57  ;;  %6417 = vmatprep.mubr.msk.f32.mxu0 %vm6942_vm12, %v8454_v19 }
0x143d   :  { %v3058_v2 = vpop.permute.xlu0 %3057  ;;  %6438 = vmatmul.mubr.msk.f32.vlgmr.msra.gmra.mrb[26].mxu1 %vm345_vm13, %v7494_v25  ;;  %6420 = vmatprep.subr.mxu0 %v8454_v19 }
0x143e   :  { %6446 = vmatpush3.xpose.msk.msra.mxu1 %vm345_vm13, %v3060_v63  ;;  %6447 = vmatprep.mubr.msk.f32.mxu1 %vm6942_vm12, %v8454_v19 }
0x143f   :  { %6418 = vmatmul.mubr.msk.f32.vlgmr.msra.gmra.mrb[28].mxu0 %vm345_vm13, %v2543_v58  ;;  %6455 = vmatprep.subr.mxu1 %v8454_v19 }
0x1440   :  { %6422 = vmatprep.mubr.msk.f32.mxu0 %vm6942_vm12, %v8454_v19 }
0x1441   :  { %6448 = vmatmul.mubr.msk.f32.vlgmr.msra.gmra.mrb[28].mxu1 %vm345_vm13, %v3058_v2  ;;  %v3225_v44 = vpop.permute.xlu0 %3224 }
0x1442   :  { %6456 = vmatpush3.xpose.msk.msra.mxu1 %vm345_vm13, %v3227_v4  ;;  %6457 = vmatprep.mubr.msk.f32.mxu1 %vm6942_vm12, %v8454_v19 }
0x1443   :  { %6465 = vmatprep.subr.mxu1 %v8454_v19 }
0x1445   :  { %6458 = vmatmul.mubr.msk.f32.vlgmr.msra.gmra.mrb[30].mxu1 %vm345_vm13, %v3225_v44  ;;  %v3392_v8 = vpop.permute.xlu0 %3391 }
0x1446   :  { %6466 = vmatpush3.xpose.msk.msra.mxu1 %vm345_vm13, %v3394_v7  ;;  %6467 = vmatprep.mubr.msk.f32.mxu1 %vm6942_vm12, %v8454_v19 }
0x1449   :  { %6468 = vmatmul.mubr.msk.f32.vlgmr.msra.gmra.mrb[32].mxu1 %vm345_vm13, %v3392_v8 }
0x150c   :  { %v2783_v9 = vpop.f32.mrb[24].mxu1 }
0x150d   :  { %v2787_v12 = vmul.f32 0.35355338, %v2783_v9  ;;  %v6429_v13 = vpop.f32.mrb[25].mxu1 }
0x150e   :  { %v7585_v15 = vpop.f32.mrb[26].mxu0 }
0x150f   :  { %v6414_v11 = vpop.f32.mrb[27].mxu0  ;;  %v2788_v17 = vadd.f32 %v6911_v16, %v2787_v12 }
0x1510   :  { %v2964_v18 = vpop.f32.mrb[26].mxu1 }
0x1511   :  { %v2968_v23 = vmul.f32 0.35355338, %v2964_v18  ;;  %v6439_v24 = vpop.f32.mrb[27].mxu1  ;;  %v2789_v26 = vsel %vm345_vm13, %v2788_v17, -inf }
0x1512   :  { %2790 = vmax.xlane.f32.xlu0 %v2789_v26  ;;  %v2616_v6 = vpop.f32.mrb[28].mxu0 }
0x1513   :  { %v2620_v5 = vmul.f32 0.35355338, %v2616_v6  ;;  %v6419_v29 = vpop.f32.mrb[29].mxu0  ;;  %v2969_v30 = vadd.f32 %v7272_v61, %v2968_v23 }
0x1514   :  { %v3131_v31 = vpop.f32.mrb[28].mxu1 }
0x1515   :  { %v3135_v32 = vmul.f32 0.35355338, %v3131_v31  ;;  %v6449_v33 = vpop.f32.mrb[29].mxu1  ;;  %v2970_v34 = vsel %vm345_vm13, %v2969_v30, -inf  ;;  %v2621_v35 = vadd.f32 %v6911_v16, %v2620_v5 }
0x1516   :  { %2971 = vmax.xlane.f32.xlu0 %v2970_v34 }
0x1517   :  { %v2622_v36 = vsel %vm345_vm13, %v2621_v35, -inf  ;;  %v3136_v37 = vadd.f32 %v7272_v61, %v3135_v32 }
0x1518   :  { %v3298_v38 = vpop.f32.mrb[30].mxu1  ;;  %2623 = vmax.xlane.f32.xlu1 %v2622_v36 }
0x1519   :  { %v3302_v39 = vmul.f32 0.35355338, %v3298_v38  ;;  %v6459_v10 = vpop.f32.mrb[31].mxu1  ;;  %v3137_v40 = vsel %vm345_vm13, %v3136_v37, -inf }
0x151b   :  { %v3303_v41 = vadd.f32 %v7272_v61, %v3302_v39 }
0x151c   :  { %v3465_v42 = vpop.f32.mrb[32].mxu1  ;;  %3138 = vmax.xlane.f32.xlu1 %v3137_v40 }
0x151d   :  { %v3469_v45 = vmul.f32 0.35355338, %v3465_v42  ;;  %v6469_v46 = vpop.f32.mrb[33].mxu1  ;;  %v3304_v47 = vsel %vm345_vm13, %v3303_v41, -inf }
0x151e   :  { %3305 = vmax.xlane.f32.xlu0 %v3304_v47 }
0x151f   :  { %v3470_v51 = vadd.f32 %v6912_v50, %v3469_v45  ;;  %v5984_v50 = vld [vmem:[%s8409_s8 + $0x20] sm:$0xff] }
0x1521   :  { %v3471_v52 = vsel %vm345_vm13, %v3470_v51, -inf }
0x1522   :  { %3472 = vmax.xlane.f32.xlu1 %v3471_v52 }
0x159f   :  { %v2791_v14 = vpop.xlane.xlu0 %2790 }
0x15a0   :  { %v2792_v53 = vsub.f32 %v2788_v17, %v2791_v14 }
0x15a2   :  { %v2793_v54 = vmul.f32 1.442695, %v2792_v53 }
0x15a3   :  { %v2972_v55 = vpop.xlane.xlu0 %2971 }
0x15a4   :  { %6813 = vpow2.f32 %v2793_v54  ;;  %v2973_v61 = vsub.f32 %v2969_v30, %v2972_v55  ;;  %v5986_v54 = vld [vmem:[%s8409_s8 + $0x30] sm:$0xff]  ;;  %v5987_v55 = vld [vmem:[%s8409_s8 + $0x38] sm:$0xff] }
0x15a5   :  { %v2624_v56 = vpop.xlane.xlu1 %2623 }
0x15a6   :  { %v2974_v57 = vmul.f32 1.442695, %v2973_v61  ;;  %v2625_v49 = vsub.f32 %v2621_v35, %v2624_v56  ;;  %v6666_v56 = vpack.c.bf16 %v5987_v55, %v5986_v54  ;;  %v5995_v55 = vld [vmem:[%s8416_s15 + $0x1] ss:$0 sm:$0xff] }
0x15a8   :  { %6815 = vpow2.f32 %v2974_v57  ;;  %v2626_v0 = vmul.f32 1.442695, %v2625_v49 }
0x15a9   :  { %v3139_v58 = vpop.xlane.xlu1 %3138 }
0x15aa   :  { %v3140_v48 = vsub.f32 %v3136_v37, %v3139_v58 }
0x15ab   :  { %v3306_v59 = vpop.xlane.xlu0 %3305 }
0x15ac   :  { %v3141_v60 = vmul.f32 1.442695, %v3140_v48  ;;  %v3307_v62 = vsub.f32 %v3303_v41, %v3306_v59 }
0x15ae   :  { %v6814_v63 = vpop.eup %6813  ;;  %6817 = vpow2.f32 %v3141_v60  ;;  %v3308_v1 = vmul.f32 1.442695, %v3307_v62 }
0x15af   :  { %v3473_v2 = vpop.xlane.xlu1 %3472  ;;  %v2795_v4 = vsel %vm345_vm13, %v6814_v63, 0.0 }
0x15b0   :  { %6819 = vpow2.f32 %v3308_v1  ;;  %v3474_v44 = vsub.f32 %v3470_v51, %v3473_v2  ;;  %2796 = vadd.xlane.f32.xlu1 %v2795_v4  ;;  %v5985_v51 = vld [vmem:[%s8409_s8 + $0x28] sm:$0xff] }
0x15b1   :  { %6821 = vpow2.f32 %v2626_v0  ;;  %v6662_v14 = vpack.c.bf16 %v5985_v51, %v5984_v50 }
0x15b2   :  { %v6816_v7 = vpop.eup %6815  ;;  %v3475_v8 = vmul.f32 1.442695, %v3474_v44 }
0x15b3   :  { %v2976_v9 = vsel %vm345_vm13, %v6816_v7, 0.0  ;;  %6663 = vmatprep.subr.bf16.mxu1 %v6662_v14 }
0x15b4   :  { %6823 = vpow2.f32 %v3475_v8  ;;  %2977 = vadd.xlane.f32.xlu0 %v2976_v9  ;;  %6665 = vmatpush3.bf16.msra.mxu1 %v6662_v14 }
0x15b5   :  { %6667 = vmatprep.subr.bf16.mxu1 %v6666_v56 }
0x15b8   :  { %v6818_v12 = vpop.eup %6817  ;;  %6669 = vmatpush3.bf16.msra.mxu1 %v6666_v56 }
0x15b9   :  { %v3143_v13 = vsel %vm345_vm13, %v6818_v12, 0.0 }
0x15ba   :  { %v6820_v11 = vpop.eup %6819  ;;  %3144 = vadd.xlane.f32.xlu1 %v3143_v13 }
0x15bb   :  { %v3310_v16 = vsel %vm345_vm13, %v6820_v11, 0.0  ;;  %v6822_v17 = vpop.eup %6821 }
0x15bc   :  { %3311 = vadd.xlane.f32.xlu0 %v3310_v16  ;;  %v2628_v23 = vsel %vm345_vm13, %v6822_v17, 0.0 }
0x15be   :  { %v6824_v18 = vpop.eup %6823 }
0x15bf   :  { %v3477_v24 = vsel %vm345_vm13, %v6824_v18, 0.0 }
0x15c0   :  { %2629 = vadd.xlane.f32.xlu0 %v2628_v23  ;;  %3478 = vadd.xlane.f32.xlu1 %v3477_v24 }
0x15d1   :  { %2800 = vrot.lane.b32.xlu1 %v7496_v27, %s8485_s7 }
0x15d5   :  { %2981 = vrot.lane.b32.xlu1 %v7494_v25, %s8479_s0 }
0x15d6   :  { %2633 = vrot.lane.b32.xlu0 %v7496_v27, %s8486_s27 }
0x15d9   :  { %3315 = vrot.lane.b32.xlu1 %v7494_v25, %s8486_s27 }
0x15da   :  { %3148 = vrot.lane.b32.xlu0 %v7494_v25, %s8484_s26 }
0x15dd   :  { %2877 = vrot.lane.b32.xlu1 %v7585_v15, %s6954_s29 }
0x15de   :  { %3482 = vrot.lane.b32.xlu0 %v7494_v25, %s8485_s7 }
0x163d   :  { %v2797_v5 = vpop.xlane.xlu1 %2796 }
0x1641   :  { %v2978_v26 = vpop.xlane.xlu0 %2977 }
0x1647   :  { %v3145_v30 = vpop.xlane.xlu1 %3144 }
0x1649   :  { %v3312_v6 = vpop.xlane.xlu0 %3311 }
0x164d   :  { %v2630_v29 = vpop.xlane.xlu0 %2629  ;;  %v3479_v31 = vpop.xlane.xlu1 %3478 }
0x164e   :  { %6825 = vrcp.f32 %v2630_v29 }
0x164f   :  { %6827 = vrcp.f32 %v2797_v5 }
0x1650   :  { %6829 = vrcp.f32 %v2978_v26 }
0x1651   :  { %v2634_v27 = vpop.permute.xlu0 %2633  ;;  %6831 = vrcp.f32 %v3145_v30  ;;  %v2801_v15 = vpop.permute.xlu1 %2800 }
0x1652   :  { %6421 = vmatpush3.msra.mxu0 %v2634_v27  ;;  %6833 = vrcp.f32 %v3312_v6 }
0x1653   :  { %6430 = vmatprep.subr.mxu0 %v8454_v19  ;;  %6835 = vrcp.f32 %v3479_v31 }
0x1655   :  { %v2982_v36 = vpop.permute.xlu1 %2981  ;;  %v3149_v39 = vpop.permute.xlu0 %3148 }
0x1658   :  { %v6826_v32 = vpop.eup %6825 }
0x1659   :  { %v2632_v33 = vmul.f32 %v6826_v32, %v6822_v17  ;;  %v6828_v34 = vpop.eup %6827  ;;  %v3316_v41 = vpop.permute.xlu1 %3315 }
0x165a   :  { %v2799_v25 = vmul.f32 %v6828_v34, %v6814_v63  ;;  %v6830_v35 = vpop.eup %6829  ;;  %v3483_v46 = vpop.permute.xlu0 %3482 }
0x165b   :  { %6423 = vmatmul.mubr.msk.f32.vlgmr.msra.gmra.mrb[30].mxu0 %vm345_vm13, %v2632_v33  ;;  %v2980_v37 = vmul.f32 %v6830_v35, %v6816_v7  ;;  %v6832_v38 = vpop.eup %6831 }
0x165c   :  { %6431 = vmatpush3.msra.mxu0 %v2801_v15  ;;  %6432 = vmatprep.mubr.msk.f32.mxu0 %vm6942_vm12, %v8454_v19  ;;  %v3147_v10 = vmul.f32 %v6832_v38, %v6818_v12  ;;  %v6834_v40 = vpop.eup %6833 }
0x165d   :  { %6440 = vmatprep.subr.mxu0 %v8454_v19  ;;  %v3314_v42 = vmul.f32 %v6834_v40, %v6820_v11  ;;  %v6836_v45 = vpop.eup %6835  ;;  %v2878_v1 = vpop.permute.xlu1 %2877 }
0x165e   :  { %v3481_v47 = vmul.f32 %v6836_v45, %v6824_v18  ;;  %v2888_v4 = vsel %vm345_vm13, %v7524_v43, %v2878_v1  ;;  %v5989_v43 = vld [vmem:[%s8410_s9 + $0x1] ss:$0 sm:$0xff]  ;;  %v6009_v1 = vld [vmem:[%s8413_s12 + $0xa8] sm:$0xff] }
0x165f   :  { %6433 = vmatmul.mubr.msk.f32.vlgmr.msra.gmra.mrb[32].mxu0 %vm345_vm13, %v2799_v25 }
0x1660   :  { %6441 = vmatpush3.msra.mxu0 %v2982_v36  ;;  %6442 = vmatprep.mubr.msk.f32.mxu0 %vm6942_vm12, %v8454_v19 }
0x1661   :  { %6450 = vmatprep.subr.mxu0 %v8454_v19 }
0x1663   :  { %6443 = vmatmul.mubr.msk.f32.vlgmr.msra.gmra.mrb[34].mxu0 %vm345_vm13, %v2980_v37  ;;  %v5997_v37 = vld [vmem:[%s8411_s10 + $0x28] sm:$0xff] }
0x1664   :  { %6451 = vmatpush3.msra.mxu0 %v3149_v39  ;;  %6452 = vmatprep.mubr.msk.f32.mxu0 %vm6942_vm12, %v8454_v19  ;;  %v5998_v39 = vld [vmem:[%s8411_s10 + $0x30] sm:$0xff] }
0x1665   :  { %6460 = vmatprep.subr.mxu0 %v8454_v19 }
0x1667   :  { %6453 = vmatmul.mubr.msk.f32.vlgmr.msra.gmra.mrb[36].mxu0 %vm345_vm13, %v3147_v10  ;;  %v5999_v10 = vld [vmem:[%s8411_s10 + $0x38] sm:$0xff] }
0x1668   :  { %6461 = vmatpush3.msra.mxu0 %v3316_v41  ;;  %6462 = vmatprep.mubr.msk.f32.mxu0 %vm6942_vm12, %v8454_v19  ;;  %v6674_v40 = vpack.c.bf16 %v5999_v10, %v5998_v39 }
0x1669   :  { %6470 = vmatprep.subr.mxu0 %v8454_v19 }
0x166b   :  { %6463 = vmatmul.mubr.msk.f32.vlgmr.msra.gmra.mrb[38].mxu0 %vm345_vm13, %v3314_v42 }
0x166c   :  { %6471 = vmatpush3.msra.mxu0 %v3483_v46  ;;  %6472 = vmatprep.mubr.msk.f32.mxu0 %vm6942_vm12, %v8454_v19 }
0x166f   :  { %6473 = vmatmul.mubr.msk.f32.vlgmr.msra.gmra.mrb[40].mxu0 %vm345_vm13, %v3481_v47 }
0x172e   :  { %v2705_v52 = vpop.f32.mrb[30].mxu0 }
0x172f   :  { %2881 = vrot.lane.b32.xlu0 %v2705_v52, %s8487_s25  ;;  %v6424_v53 = vpop.f32.mrb[31].mxu0  ;;  %v5994_v52 = vld [vmem:[%s8415_s14 + $0x1] ss:$0 sm:$0xff] }
0x1732   :  { %v2872_v61 = vpop.f32.mrb[32].mxu0 }
0x1733   :  { %2885 = vrot.lane.b32.xlu0 %v2872_v61, %s8488_s3  ;;  %v6434_v57 = vpop.f32.mrb[33].mxu0 }
0x1736   :  { %v3053_v58 = vpop.f32.mrb[34].mxu0 }
0x1737   :  { %v6444_v49 = vpop.f32.mrb[35].mxu0 }
0x1738   :  { %v6004_v49 = vld [vmem:[%s8413_s12 + $0x80] sm:$0xff] }
0x173a   :  { %v3220_v48 = vpop.f32.mrb[36].mxu0 }
0x173b   :  { %3559 = vrot.lane.b32.xlu1 %v3220_v48, %s6954_s29  ;;  %v6454_v59 = vpop.f32.mrb[37].mxu0  ;;  %v6005_v48 = vld [vmem:[%s8413_s12 + $0x88] sm:$0xff] }
0x173c   :  { %v6678_v59 = vpack.c.bf16 %v6005_v48, %v6004_v49 }
0x173e   :  { %v3387_v60 = vpop.f32.mrb[38].mxu0  ;;  %6679 = vmatprep.subr.bf16.mxu1 %v6678_v59 }
0x173f   :  { %3563 = vrot.lane.b32.xlu1 %v3387_v60, %s8487_s25  ;;  %v6464_v62 = vpop.f32.mrb[39].mxu0  ;;  %v6006_v60 = vld [vmem:[%s8413_s12 + $0x90] sm:$0xff] }
0x1740   :  { %v6007_v62 = vld [vmem:[%s8413_s12 + $0x98] sm:$0xff] }
0x1742   :  { %v3554_v63 = vpop.f32.mrb[40].mxu0 }
0x1743   :  { %3567 = vrot.lane.b32.xlu0 %v3554_v63, %s8488_s3  ;;  %v6474_v0 = vpop.f32.mrb[41].mxu0  ;;  %v6682_v63 = vpack.c.bf16 %v6007_v62, %v6006_v60 }
0x1744   :  { %v6008_v0 = vld [vmem:[%s8413_s12 + $0xa0] sm:$0xff] }
0x17a1   :  { %v2882_v2 = vpop.permute.xlu0 %2881 }
0x17a2   :  { %v2889_v44 = vsel %vm1029_vm14, %v2888_v4, %v2882_v2  ;;  %v6686_v2 = vpack.c.bf16 %v6009_v1, %v6008_v0  ;;  %v6010_v4 = vld [vmem:[%s8413_s12 + $0xb0] sm:$0xff]  ;;  %v3976_v1 = vld [vmem:[%s8419_s18 + $0x8] sm:$0xff] }
0x17a5   :  { %v2886_v7 = vpop.permute.xlu0 %2885 }
0x17a6   :  { %v2890_v8 = vsel %vm1031_vm15, %v2889_v44, %v2886_v7  ;;  %v6011_v44 = vld [vmem:[%s8413_s12 + $0xb8] sm:$0xff] }
0x17a7   :  { %6483 = vmatprep.mubr.msk.f32.mxu1 %vm205_vm11, %v2890_v8  ;;  %v6690_v7 = vpack.c.bf16 %v6011_v44, %v6010_v4  ;;  %v6012_v8 = vld [vmem:[%s8413_s12 + $0xc0] sm:$0xff]  ;;  %v3977_v4 = vld [vmem:[%s8419_s18 + $0x10] sm:$0xff]  ;;  %v3978_v44 = vld [vmem:[%s8419_s18 + $0x18] sm:$0xff] }
0x17ad   :  { %v3560_v9 = vpop.permute.xlu1 %3559 }
0x17ae   :  { %v3570_v13 = vsel %vm345_vm13, %v3053_v58, %v3560_v9  ;;  %v6013_v9 = vld [vmem:[%s8413_s12 + $0xc8] sm:$0xff] }
0x17b1   :  { %v3564_v12 = vpop.permute.xlu1 %3563 }
0x17b2   :  { %v3571_v11 = vsel %vm1029_vm14, %v3570_v13, %v3564_v12  ;;  %v6014_v12 = vld [vmem:[%s8413_s12 + $0xd0] sm:$0xff]  ;;  %v6694_v13 = vpack.c.bf16 %v6013_v9, %v6012_v8 }
0x17b5   :  { %v3568_v16 = vpop.permute.xlu0 %3567 }
0x17b6   :  { %v3572_v17 = vsel %vm1031_vm15, %v3571_v11, %v3568_v16  ;;  %v6015_v11 = vld [vmem:[%s8413_s12 + $0xd8] sm:$0xff] }
0x17b7   :  { %6484 = vmatmul.mubr.msk.f32.vlgmr.msra.gmra.mrb[34].mxu1 %vm205_vm11, %v3572_v17  ;;  %v6698_v16 = vpack.c.bf16 %v6015_v11, %v6014_v12  ;;  %v6016_v17 = vld [vmem:[%s8413_s12 + $0xe0] sm:$0xff] }
0x17b8   :  { %6681 = vmatpush3.bf16.msra.mxu1 %v6678_v59 }
0x17b9   :  { %6683 = vmatprep.subr.bf16.mxu1 %v6682_v63 }
0x17bc   :  { %6685 = vmatpush3.bf16.msra.mxu1 %v6682_v63 }
0x17bd   :  { %6687 = vmatprep.subr.bf16.mxu1 %v6686_v2 }
0x17c0   :  { %6689 = vmatpush3.bf16.msra.mxu1 %v6686_v2 }
0x17c1   :  { %6691 = vmatprep.subr.bf16.mxu1 %v6690_v7 }
0x17c4   :  { %6693 = vmatpush3.bf16.msra.mxu1 %v6690_v7  ;;  %v6714_v7 = vpack.c.bf16 %v3978_v44, %v3977_v4 }
0x17c5   :  { %6695 = vmatprep.subr.bf16.mxu1 %v6694_v13 }
0x17c8   :  { %6697 = vmatpush3.bf16.msra.mxu1 %v6694_v13 }
0x17c9   :  { %6699 = vmatprep.subr.bf16.mxu1 %v6698_v16 }
0x17cc   :  { %6701 = vmatpush3.bf16.msra.mxu1 %v6698_v16 }
0x188a   :  { %v6485_v18 = vpop.f32.mrb[34].mxu1 }
0x188b   :  { %v3664_v23 = vadd.f32 %v6485_v18, %v5989_v43  ;;  %v3658_v24 = vpop.f32.mrb[35].mxu1 }
0x188c   :  { %v3659_v26 = vadd.f32 %v5989_v43, %v3658_v24  ;;  %v6017_v43 = vld [vmem:[%s8413_s12 + $0xe8] sm:$0xff]  ;;  %v6019_v24 = vld [vmem:[%s8413_s12 + $0xf8] sm:$0xff] }
0x188d   :  { %v3668_v6 = vadd.f32 %v3664_v23, %v7483_v22  ;;  %v6702_v18 = vpack.c.bf16 %v6017_v43, %v6016_v17  ;;  %v6018_v23 = vld [vmem:[%s8413_s12 + $0xf0] sm:$0xff]  ;;  %v6024_v43 = vld [vmem:[%s8417_s16 + $0x1] ss:$0 sm:$0xff] }
0x188e   :  { %v3667_v5 = vadd.f32 %v3659_v26, %v7481_v20  ;;  %v5996_v20 = vld [vmem:[%s8411_s10 + $0x20] sm:$0xff]  ;;  %v6706_v26 = vpack.c.bf16 %v6019_v24, %v6018_v23 }
0x188f   :  { %v3676_v29 = vsel %vm205_vm11, %v3668_v6, 0.0  ;;  %v6670_v38 = vpack.c.bf16 %v5997_v37, %v5996_v20  ;;  %6703 = vmatprep.subr.bf16.mxu1 %v6702_v18 }
0x1890   :  { %3677 = vadd.xlane.f32.xlu0 %v3676_v29  ;;  %v3673_v30 = vsel %vm205_vm11, %v3667_v5, 0.0  ;;  %6705 = vmatpush3.bf16.msra.mxu1 %v6702_v18 }
0x1891   :  { %3674 = vadd.xlane.f32.xlu1 %v3673_v30  ;;  %6671 = vmatprep.subr.bf16.mxu0 %v6670_v38 }
0x1892   :  { %6673 = vmatpush3.bf16.msra.mxu0 %v6670_v38  ;;  %6707 = vmatprep.subr.bf16.mxu1 %v6706_v26 }
0x1893   :  { %6675 = vmatprep.subr.bf16.mxu0 %v6674_v40 }
0x1894   :  { %6709 = vmatpush3.bf16.msra.mxu1 %v6706_v26  ;;  %v6025_v26 = vld [vmem:[%s8418_s17 + $0x1] ss:$0 sm:$0xff] }
0x1895   :  { %6573 = vmatprep.subr.mxu1 %v8454_v19 }
0x1896   :  { %6677 = vmatpush3.bf16.msra.mxu0 %v6674_v40 }
0x191d   :  { %v3678_v27 = vpop.xlane.xlu0 %3677 }
0x191e   :  { %v3680_v31 = vmul.f32 0.03125, %v3678_v27  ;;  %v3675_v32 = vpop.xlane.xlu1 %3674 }
0x191f   :  { %v3679_v33 = vmul.f32 0.03125, %v3675_v32 }
0x1920   :  { %v3682_v15 = vsub.f32 %v3668_v6, %v3680_v31  ;;  %v6001_v6 = vld [vmem:[%s8412_s11 + $0x1] ss:$0 sm:$0xff]  ;;  %s5893_s11 = sshll.u32 %s6964_s6, 4  ;;  %s5894_s11 = int_to_ptr.vmem [resolvable:$true] %s5893_s11 }
0x1921   :  { %v3681_v34 = vsub.f32 %v3667_v5, %v3679_v33  ;;  %s6915_s12 = scalar_lea.vmem %s5894_s11, 16  ;;  %p6920_p1 = scmp.lt.s32.totalorder %s5894_s11, %s5894_s11 }
0x1922   :  { %v3684_v25 = vmul.f32 %v3682_v15, %v3682_v15  ;;  %p6916_p0 = scmp.ne.s32.totalorder %s5894_s11, %s6915_s12 }
0x1923   :  { %v3683_v35 = vmul.f32 %v3681_v34, %v3681_v34 }
0x1924   :  { %v3688_v36 = vsel %vm205_vm11, %v3684_v25, 0.0 }
0x1925   :  { %3689 = vadd.xlane.f32.xlu1 %v3688_v36  ;;  %v3685_v22 = vsel %vm205_vm11, %v3683_v35, 0.0 }
0x1926   :  { %3686 = vadd.xlane.f32.xlu0 %v3685_v22 }
0x19b2   :  { %v3690_v41 = vpop.xlane.xlu1 %3689 }
0x19b3   :  { %v3692_v42 = vmul.f32 0.03125, %v3690_v41  ;;  %v3687_v45 = vpop.xlane.xlu0 %3686 }
0x19b4   :  { %v3691_v46 = vmul.f32 0.03125, %v3687_v45 }
0x19b5   :  { %v3694_v47 = vadd.f32 1e-12, %v3692_v42 }
0x19b6   :  { %v3693_v50 = vadd.f32 1e-12, %v3691_v46  ;;  %v6021_v46 = vld [vmem:[%s8414_s13 + $0x1] ss:$0 sm:$0xff]  ;;  %s6919_s13 = scalar_lea.vmem %s5894_s11, 32 }
0x19b7   :  { %6837 = vrsqrt.f32 %v3694_v47  ;;  %p6921_p2 = scmp.lt.s32.totalorder %s6919_s13, %s6915_s12 }
0x19b8   :  { %6839 = vrsqrt.f32 %v3693_v50 }
0x19b9   :  { %p6922_p3 = por %p6921_p2, %p6920_p1 }
0x19bb   :  { %p6923_p4 = pnand %p6922_p3, %p6916_p0 }
0x19c1   :  { %v6838_v51 = vpop.eup %6837 }
0x19c2   :  { %v6840_v14 = vpop.eup %6839  ;;  %v3698_v53 = vmul.f32 %v6838_v51, %v3682_v15 }
0x19c3   :  { %v3697_v54 = vmul.f32 %v6840_v14, %v3681_v34 }
0x19c4   :  { %v3706_v61 = vmul.f32 %v5994_v52, %v3698_v53 }
0x19c5   :  { %v3705_v56 = vmul.f32 %v5994_v52, %v3697_v54 }
0x19c6   :  { %v7698_v58 = vadd.f32 %v5995_v55, %v3706_v61 }
0x19c7   :  { %v7696_v57 = vadd.f32 %v5995_v55, %v3705_v56 }
0x19c9   :  { %6494 = vmatprep.mubr.msk.f32.mxu0 %vm205_vm11, %v7696_v57 }
0x19ca   :  { %6495 = vmatmul.mubr.msk.f32.vlgmr.msra.gmra.mrb[42].mxu0 %vm205_vm11, %v7698_v58 }
0x1a9d   :  { %v6496_v5 = vpop.f32.mrb[42].mxu0 }
0x1a9e   :  { %v3806_v29 = vadd.f32 %v6496_v5, %v6001_v6  ;;  %v3800_v30 = vpop.f32.mrb[43].mxu0 }
0x1a9f   :  { %v3801_v27 = vadd.f32 %v6001_v6, %v3800_v30 }
0x1aa0   :  { %v3810_v31 = vmul.f32 %v3806_v29, %v3806_v29 }
0x1aa1   :  { %v3809_v32 = vmul.f32 %v3801_v27, %v3801_v27 }
0x1aa2   :  { %v3812_v33 = vmul.f32 %v3810_v31, %v3806_v29  ;;  %v6026_v31 = vld [vmem:[%s8420_s19] ss:$0 sm:$0xff] }
0x1aa3   :  { %v3811_v15 = vmul.f32 %v3809_v32, %v3801_v27  ;;  %v7802_v32 = vsub.s32 0, %v7125_v21 }
0x1aa4   :  { %v3814_v34 = vmul.f32 0.044715, %v3812_v33 }
0x1aa5   :  { %v3813_v25 = vmul.f32 0.044715, %v3811_v15 }
0x1aa6   :  { %v3816_v35 = vadd.f32 %v3814_v34, %v3806_v29 }
0x1aa7   :  { %v3815_v36 = vadd.f32 %v3813_v25, %v3801_v27 }
0x1aa8   :  { %v3818_v22 = vmul.f32 0.7978846, %v3816_v35 }
0x1aa9   :  { %v3817_v20 = vmul.f32 0.7978846, %v3815_v36  ;;  %v4260_v36 = vsub.s32 1, %v7125_v21 }
0x1aaa   :  { %6841 = vtanh.f32 %v3818_v22 }
0x1aab   :  { %6843 = vtanh.f32 %v3817_v20 }
0x1ab4   :  { %v6842_v37 = vpop.eup %6841 }
0x1ab5   :  { %v6844_v38 = vpop.eup %6843  ;;  %v3822_v39 = vadd.f32 1.0, %v6842_v37 }
0x1ab6   :  { %v3821_v10 = vadd.f32 1.0, %v6844_v38 }
0x1ab7   :  { %v3824_v40 = vmul.f32 0.5, %v3822_v39 }
0x1ab8   :  { %v3823_v41 = vmul.f32 0.5, %v3821_v10 }
0x1ab9   :  { %v3826_v45 = vmul.f32 %v3824_v40, %v3806_v29 }
0x1aba   :  { %v3825_v42 = vmul.f32 %v3823_v41, %v3801_v27  ;;  %v7793_v27 = vld [vmem:[%s8421_s20] sm:$0xff] }
0x1abb   :  { %v4120_v35 = vrot.slane %v7793_v27, %v7802_v32 }
0x1abc   :  { %6529 = vmatprep.mubr.f32.mxu1 %v3825_v42 }
0x1abd   :  { %6530 = vmatmul.mubr.f32.vlgmr.msra.gmra.mrb[36].mxu1 %v3826_v45 }
0x1abe   :  { %6575 = vmatprep.mubr.msk.f32.mxu1 %vm6942_vm12, %v8454_v19  ;;  %6574 = vmatpush3.msra.mxu1 %v7793_v27 }
0x1b90   :  { %v6531_v47 = vpop.f32.mrb[36].mxu1 }
0x1b91   :  { %v3924_v50 = vadd.f32 %v6531_v47, %v6021_v46  ;;  %v3918_v51 = vpop.f32.mrb[37].mxu1 }
0x1b92   :  { %v3919_v52 = vadd.f32 %v6021_v46, %v3918_v51 }
0x1b93   :  { %v3928_v14 = vadd.f32 %v3924_v50, %v7698_v58 }
0x1b94   :  { %v3927_v53 = vadd.f32 %v3919_v52, %v7696_v57  ;;  %v3975_v57 = vld [vmem:[%s8419_s18] sm:$0xff] }
0x1b95   :  { %v3936_v54 = vsel %vm205_vm11, %v3928_v14, 0.0  ;;  %v6710_v2 = vpack.c.bf16 %v3976_v1, %v3975_v57 }
0x1b96   :  { %3937 = vadd.xlane.f32.xlu1 %v3936_v54  ;;  %v3933_v55 = vsel %vm205_vm11, %v3927_v53, 0.0 }
0x1b97   :  { %3934 = vadd.xlane.f32.xlu0 %v3933_v55  ;;  %6711 = vmatprep.subr.bf16.mxu0 %v6710_v2 }
0x1b98   :  { %6713 = vmatpush3.bf16.msra.mxu0 %v6710_v2 }
0x1b99   :  { %6715 = vmatprep.subr.bf16.mxu0 %v6714_v7 }
0x1b9c   :  { %6717 = vmatpush3.bf16.msra.mxu0 %v6714_v7 }
0x1b9d   :  { %6543 = vmatprep.subr.mxu0 %v8454_v19 }
0x1c23   :  { %v3938_v61 = vpop.xlane.xlu1 %3937 }
0x1c24   :  { %v3940_v56 = vmul.f32 0.03125, %v3938_v61  ;;  %v3935_v49 = vpop.xlane.xlu0 %3934 }
0x1c25   :  { %v3939_v48 = vmul.f32 0.03125, %v3935_v49 }
0x1c26   :  { %v3942_v59 = vsub.f32 %v3928_v14, %v3940_v56 }
0x1c27   :  { %v3941_v60 = vsub.f32 %v3927_v53, %v3939_v48 }
0x1c28   :  { %v3944_v62 = vmul.f32 %v3942_v59, %v3942_v59 }
0x1c29   :  { %v3943_v63 = vmul.f32 %v3941_v60, %v3941_v60 }
0x1c2a   :  { %v3948_v0 = vsel %vm205_vm11, %v3944_v62, 0.0  ;;  %v6957_v62 = vmov 1966171168  }
0x1c2b   :  { %3949 = vadd.xlane.f32.xlu1 %v3948_v0  ;;  %v3945_v58 = vsel %vm205_vm11, %v3943_v63, 0.0  ;;  %v4218_v63 = vunpack.c.l.s4 %v6957_v62 }
0x1c2c   :  { %3946 = vadd.xlane.f32.xlu0 %v3945_v58 }
0x1c2d   :  { %v4219_v0 = vunpack.c.0.s8 %v4218_v63 }
0x1c2f   :  { %v7835_v58 = vsub.s32 %v4219_v0, %v7125_v21 }
0x1cb8   :  { %v3950_v8 = vpop.xlane.xlu1 %3949 }
0x1cb9   :  { %v3952_v9 = vmul.f32 0.03125, %v3950_v8  ;;  %v3947_v12 = vpop.xlane.xlu0 %3946 }
0x1cba   :  { %v3951_v13 = vmul.f32 0.03125, %v3947_v12 }
0x1cbb   :  { %v3954_v11 = vadd.f32 1e-12, %v3952_v9 }
0x1cbc   :  { %v3953_v16 = vadd.f32 1e-12, %v3951_v13 }
0x1cbd   :  { %6845 = vrsqrt.f32 %v3954_v11 }
0x1cbe   :  { %6847 = vrsqrt.f32 %v3953_v16 }
0x1cc7   :  { %v6846_v17 = vpop.eup %6845 }
0x1cc8   :  { %v6848_v18 = vpop.eup %6847  ;;  %v3958_v23 = vmul.f32 %v6846_v17, %v3942_v59 }
0x1cc9   :  { %v3957_v24 = vmul.f32 %v6848_v18, %v3941_v60 }
0x1cca   :  { %v3966_v6 = vmul.f32 %v6024_v43, %v3958_v23 }
0x1ccb   :  { %v3965_v5 = vmul.f32 %v6024_v43, %v3957_v24 }
0x1ccc   :  { %v3974_v30 = vadd.f32 %v6025_v26, %v3966_v6 }
0x1ccd   :  { %v3973_v29 = vadd.f32 %v6025_v26, %v3965_v5 }
0x1ccf   :  { %6540 = vmatprep.mubr.msk.f32.mxu0 %vm205_vm11, %v3973_v29 }
0x1cd0   :  { %6541 = vmatmul.mubr.msk.f32.vlgmr.msra.gmra.mrb[44].mxu0 %vm205_vm11, %v3974_v30 }
0x1cd1   :  { %6545 = vmatprep.mubr.msk.f32.mxu0 %vm6942_vm12, %v8454_v19  ;;  %6544 = vmatpush3.msra.mxu0 %v7793_v27 }
0x1cd2   :  { %6548 = vmatprep.subr.mxu0 %v8454_v19 }
0x1da3   :  { %v6542_v33 = vpop.f32.mrb[44].mxu0 }
0x1da4   :  { %v4064_v15 = vadd.f32 %v6542_v33, %v6026_v31  ;;  %v4058_v34 = vpop.f32.mrb[45].mxu0 }
0x1da5   :  { %v4059_v25 = vadd.f32 %v6026_v31, %v4058_v34 }
0x1da6   :  { %v4068_v22 = vrot.slane %v4064_v15, 7  ;;  %v4078_v20 = vrot.slane %v4064_v15, 1  ;;  %v4083_v37 = vrot.slane %v4064_v15, 2  ;;  %v4088_v38 = vrot.slane %v4064_v15, 3 }
0x1da7   :  { %v4073_v39 = vrot.slane %v4059_v25, 1  ;;  %v4076_v10 = vrot.slane %v4059_v25, 2  ;;  %v4081_v40 = vrot.slane %v4059_v25, 3  ;;  %v4086_v41 = vrot.slane %v4059_v25, 4 }
0x1da8   :  { %v4071_v42 = vsel %vm4070_vm0, %v4059_v25, %v4068_v22  ;;  %v4091_v45 = vrot.slane %v4059_v25, 5  ;;  %v4093_v46 = vrot.slane %v4064_v15, 4  ;;  %v4096_v61 = vrot.slane %v4059_v25, 6 }
0x1da9   :  { %v7808_v47 = vadd.f32 %v4120_v35, %v4071_v42  ;;  %v7811_v50 = vsel %vm4070_vm0, %v4073_v39, %v4064_v15  ;;  %v7814_v51 = vsel %vm4070_vm0, %v4076_v10, %v4078_v20  ;;  %v7817_v52 = vsel %vm4070_vm0, %v4081_v40, %v4083_v37 }
0x1daa   :  { %v7820_v14 = vsel %vm4070_vm0, %v4086_v41, %v4088_v38  ;;  %v7826_v55 = vsel %vm4070_vm0, %v4091_v45, %v4093_v46  ;;  %v4098_v56 = vrot.slane %v4064_v15, 5  ;;  %v4101_v48 = vrot.slane %v4059_v25, 7 }
0x1dab   :  { %v4261_v53 = vrot.slane %v7808_v47, %v4260_v36  ;;  %v4254_v54 = vrot.slane %v7808_v47, %v7802_v32  ;;  %v4103_v59 = vrot.slane %v4064_v15, 6  ;;  %v4223_v57 = vrot.slane %v7811_v50, %v7835_v58 }
0x1dac   :  { %v7829_v49 = vsel %vm4070_vm0, %v4096_v61, %v4098_v56 }
0x1dad   :  { %4263 = vbcast.lane.b32.xlu0 %v4261_v53, 256  ;;  %4256 = vbcast.lane.b32.xlu1 %v4254_v54, 256  ;;  %v7832_v60 = vsel %vm4070_vm0, %v4101_v48, %v4103_v59  ;;  %v4224_v1 = vcombine.high %v4223_v57, %v4223_v57  ;;  %v4231_v4 = vrot.slane %v4223_v57, %v7835_v58 }
0x1daf   :  { %v4238_v2 = vrot.slane %v4224_v1, %v7835_v58  ;;  %v4242_v7 = vrot.slane %v4231_v4, %v7802_v32  ;;  %v4427_v4 = vrot.slane %v7814_v51, %v7835_v58 }
0x1db1   :  { %v4246_v44 = vrot.slane %v4238_v2, %v7802_v32  ;;  %v4249_v9 = vadd.f32 %v4242_v7, %v7793_v27 }
0x1db3   :  { %v4250_v8 = vadd.f32 %v4246_v44, %v7793_v27  ;;  %v4428_v44 = vcombine.high %v4427_v4, %v4427_v4 }
0x1db5   :  { %v4442_v7 = vrot.slane %v4428_v44, %v7835_v58 }
0x1e1f   :  { %v4264_v12 = vpop.permute.xlu0 %4263  ;;  %v4257_v13 = vpop.permute.xlu1 %4256 }
0x1e20   :  { %v7845_v11 = vadd.f32 %v4264_v12, %v4250_v8  ;;  %v7847_v16 = vadd.f32 %v4257_v13, %v4249_v9  ;;  %v4435_v8 = vrot.slane %v4427_v4, %v7835_v58  ;;  %v4450_v9 = vrot.slane %v4442_v7, %v7802_v32 }
0x1e22   :  { %8489 = vst [vmem:[#allocation5_spill] sm:$0xff] %v7845_v11  ;;  %8490 = vst [vmem:[#allocation6_spill] sm:$0xff] %v7847_v16  ;;  %v4274_v17 = vsel %vm345_vm13, %v7845_v11, -inf  ;;  %v4267_v43 = vsel %vm345_vm13, %v7847_v16, -inf  ;;  %v4446_v12 = vrot.slane %v4435_v8, %v7802_v32  ;;  %v7882_v13 = vadd.f32 %v4450_v9, %v7793_v27 }
0x1e23   :  { %v4275_v18 = vrot.slane %v4274_v17, 4  ;;  %v4268_v23 = vrot.slane %v4267_v43, 4 }
0x1e25   :  { %v4276_v24 = vmax.f32 %v4274_v17, %v4275_v18  ;;  %v4269_v26 = vmax.f32 %v4267_v43, %v4268_v23  ;;  %v7885_v17 = vadd.f32 %v4446_v12, %v7793_v27 }
0x1e27   :  { %v4277_v6 = vrot.slane %v4276_v24, 2  ;;  %v4270_v5 = vrot.slane %v4269_v26, 2 }
0x1e29   :  { %v4278_v29 = vmax.f32 %v4276_v24, %v4277_v6  ;;  %v4271_v30 = vmax.f32 %v4269_v26, %v4270_v5 }
0x1e2b   :  { %v4279_v31 = vrot.slane %v4278_v29, 1  ;;  %v4272_v33 = vrot.slane %v4271_v30, 1 }
0x1e2d   :  { %v7853_v15 = vmax.f32 %v4278_v29, %v4279_v31  ;;  %v7855_v34 = vmax.f32 %v4271_v30, %v4272_v33 }
0x1e2f   :  { %8491 = vst [vmem:[#allocation7_spill] sm:$0xff] %v7853_v15  ;;  %8492 = vst [vmem:[#allocation8_spill] sm:$0xff] %v7855_v34  ;;  %v4282_v25 = vsub.f32 %v7845_v11, %v7853_v15  ;;  %v4281_v35 = vsub.f32 %v7847_v16, %v7855_v34  ;;  %4507 = vbcast.lane.b32.xlu1 %v7853_v15, 256  ;;  %4504 = vbcast.lane.b32.xlu0 %v7855_v34, 256 }
0x1e31   :  { %v4285_v36 = vmul.f32 1.442695, %v4282_v25  ;;  %v4283_v22 = vmul.f32 1.442695, %v4281_v35 }
0x1e33   :  { %6849 = vpow2.f32 %v4285_v36 }
0x1e34   :  { %6851 = vpow2.f32 %v4283_v22 }
0x1e3d   :  { %v6850_v20 = vpop.eup %6849 }
0x1e3e   :  { %v6852_v37 = vpop.eup %6851  ;;  %v4294_v38 = vsel %vm345_vm13, %v6850_v20, 0.0 }
0x1e3f   :  { %v4287_v39 = vsel %vm345_vm13, %v6852_v37, 0.0  ;;  %v4295_v10 = vrot.slane %v4294_v38, 4 }
0x1e40   :  { %v4288_v40 = vrot.slane %v4287_v39, 4 }
0x1e41   :  { %v4296_v41 = vadd.f32 %v4295_v10, %v4294_v38 }
0x1e42   :  { %v4289_v42 = vadd.f32 %v4288_v40, %v4287_v39  ;;  %v4645_v39 = vrot.slane %v7817_v52, %v7835_v58 }
0x1e43   :  { %v4297_v45 = vrot.slane %v4296_v41, 2 }
0x1e44   :  { %v4290_v46 = vrot.slane %v4289_v42, 2  ;;  %v4646_v10 = vcombine.high %v4645_v39, %v4645_v39 }
0x1e45   :  { %v4298_v53 = vadd.f32 %v4297_v45, %v4296_v41  ;;  %v4653_v41 = vrot.slane %v4645_v39, %v7835_v58 }
0x1e46   :  { %v4291_v54 = vadd.f32 %v4290_v46, %v4289_v42  ;;  %v4660_v40 = vrot.slane %v4646_v10, %v7835_v58 }
0x1e47   :  { %v4299_v61 = vrot.slane %v4298_v53, 1  ;;  %v4664_v45 = vrot.slane %v4653_v41, %v7802_v32 }
0x1e48   :  { %v4292_v56 = vrot.slane %v4291_v54, 1  ;;  %v4668_v42 = vrot.slane %v4660_v40, %v7802_v32 }
0x1e49   :  { %v4300_v48 = vadd.f32 %v4299_v61, %v4298_v53  ;;  %v7917_v53 = vadd.f32 %v4664_v45, %v7793_v27 }
0x1e4a   :  { %v4293_v59 = vadd.f32 %v4292_v56, %v4291_v54  ;;  %v7914_v46 = vadd.f32 %v4668_v42, %v7793_v27 }
0x1e4b   :  { %6853 = vlog2.f32 %v4300_v48 }
0x1e4c   :  { %6855 = vlog2.f32 %v4293_v59 }
0x1e55   :  { %v6854_v62 = vpop.eup %6853 }
0x1e56   :  { %v6856_v63 = vpop.eup %6855  ;;  %v4304_v0 = vmul.f32 0.6931472, %v6854_v62 }
0x1e57   :  { %v4302_v57 = vmul.f32 0.6931472, %v6856_v63 }
0x1e58   :  { %v7870_v1 = vadd.f32 %v4304_v0, %v7853_v15 }
0x1e59   :  { %v7873_v2 = vadd.f32 %v4302_v57, %v7855_v34 }
0x1ea1   :  { %v4508_v43 = vpop.permute.xlu1 %4507  ;;  %v4505_v18 = vpop.permute.xlu0 %4504 }
0x1ea2   :  { %v7888_v23 = vadd.f32 %v4508_v43, %v7882_v13  ;;  %v7891_v24 = vadd.f32 %v4505_v18, %v7885_v17 }
0x1ea4   :  { %v4518_v26 = vsel %vm345_vm13, %v7888_v23, -inf  ;;  %v4511_v6 = vsel %vm345_vm13, %v7891_v24, -inf }
0x1ea5   :  { %v4519_v5 = vrot.slane %v4518_v26, 4  ;;  %v4512_v29 = vrot.slane %v4511_v6, 4 }
0x1ea7   :  { %v4520_v30 = vmax.f32 %v4518_v26, %v4519_v5  ;;  %v4513_v31 = vmax.f32 %v4511_v6, %v4512_v29  ;;  %v4863_v6 = vrot.slane %v7820_v14, %v7835_v58 }
0x1ea9   :  { %v4521_v33 = vrot.slane %v4520_v30, 2  ;;  %v4514_v25 = vrot.slane %v4513_v31, 2  ;;  %v4864_v5 = vcombine.high %v4863_v6, %v4863_v6 }
0x1eab   :  { %v4522_v35 = vmax.f32 %v4520_v30, %v4521_v33  ;;  %v4515_v36 = vmax.f32 %v4513_v31, %v4514_v25  ;;  %v4878_v29 = vrot.slane %v4864_v5, %v7835_v58  ;;  %v4871_v30 = vrot.slane %v4863_v6, %v7835_v58 }
0x1ead   :  { %v4523_v22 = vrot.slane %v4522_v35, 1  ;;  %v4516_v20 = vrot.slane %v4515_v36, 1  ;;  %v4886_v31 = vrot.slane %v4878_v29, %v7802_v32  ;;  %v4882_v33 = vrot.slane %v4871_v30, %v7802_v32 }
0x1eaf   :  { %v7897_v37 = vmax.f32 %v4522_v35, %v4523_v22  ;;  %v7899_v38 = vmax.f32 %v4515_v36, %v4516_v20  ;;  %v7946_v25 = vadd.f32 %v4886_v31, %v7793_v27  ;;  %v7949_v35 = vadd.f32 %v4882_v33, %v7793_v27 }
0x1eb1   :  { %4725 = vbcast.lane.b32.xlu1 %v7897_v37, 256  ;;  %4722 = vbcast.lane.b32.xlu0 %v7899_v38, 256 }
0x1f23   :  { %v4726_v54 = vpop.permute.xlu1 %4725  ;;  %v4723_v61 = vpop.permute.xlu0 %4722 }
0x1f24   :  { %v7920_v56 = vadd.f32 %v4726_v54, %v7914_v46  ;;  %v7923_v48 = vadd.f32 %v4723_v61, %v7917_v53 }
0x1f26   :  { %v4736_v59 = vsel %vm345_vm13, %v7920_v56, -inf  ;;  %v4729_v62 = vsel %vm345_vm13, %v7923_v48, -inf }
0x1f27   :  { %v4737_v63 = vrot.slane %v4736_v59, 4  ;;  %v4730_v0 = vrot.slane %v4729_v62, 4 }
0x1f29   :  { %v4738_v57 = vmax.f32 %v4736_v59, %v4737_v63  ;;  %v4731_v4 = vmax.f32 %v4729_v62, %v4730_v0 }
0x1f2b   :  { %v4739_v44 = vrot.slane %v4738_v57, 2  ;;  %v4732_v7 = vrot.slane %v4731_v4, 2 }
0x1f2d   :  { %v4740_v8 = vmax.f32 %v4738_v57, %v4739_v44  ;;  %v4733_v9 = vmax.f32 %v4731_v4, %v4732_v7  ;;  %v5081_v7 = vrot.slane %v7826_v55, %v7835_v58 }
0x1f2f   :  { %v4741_v12 = vrot.slane %v4740_v8, 1  ;;  %v4734_v43 = vrot.slane %v4733_v9, 1 }
0x1f31   :  { %v7929_v18 = vmax.f32 %v4740_v8, %v4741_v12  ;;  %v7931_v26 = vmax.f32 %v4733_v9, %v4734_v43  ;;  %v5082_v8 = vcombine.high %v5081_v7, %v5081_v7  ;;  %v5089_v12 = vrot.slane %v5081_v7, %v7835_v58 }
0x1f33   :  { %4943 = vbcast.lane.b32.xlu1 %v7929_v18, 256  ;;  %4940 = vbcast.lane.b32.xlu0 %v7931_v26, 256  ;;  %v5096_v9 = vrot.slane %v5082_v8, %v7835_v58  ;;  %v5100_v6 = vrot.slane %v5089_v12, %v7802_v32  ;;  %v5299_v8 = vrot.slane %v7829_v49, %v7835_v58 }
0x1f35   :  { %v5104_v43 = vrot.slane %v5096_v9, %v7802_v32  ;;  %v7981_v29 = vadd.f32 %v5100_v6, %v7793_v27  ;;  %v5300_v9 = vcombine.high %v5299_v8, %v5299_v8 }
0x1f37   :  { %v7978_v5 = vadd.f32 %v5104_v43, %v7793_v27  ;;  %v5314_v12 = vrot.slane %v5300_v9, %v7835_v58  ;;  %v5307_v43 = vrot.slane %v5299_v8, %v7835_v58 }
0x1f39   :  { %v5322_v6 = vrot.slane %v5314_v12, %v7802_v32 }
0x1fa5   :  { %v4944_v36 = vpop.permute.xlu1 %4943  ;;  %v4941_v22 = vpop.permute.xlu0 %4940 }
0x1fa6   :  { %v7952_v20 = vadd.f32 %v4944_v36, %v7946_v25  ;;  %v7955_v39 = vadd.f32 %v4941_v22, %v7949_v35 }
0x1fa8   :  { %v4954_v10 = vsel %vm345_vm13, %v7952_v20, -inf  ;;  %v4947_v40 = vsel %vm345_vm13, %v7955_v39, -inf }
0x1fa9   :  { %v4955_v41 = vrot.slane %v4954_v10, 4  ;;  %v4948_v42 = vrot.slane %v4947_v40, 4 }
0x1fab   :  { %v4956_v45 = vmax.f32 %v4954_v10, %v4955_v41  ;;  %v4949_v54 = vmax.f32 %v4947_v40, %v4948_v42 }
0x1fad   :  { %v4957_v61 = vrot.slane %v4956_v45, 2  ;;  %v4950_v59 = vrot.slane %v4949_v54, 2 }
0x1faf   :  { %v4958_v62 = vmax.f32 %v4956_v45, %v4957_v61  ;;  %v4951_v63 = vmax.f32 %v4949_v54, %v4950_v59 }
0x1fb1   :  { %v4959_v0 = vrot.slane %v4958_v62, 1  ;;  %v4952_v57 = vrot.slane %v4951_v63, 1 }
0x1fb3   :  { %v7961_v4 = vmax.f32 %v4958_v62, %v4959_v0  ;;  %v7963_v44 = vmax.f32 %v4951_v63, %v4952_v57 }
0x1fb5   :  { %vm4962_vm7 = vcmp.eq.f32.partialorder %v7952_v20, %v7961_v4  ;;  %5161 = vbcast.lane.b32.xlu1 %v7961_v4, 256  ;;  %vm4961_vm8 = vcmp.eq.f32.partialorder %v7955_v39, %v7963_v44  ;;  %5158 = vbcast.lane.b32.xlu0 %v7963_v44, 256 }
0x2027   :  { %v5162_v30 = vpop.permute.xlu1 %5161  ;;  %v5159_v31 = vpop.permute.xlu0 %5158 }
0x2028   :  { %v7984_v33 = vadd.f32 %v5162_v30, %v7978_v5  ;;  %v7987_v36 = vadd.f32 %v5159_v31, %v7981_v29  ;;  %v5318_v30 = vrot.slane %v5307_v43, %v7802_v32  ;;  %v8012_v31 = vadd.f32 %v5322_v6, %v7793_v27 }
0x202a   :  { %v5172_v22 = vsel %vm345_vm13, %v7984_v33, -inf  ;;  %v5165_v10 = vsel %vm345_vm13, %v7987_v36, -inf }
0x202b   :  { %v5173_v40 = vrot.slane %v5172_v22, 4  ;;  %v5166_v41 = vrot.slane %v5165_v10, 4 }
0x202d   :  { %v5174_v42 = vmax.f32 %v5172_v22, %v5173_v40  ;;  %v5167_v45 = vmax.f32 %v5165_v10, %v5166_v41  ;;  %v8015_v22 = vadd.f32 %v5318_v30, %v7793_v27 }
0x202f   :  { %v5175_v54 = vrot.slane %v5174_v42, 2  ;;  %v5168_v61 = vrot.slane %v5167_v45, 2 }
0x2031   :  { %v5176_v59 = vmax.f32 %v5174_v42, %v5175_v54  ;;  %v5169_v62 = vmax.f32 %v5167_v45, %v5168_v61 }
0x2033   :  { %v5177_v63 = vrot.slane %v5176_v59, 1  ;;  %v5170_v0 = vrot.slane %v5169_v62, 1 }
0x2035   :  { %v7993_v57 = vmax.f32 %v5176_v59, %v5177_v63  ;;  %v7995_v7 = vmax.f32 %v5169_v62, %v5170_v0 }
0x2037   :  { %vm5180_vm9 = vcmp.eq.f32.partialorder %v7984_v33, %v7993_v57  ;;  %5379 = vbcast.lane.b32.xlu1 %v7993_v57, 256  ;;  %vm5179_vm10 = vcmp.eq.f32.partialorder %v7987_v36, %v7995_v7  ;;  %5376 = vbcast.lane.b32.xlu0 %v7995_v7, 256 }
0x203b   :  { %4459 = vbcast.lane.b32.xlu1 %v7870_v1, 256  ;;  %4456 = vbcast.lane.b32.xlu0 %v7873_v2, 256 }
0x20a9   :  { %v5380_v1 = vpop.permute.xlu1 %5379  ;;  %v5377_v2 = vpop.permute.xlu0 %5376 }
0x20aa   :  { %v8018_v10 = vadd.f32 %v5380_v1, %v8012_v31  ;;  %v8021_v40 = vadd.f32 %v5377_v2, %v8015_v22 }
0x20ac   :  { %v5390_v41 = vsel %vm345_vm13, %v8018_v10, -inf  ;;  %v5383_v42 = vsel %vm345_vm13, %v8021_v40, -inf }
0x20ad   :  { %v5391_v45 = vrot.slane %v5390_v41, 4  ;;  %v4460_v54 = vpop.permute.xlu1 %4459  ;;  %v5384_v61 = vrot.slane %v5383_v42, 4  ;;  %v4457_v59 = vpop.permute.xlu0 %4456 }
0x20ae   :  { %v4462_v62 = vadd.f32 %v4460_v54, %v7882_v13  ;;  %v4461_v0 = vadd.f32 %v4457_v59, %v7885_v17 }
0x20af   :  { %v5392_v63 = vmax.f32 %v5390_v41, %v5391_v45  ;;  %v5385_v8 = vmax.f32 %v5383_v42, %v5384_v61 }
0x20b0   :  { %v4470_v9 = vsel %vm345_vm13, %v4462_v62, -inf  ;;  %v4463_v43 = vsel %vm345_vm13, %v4461_v0, -inf }
0x20b1   :  { %v5393_v12 = vrot.slane %v5392_v63, 2  ;;  %v4471_v6 = vrot.slane %v4470_v9, 4  ;;  %v5386_v30 = vrot.slane %v5385_v8, 2  ;;  %v4464_v1 = vrot.slane %v4463_v43, 4 }
0x20b3   :  { %v5394_v2 = vmax.f32 %v5392_v63, %v5393_v12  ;;  %v4472_v19 = vmax.f32 %v4470_v9, %v4471_v6  ;;  %v5387_v3 = vmax.f32 %v5385_v8, %v5386_v30  ;;  %v4465_v34 = vmax.f32 %v4463_v43, %v4464_v1 }
0x20b5   :  { %v5395_v16 = vrot.slane %v5394_v2, 1  ;;  %v4473_v15 = vrot.slane %v4472_v19, 2  ;;  %v5388_v11 = vrot.slane %v5387_v3, 1  ;;  %v4466_v13 = vrot.slane %v4465_v34, 2 }
0x20b7   :  { %v8031_v41 = vmax.f32 %v5394_v2, %v5395_v16  ;;  %v4474_v17 = vmax.f32 %v4472_v19, %v4473_v15  ;;  %v8033_v42 = vmax.f32 %v5387_v3, %v5388_v11  ;;  %v4467_v45 = vmax.f32 %v4465_v34, %v4466_v13 }
0x20b9   :  { %vm5398_vm11 = vcmp.eq.f32.partialorder %v8018_v10, %v8031_v41  ;;  %v4475_v54 = vrot.slane %v4474_v17, 1  ;;  %5597 = vbcast.lane.b32.xlu1 %v8031_v41, 256  ;;  %vm5397_vm14 = vcmp.eq.f32.partialorder %v8021_v40, %v8033_v42  ;;  %v4468_v61 = vrot.slane %v4467_v45, 1  ;;  %5594 = vbcast.lane.b32.xlu0 %v8033_v42, 256 }
0x20bb   :  { %v4476_v59 = vmax.f32 %v4474_v17, %v4475_v54  ;;  %v4469_v63 = vmax.f32 %v4467_v45, %v4468_v61 }
0x20bd   :  { %v4478_v16 = vsub.f32 %v4462_v62, %v4476_v59  ;;  %v4477_v8 = vsub.f32 %v4461_v0, %v4469_v63 }
0x20bf   :  { %v4481_v19 = vmul.f32 1.442695, %v4478_v16  ;;  %v4479_v3 = vmul.f32 1.442695, %v4477_v8 }
0x20c1   :  { %6857 = vpow2.f32 %v4481_v19 }
0x20c2   :  { %6859 = vpow2.f32 %v4479_v3 }
0x20cb   :  { %v6858_v11 = vpop.eup %6857 }
0x20cc   :  { %v6860_v15 = vpop.eup %6859  ;;  %v4490_v34 = vsel %vm345_vm13, %v6858_v11, 0.0 }
0x20cd   :  { %v4483_v9 = vsel %vm345_vm13, %v6860_v15, 0.0  ;;  %v4491_v12 = vrot.slane %v4490_v34, 4  ;;  %v5517_v15 = vrot.slane %v7832_v60, %v7835_v58 }
0x20ce   :  { %v4484_v43 = vrot.slane %v4483_v9, 4 }
0x20cf   :  { %v4492_v6 = vadd.f32 %v4491_v12, %v4490_v34  ;;  %v5518_v34 = vcombine.high %v5517_v15, %v5517_v15  ;;  %v5525_v12 = vrot.slane %v5517_v15, %v7835_v58 }
0x20d0   :  { %v4485_v30 = vadd.f32 %v4484_v43, %v4483_v9 }
0x20d1   :  { %v4493_v1 = vrot.slane %v4492_v6, 2  ;;  %v5532_v9 = vrot.slane %v5518_v34, %v7835_v58 }
0x20d2   :  { %v4486_v2 = vrot.slane %v4485_v30, 2 }
0x20d3   :  { %v4494_v13 = vadd.f32 %v4493_v1, %v4492_v6  ;;  %v5540_v43 = vrot.slane %v5532_v9, %v7802_v32  ;;  %v5536_v6 = vrot.slane %v5525_v12, %v7802_v32 }
0x20d4   :  { %v4487_v17 = vadd.f32 %v4486_v2, %v4485_v30 }
0x20d5   :  { %v4495_v62 = vrot.slane %v4494_v13, 1  ;;  %v8050_v30 = vadd.f32 %v5540_v43, %v7793_v27 }
0x20d6   :  { %v4488_v0 = vrot.slane %v4487_v17, 1 }
0x20d7   :  { %v4496_v45 = vadd.f32 %v4495_v62, %v4494_v13 }
0x20d8   :  { %v4489_v54 = vadd.f32 %v4488_v0, %v4487_v17 }
0x20d9   :  { %6861 = vlog2.f32 %v4496_v45 }
0x20da   :  { %6863 = vlog2.f32 %v4489_v54 }
0x20e3   :  { %v6862_v61 = vpop.eup %6861 }
0x20e4   :  { %v6864_v16 = vpop.eup %6863  ;;  %v4500_v8 = vmul.f32 0.6931472, %v6862_v61 }
0x20e5   :  { %v4498_v19 = vmul.f32 0.6931472, %v6864_v16 }
0x20e6   :  { %v4502_v3 = vadd.f32 %v4500_v8, %v4476_v59  ;;  %v8053_v59 = vadd.f32 %v5536_v6, %v7793_v27 }
0x20e7   :  { %v4501_v11 = vadd.f32 %v4498_v19, %v4469_v63  ;;  %v6044_v19 = vld [vmem:[%s8422_s21] ss:$0 sm:$0xff] }
0x20e8   :  { %4677 = vbcast.lane.b32.xlu1 %v4502_v3, 256 }
0x20e9   :  { %4674 = vbcast.lane.b32.xlu0 %v4501_v11, 256 }
0x212b   :  { %v5598_v63 = vpop.permute.xlu1 %5597  ;;  %v5595_v1 = vpop.permute.xlu0 %5594 }
0x212c   :  { %v8056_v2 = vadd.f32 %v5598_v63, %v8050_v30  ;;  %v8059_v13 = vadd.f32 %v5595_v1, %v8053_v59 }
0x212e   :  { %v5608_v58 = vsel %vm345_vm13, %v8056_v2, -inf  ;;  %v5601_v32 = vsel %vm345_vm13, %v8059_v13, -inf }
0x212f   :  { %v5609_v17 = vrot.slane %v5608_v58, 4  ;;  %v5602_v62 = vrot.slane %v5601_v32, 4 }
0x2131   :  { %v5610_v0 = vmax.f32 %v5608_v58, %v5609_v17  ;;  %v5603_v45 = vmax.f32 %v5601_v32, %v5602_v62 }
0x2133   :  { %v5611_v27 = vrot.slane %v5610_v0, 2  ;;  %v5604_v54 = vrot.slane %v5603_v45, 2 }
0x2135   :  { %v5612_v61 = vmax.f32 %v5610_v0, %v5611_v27  ;;  %v5605_v16 = vmax.f32 %v5603_v45, %v5604_v54 }
0x2137   :  { %v5613_v8 = vrot.slane %v5612_v61, 1  ;;  %v5606_v3 = vrot.slane %v5605_v16, 1 }
0x2139   :  { %v8068_v11 = vmax.f32 %v5612_v61, %v5613_v8  ;;  %v8070_v15 = vmax.f32 %v5605_v16, %v5606_v3 }
0x213b   :  { %vm5616_vm15 = vcmp.eq.f32.partialorder %v8056_v2, %v8068_v11  ;;  %v5698_v34 = vadd.f32 %v6044_v19, %v8068_v11  ;;  %vm5615_vm0 = vcmp.eq.f32.partialorder %v8059_v13, %v8070_v15  ;;  %v5697_v9 = vadd.f32 %v6044_v19, %v8070_v15 }
0x213d   :  { %v5701_v12 = vrot.slane %v5698_v34, 7 }
0x213f   :  { %v5702_v43 = vsel %vm5655_vm2, %v5701_v12, %v5697_v9 }
0x2140   :  { %v5704_v6 = vsel %vm4123_vm1, %v5702_v43, -inf }
0x2141   :  { %5705 = vmax.xlane.f32.xlu1 %v5704_v6 }
0x215b   :  { %v4675_v63 = vpop.permute.xlu0 %4674 }
0x215c   :  { %v4679_v1 = vadd.f32 %v4675_v63, %v7917_v53  ;;  %v4678_v63 = vpop.permute.xlu1 %4677 }
0x215e   :  { %v4681_v58 = vsel %vm345_vm13, %v4679_v1, -inf }
0x215f   :  { %v4682_v32 = vrot.slane %v4681_v58, 4 }
0x2161   :  { %v4683_v17 = vmax.f32 %v4681_v58, %v4682_v32  ;;  %v4680_v58 = vadd.f32 %v4678_v63, %v7914_v46 }
0x2163   :  { %v4684_v62 = vrot.slane %v4683_v17, 2 }
0x2165   :  { %v4685_v0 = vmax.f32 %v4683_v17, %v4684_v62  ;;  %v4688_v62 = vsel %vm345_vm13, %v4680_v58, -inf }
0x2167   :  { %v4686_v45 = vrot.slane %v4685_v0, 1 }
0x2169   :  { %v4687_v27 = vmax.f32 %v4685_v0, %v4686_v45  ;;  %v4689_v0 = vrot.slane %v4688_v62, 4 }
0x216b   :  { %v4695_v54 = vsub.f32 %v4679_v1, %v4687_v27  ;;  %v4690_v45 = vmax.f32 %v4688_v62, %v4689_v0 }
0x216d   :  { %v4697_v61 = vmul.f32 1.442695, %v4695_v54  ;;  %v4691_v54 = vrot.slane %v4690_v45, 2 }
0x216f   :  { %6865 = vpow2.f32 %v4697_v61  ;;  %v4692_v61 = vmax.f32 %v4690_v45, %v4691_v54 }
0x2179   :  { %v6866_v16 = vpop.eup %6865 }
0x217a   :  { %v4701_v8 = vsel %vm345_vm13, %v6866_v16, 0.0  ;;  %v4693_v16 = vrot.slane %v4692_v61, 1 }
0x217b   :  { %v4702_v19 = vrot.slane %v4701_v8, 4 }
0x217d   :  { %v4703_v3 = vadd.f32 %v4702_v19, %v4701_v8  ;;  %v4694_v8 = vmax.f32 %v4692_v61, %v4693_v16 }
0x217f   :  { %v4704_v12 = vrot.slane %v4703_v3, 2  ;;  %v4696_v19 = vsub.f32 %v4680_v58, %v4694_v8 }
0x2181   :  { %v4705_v43 = vadd.f32 %v4704_v12, %v4703_v3  ;;  %v4699_v3 = vmul.f32 1.442695, %v4696_v19 }
0x2183   :  { %v4706_v6 = vrot.slane %v4705_v43, 1 }
0x2185   :  { %v4707_v53 = vadd.f32 %v4706_v6, %v4705_v43 }
0x2187   :  { %6867 = vlog2.f32 %v4707_v53 }
0x2188   :  { %6869 = vpow2.f32 %v4699_v3 }
0x2191   :  { %v6868_v32 = vpop.eup %6867 }
0x2192   :  { %v4716_v17 = vmul.f32 0.6931472, %v6868_v32  ;;  %v6870_v12 = vpop.eup %6869 }
0x2193   :  { %v4708_v43 = vsel %vm345_vm13, %v6870_v12, 0.0 }
0x2194   :  { %v4719_v1 = vadd.f32 %v4716_v17, %v4687_v27  ;;  %v4709_v6 = vrot.slane %v4708_v43, 4 }
0x2196   :  { %4892 = vbcast.lane.b32.xlu1 %v4719_v1, 256  ;;  %v4710_v46 = vadd.f32 %v4709_v6, %v4708_v43 }
0x2198   :  { %v4711_v63 = vrot.slane %v4710_v46, 2 }
0x219a   :  { %v4712_v17 = vadd.f32 %v4711_v63, %v4710_v46 }
0x219c   :  { %v4713_v45 = vrot.slane %v4712_v17, 1 }
0x219e   :  { %v4714_v16 = vadd.f32 %v4713_v45, %v4712_v17 }
0x21a0   :  { %6871 = vlog2.f32 %v4714_v16 }
0x21aa   :  { %v6872_v19 = vpop.eup %6871 }
0x21ab   :  { %v4718_v3 = vmul.f32 0.6931472, %v6872_v19 }
0x21ce   :  { %v5706_v53 = vpop.xlane.xlu1 %5705 }
0x21cf   :  { %v5708_v32 = vrot.slane %v5706_v53, 1  ;;  %vm5711_vm4 = vcmp.eq.f32.partialorder %v5697_v9, %v5706_v53  ;;  %v4720_v9 = vadd.f32 %v4718_v3, %v4694_v8 }
0x21d0   :  { %v5713_v1 = vsel %vm5711_vm4, %v7129_v28, 8 }
0x21d1   :  { %vm5712_vm3 = vcmp.eq.f32.partialorder %v5698_v34, %v5708_v32 }
0x21d2   :  { %v5714_v27 = vsel %vm5712_vm3, %v7129_v28, 8 }
0x21d3   :  { %v5715_v62 = vrot.slane %v5714_v27, 7 }
0x21d5   :  { %v5716_v58 = vsel %vm5655_vm2, %v5715_v62, %v5713_v1 }
0x21d6   :  { %v5717_v0 = vsel %vm4123_vm1, %v5716_v58, 2147483647 }
0x21d7   :  { %v5719_v54 = vshra.s32 %v5717_v0, 16  ;;  %v5718_v62 = vand.u32 65535, %v5717_v0 }
0x21d9   :  { %v5721_v61 = vcvt.s32.f32 %v5719_v54  ;;  %v5720_v58 = vcvt.s32.f32 %v5718_v62 }
0x21db   :  { %5722 = vmin.xlane.f32.xlu0 %v5721_v61 }
0x21f1   :  { %4895 = vbcast.lane.b32.xlu0 %v4720_v9, 256 }
0x2208   :  { %v4893_v34 = vpop.permute.xlu1 %4892 }
0x2209   :  { %v4897_v12 = vadd.f32 %v4893_v34, %v7949_v35 }
0x220b   :  { %v4899_v43 = vsel %vm345_vm13, %v4897_v12, -inf }
0x220c   :  { %v4900_v6 = vrot.slane %v4899_v43, 4 }
0x220e   :  { %v4901_v46 = vmax.f32 %v4899_v43, %v4900_v6 }
0x2210   :  { %v4902_v53 = vrot.slane %v4901_v46, 2 }
0x2212   :  { %v4903_v63 = vmax.f32 %v4901_v46, %v4902_v53 }
0x2214   :  { %v4904_v32 = vrot.slane %v4903_v63, 1 }
0x2216   :  { %v4905_v27 = vmax.f32 %v4903_v63, %v4904_v32 }
0x2218   :  { %v4913_v1 = vsub.f32 %v4897_v12, %v4905_v27 }
0x221a   :  { %v4915_v45 = vmul.f32 1.442695, %v4913_v1 }
0x221c   :  { %6873 = vpow2.f32 %v4915_v45 }
0x2226   :  { %v6874_v12 = vpop.eup %6873 }
0x2227   :  { %v4919_v46 = vsel %vm345_vm13, %v6874_v12, 0.0 }
0x2228   :  { %v4920_v53 = vrot.slane %v4919_v46, 4 }
0x222a   :  { %v4921_v63 = vadd.f32 %v4920_v53, %v4919_v46  ;;  %v5617_v53 = vsel %vm5615_vm0, %v7125_v21, 8 }
0x222c   :  { %v4922_v32 = vrot.slane %v4921_v63, 2 }
0x222e   :  { %v4923_v1 = vadd.f32 %v4922_v32, %v4921_v63  ;;  %v5619_v32 = vsel %vm345_vm13, %v5617_v53, 2147483647 }
0x2230   :  { %v4924_v45 = vrot.slane %v4923_v1, 1 }
0x2268   :  { %v8092_v17 = vpop.xlane.xlu0 %5722 }
0x2269   :  { %vm5724_vm3 = vcmp.eq.f32.partialorder %v5721_v61, %v8092_v17  ;;  %v5729_v2 = vcvt.f32.s32 %v8092_v17 }
0x226a   :  { %v5725_v8 = vsel %vm5724_vm3, %v5720_v58, inf }
0x226b   :  { %5726 = vmin.xlane.f32.xlu1 %v5725_v8 }
0x226c   :  { %v4896_v54 = vpop.permute.xlu0 %4895 }
0x226d   :  { %v4898_v35 = vadd.f32 %v4896_v54, %v7946_v25 }
0x226f   :  { %v4906_v16 = vsel %vm345_vm13, %v4898_v35, -inf }
0x2270   :  { %v4907_v19 = vrot.slane %v4906_v16, 4 }
0x2272   :  { %v4908_v3 = vmax.f32 %v4906_v16, %v4907_v19  ;;  %v4925_v19 = vadd.f32 %v4924_v45, %v4923_v1  ;;  %v5730_v45 = vshll.u32 %v5729_v2, 16 }
0x2274   :  { %v4909_v9 = vrot.slane %v4908_v3, 2 }
0x2276   :  { %v4910_v34 = vmax.f32 %v4908_v3, %v4909_v9 }
0x2278   :  { %v4911_v0 = vrot.slane %v4910_v34, 1 }
0x227a   :  { %v4912_v43 = vmax.f32 %v4910_v34, %v4911_v0 }
0x227c   :  { %v4914_v6 = vsub.f32 %v4898_v35, %v4912_v43 }
0x227e   :  { %v4917_v61 = vmul.f32 1.442695, %v4914_v6 }
0x2280   :  { %6875 = vpow2.f32 %v4917_v61  ;;  %v5618_v61 = vsel %vm5616_vm15, %v7125_v21, 8 }
0x2281   :  { %6877 = vlog2.f32 %v4925_v19  ;;  %v5629_v63 = vsel %vm345_vm13, %v5618_v61, 2147483647 }
0x228a   :  { %v6876_v62 = vpop.eup %6875 }
0x228b   :  { %v4926_v25 = vsel %vm345_vm13, %v6876_v62, 0.0  ;;  %v6878_v35 = vpop.eup %6877  ;;  %v5630_v62 = vrot.slane %v5629_v63, 4 }
0x228c   :  { %v4927_v58 = vrot.slane %v4926_v25, 4  ;;  %v4934_v6 = vmul.f32 0.6931472, %v6878_v35 }
0x228d   :  { %vm5631_vm4 = vcmp.lt.s32.totalorder %v5629_v63, %v5630_v62 }
0x228e   :  { %v4928_v8 = vadd.f32 %v4927_v58, %v4926_v25  ;;  %v4937_v46 = vadd.f32 %v4934_v6, %v4905_v27  ;;  %v5632_v27 = vsel %vm5631_vm4, %v5629_v63, %v5630_v62 }
0x228f   :  { %v5633_v1 = vrot.slane %v5632_v27, 2 }
0x2290   :  { %v4929_v54 = vrot.slane %v4928_v8, 2 }
0x2291   :  { %vm5634_vm6 = vcmp.lt.s32.totalorder %v5632_v27, %v5633_v1 }
0x2292   :  { %v4930_v16 = vadd.f32 %v4929_v54, %v4928_v8  ;;  %v5635_v11 = vsel %vm5634_vm6, %v5632_v27, %v5633_v1 }
0x2293   :  { %v5636_v15 = vrot.slane %v5635_v11, 1 }
0x2294   :  { %v4931_v3 = vrot.slane %v4930_v16, 1 }
0x2295   :  { %vm5637_vm15 = vcmp.lt.s32.totalorder %v5635_v11, %v5636_v15 }
0x2296   :  { %v4932_v9 = vadd.f32 %v4931_v3, %v4930_v16  ;;  %v8493_v3 = vmov 0  }
0x2298   :  { %6879 = vlog2.f32 %v4932_v9 }
0x22a2   :  { %v6880_v34 = vpop.eup %6879 }
0x22a3   :  { %v4936_v0 = vmul.f32 0.6931472, %v6880_v34  ;;  %v5638_v34 = vsel %vm5637_vm15, %v5635_v11, %v5636_v15 }
0x22a5   :  { %v4938_v12 = vadd.f32 %v4936_v0, %v4912_v43  ;;  %v5620_v43 = vrot.slane %v5619_v32, 4 }
0x22a7   :  { %5113 = vbcast.lane.b32.xlu0 %v4938_v12, 256  ;;  %vm5621_vm3 = vcmp.lt.s32.totalorder %v5619_v32, %v5620_v43 }
0x22a8   :  { %v5622_v25 = vsel %vm5621_vm3, %v5619_v32, %v5620_v43 }
0x22a9   :  { %v5623_v58 = vrot.slane %v5622_v25, 2 }
0x22ab   :  { %5110 = vbcast.lane.b32.xlu0 %v4937_v46, 256  ;;  %vm5624_vm5 = vcmp.lt.s32.totalorder %v5622_v25, %v5623_v58 }
0x22ac   :  { %v5625_v8 = vsel %vm5624_vm5, %v5622_v25, %v5623_v58 }
0x22ad   :  { %v5626_v16 = vrot.slane %v5625_v8, 1 }
0x22af   :  { %vm5627_vm4 = vcmp.lt.s32.totalorder %v5625_v8, %v5626_v16 }
0x22b0   :  { %v5628_v17 = vsel %vm5627_vm4, %v5625_v8, %v5626_v16 }
0x22f8   :  { %v5727_v13 = vpop.xlane.xlu1 %5726 }
0x22f9   :  { %v5728_v54 = vcvt.f32.s32 %v5727_v13 }
0x22fb   :  { %v8110_v19 = vadd.s32 %v5730_v45, %v5728_v54 }
0x22fd   :  { %vm5732_vm0 = vcmp.eq.s32.totalorder %v7129_v28, %v8110_v19 }
0x22fe   :  { %v5733_v9 = vsel %vm5732_vm0, 1, %v8493_v3 }
0x22ff   :  { %v5734_v35 = vrot.slane %v5733_v9, 1  ;;  %v5735_v12 = vmul.u32 %v5733_v9, %v5628_v17 }
0x2301   :  { %v5736_v0 = vmul.u32 %v5734_v35, %v5638_v34 }
0x2303   :  { %v5737_v6 = vrot.slane %v5736_v0, 7 }
0x2305   :  { %v5738_v46 = vsel %vm5655_vm2, %v5737_v6, %v5735_v12 }
0x2306   :  { %v5739_v61 = vsel %vm4123_vm1, %v5738_v46, 0 }
0x2307   :  { %v5741_v53 = vshrl.u32 %v5739_v61, 16  ;;  %v5740_v63 = vand.u32 65535, %v5739_v61 }
0x2309   :  { %v5743_v32 = vcvt.s32.f32 %v5741_v53  ;;  %v5742_v62 = vcvt.s32.f32 %v5740_v63 }
0x230b   :  { %5746 = vadd.xlane.f32.xlu0 %v5743_v32  ;;  %5744 = vadd.xlane.f32.xlu1 %v5742_v62 }
0x2319   :  { %v5114_v43 = vpop.permute.xlu0 %5113 }
0x231a   :  { %v5116_v27 = vadd.f32 %v5114_v43, %v7978_v5 }
0x231c   :  { %v5124_v25 = vsel %vm345_vm13, %v5116_v27, -inf }
0x231d   :  { %v5125_v1 = vrot.slane %v5124_v25, 4  ;;  %v5111_v58 = vpop.permute.xlu0 %5110 }
0x231e   :  { %v5115_v2 = vadd.f32 %v5111_v58, %v7981_v29 }
0x231f   :  { %v5126_v11 = vmax.f32 %v5124_v25, %v5125_v1 }
0x2320   :  { %v5117_v8 = vsel %vm345_vm13, %v5115_v2, -inf }
0x2321   :  { %v5127_v13 = vrot.slane %v5126_v11, 2  ;;  %v5118_v15 = vrot.slane %v5117_v8, 4 }
0x2323   :  { %v5128_v45 = vmax.f32 %v5126_v11, %v5127_v13  ;;  %v5119_v54 = vmax.f32 %v5117_v8, %v5118_v15 }
0x2325   :  { %v5129_v16 = vrot.slane %v5128_v45, 1  ;;  %v5120_v9 = vrot.slane %v5119_v54, 2 }
0x2327   :  { %v5130_v35 = vmax.f32 %v5128_v45, %v5129_v16  ;;  %v5121_v34 = vmax.f32 %v5119_v54, %v5120_v9  ;;  %v4106_v54 = vld [vmem:[%s8494_s2] sm:$0x3] }
0x2328   :  { %vm4107_vm5 = vcmp.eq.s32.totalorder %v4106_v54, 4294967196 }
0x2329   :  { %v5132_v0 = vsub.f32 %v5116_v27, %v5130_v35  ;;  %v5122_v17 = vrot.slane %v5121_v34, 1 }
0x232b   :  { %v5135_v5 = vmul.f32 1.442695, %v5132_v0  ;;  %v5123_v12 = vmax.f32 %v5121_v34, %v5122_v17  ;;  %v8126_v17 = vsel %vm4107_vm5, 2, %v4106_v54 }
0x232d   :  { %6881 = vpow2.f32 %v5135_v5  ;;  %v5131_v6 = vsub.f32 %v5115_v2, %v5123_v12 }
0x232f   :  { %v5133_v46 = vmul.f32 1.442695, %v5131_v6  ;;  %v6958_v6 = vmov 2  }
0x2331   :  { %6883 = vpow2.f32 %v5133_v46  ;;  %v6959_v46 = vmov 4  }
0x2337   :  { %v6882_v29 = vpop.eup %6881 }
0x2338   :  { %v5144_v61 = vsel %vm345_vm13, %v6882_v29, 0.0  ;;  %v6960_v29 = vmov 3  }
0x2339   :  { %v5145_v53 = vrot.slane %v5144_v61, 4 }
0x233b   :  { %v6884_v63 = vpop.eup %6883  ;;  %v5146_v32 = vadd.f32 %v5145_v53, %v5144_v61 }
0x233c   :  { %v5137_v62 = vsel %vm345_vm13, %v6884_v63, 0.0 }
0x233d   :  { %v5147_v43 = vrot.slane %v5146_v32, 2  ;;  %v5138_v25 = vrot.slane %v5137_v62, 4 }
0x233f   :  { %v5148_v1 = vadd.f32 %v5147_v43, %v5146_v32  ;;  %v5139_v58 = vadd.f32 %v5138_v25, %v5137_v62 }
0x2341   :  { %v5149_v27 = vrot.slane %v5148_v1, 1  ;;  %v5140_v11 = vrot.slane %v5139_v58, 2 }
0x2343   :  { %v5150_v8 = vadd.f32 %v5149_v27, %v5148_v1  ;;  %v5141_v13 = vadd.f32 %v5140_v11, %v5139_v58 }
0x2345   :  { %6885 = vlog2.f32 %v5150_v8  ;;  %v5142_v2 = vrot.slane %v5141_v13, 1 }
0x2347   :  { %v5143_v15 = vadd.f32 %v5142_v2, %v5141_v13 }
0x2349   :  { %6887 = vlog2.f32 %v5143_v15 }
0x234f   :  { %v6886_v45 = vpop.eup %6885 }
0x2350   :  { %v5154_v16 = vmul.f32 0.6931472, %v6886_v45 }
0x2352   :  { %v5156_v9 = vadd.f32 %v5154_v16, %v5130_v35  ;;  %v5400_v35 = vsel %vm5398_vm11, %v7125_v21, 8 }
0x2353   :  { %v6888_v34 = vpop.eup %6887  ;;  %v5411_v61 = vsel %vm345_vm13, %v5400_v35, 2147483647 }
0x2354   :  { %5331 = vbcast.lane.b32.xlu1 %v5156_v9, 256  ;;  %v5152_v0 = vmul.f32 0.6931472, %v6888_v34  ;;  %v5412_v63 = vrot.slane %v5411_v61, 4 }
0x2356   :  { %v5155_v5 = vadd.f32 %v5152_v0, %v5123_v12  ;;  %v5399_v12 = vsel %vm5397_vm14, %v7125_v21, 8  ;;  %vm5413_vm6 = vcmp.lt.s32.totalorder %v5411_v61, %v5412_v63 }
0x2357   :  { %v5401_v53 = vsel %vm345_vm13, %v5399_v12, 2147483647  ;;  %v5414_v62 = vsel %vm5413_vm6, %v5411_v61, %v5412_v63  ;;  %v6961_v61 = vmov 5  }
0x2358   :  { %5328 = vbcast.lane.b32.xlu0 %v5155_v5, 256  ;;  %4112 = vperm.xlu1 %6750, %v8126_v17   ;;  %v5402_v32 = vrot.slane %v5401_v53, 4  ;;  %v5415_v25 = vrot.slane %v5414_v62, 2 }
0x235a   :  { %vm5403_vm3 = vcmp.lt.s32.totalorder %v5401_v53, %v5402_v32  ;;  %vm5416_vm15 = vcmp.lt.s32.totalorder %v5414_v62, %v5415_v25 }
0x235b   :  { %v5404_v43 = vsel %vm5403_vm3, %v5401_v53, %v5402_v32  ;;  %v5417_v10 = vsel %vm5416_vm15, %v5414_v62, %v5415_v25  ;;  %v6962_v53 = vmov 6  }
0x235c   :  { %4128 = vperm.xlu0 %6747, %v8126_v17   ;;  %6751 = vset.pattern.permute.xlu1 %v6958_v6  ;;  %v5405_v1 = vrot.slane %v5404_v43, 2  ;;  %v5418_v42 = vrot.slane %v5417_v10, 1 }
0x235d   :  { %4332 = vperm.xlu1 %6751, %v8126_v17  }
0x235e   :  { %vm5406_vm0 = vcmp.lt.s32.totalorder %v5404_v43, %v5405_v1  ;;  %vm5419_vm11 = vcmp.lt.s32.totalorder %v5417_v10, %v5418_v42 }
0x235f   :  { %v5407_v40 = vsel %vm5406_vm0, %v5404_v43, %v5405_v1  ;;  %v5420_v54 = vsel %vm5419_vm11, %v5417_v10, %v5418_v42  ;;  %v8495_v43 = vmov 0.0   ;;  %v8161_v10 = vld [vmem:[%s8421_s20] sm:$0xff] }
0x2360   :  { %6753 = vset.pattern.permute.xlu0 %v6959_v46  ;;  %v5408_v13 = vrot.slane %v5407_v40, 1 }
0x2361   :  { %6752 = vset.pattern.permute.xlu1 %v6960_v29 }
0x2362   :  { %vm5409_vm4 = vcmp.lt.s32.totalorder %v5407_v40, %v5408_v13 }
0x2363   :  { %v5410_v9 = vsel %vm5409_vm4, %v5407_v40, %v5408_v13 }
0x2398   :  { %v5747_v41 = vpop.xlane.xlu0 %5746  ;;  %v5745_v58 = vpop.xlane.xlu1 %5744 }
0x2399   :  { %v5749_v27 = vcvt.f32.s32 %v5747_v41  ;;  %v5748_v8 = vcvt.f32.s32 %v5745_v58 }
0x239b   :  { %v5750_v11 = vshll.u32 %v5749_v27, 16 }
0x239d   :  { %v8141_v2 = vadd.s32 %v5750_v11, %v5748_v8 }
0x239f   :  { %vm5752_vm14 = vcmp.eq.s32.totalorder %v7129_v28, %v8141_v2 }
0x23a0   :  { %v5753_v15 = vsel %vm5752_vm14, 1, %v8493_v3 }
0x23a1   :  { %v5754_v45 = vrot.slane %v5753_v15, 1  ;;  %v5755_v34 = vmul.u32 %v5753_v15, %v5410_v9 }
0x23a3   :  { %v5756_v16 = vmul.u32 %v5754_v45, %v5420_v54 }
0x23a5   :  { %v5757_v0 = vrot.slane %v5756_v16, 7 }
0x23a7   :  { %v5758_v5 = vsel %vm5655_vm2, %v5757_v0, %v5755_v34 }
0x23a8   :  { %v5759_v6 = vsel %vm4123_vm1, %v5758_v5, 0 }
0x23a9   :  { %v5761_v46 = vshrl.u32 %v5759_v6, 16  ;;  %v5760_v29 = vand.u32 65535, %v5759_v6 }
0x23ab   :  { %v5763_v35 = vcvt.s32.f32 %v5761_v46  ;;  %v5762_v12 = vcvt.s32.f32 %v5760_v29 }
0x23ad   :  { %5766 = vadd.xlane.f32.xlu1 %v5763_v35  ;;  %5764 = vadd.xlane.f32.xlu0 %v5762_v12  ;;  %v5182_v12 = vsel %vm5180_vm9, %v7125_v21, 8 }
0x23be   :  { %4550 = vperm.xlu1 %6752, %v8126_v17  }
0x23c2   :  { %6754 = vset.pattern.permute.xlu1 %v6961_v61  ;;  %v5181_v61 = vsel %vm5179_vm10, %v7125_v21, 8 }
0x23c3   :  { %4986 = vperm.xlu1 %6754, %v8126_v17   ;;  %4768 = vperm.xlu0 %6753, %v8126_v17  }
0x23c6   :  { %v5332_v63 = vpop.permute.xlu1 %5331 }
0x23c7   :  { %6755 = vset.pattern.permute.xlu1 %v6962_v53  ;;  %v5334_v11 = vadd.f32 %v5332_v63, %v8012_v31  ;;  %v5193_v53 = vsel %vm345_vm13, %v5182_v12, 2147483647 }
0x23c8   :  { %5204 = vperm.xlu1 %6755, %v8126_v17  }
0x23c9   :  { %v5342_v13 = vsel %vm345_vm13, %v5334_v11, -inf }
0x23ca   :  { %v5329_v32 = vpop.permute.xlu0 %5328  ;;  %v5343_v45 = vrot.slane %v5342_v13, 4 }
0x23cb   :  { %v5333_v40 = vadd.f32 %v5329_v32, %v8015_v22  ;;  %v5183_v32 = vsel %vm345_vm13, %v5181_v61, 2147483647 }
0x23cc   :  { %v5344_v16 = vmax.f32 %v5342_v13, %v5343_v45 }
0x23cd   :  { %v5335_v42 = vsel %vm345_vm13, %v5333_v40, -inf }
0x23ce   :  { %v5336_v8 = vrot.slane %v5335_v42, 4  ;;  %v5345_v34 = vrot.slane %v5344_v16, 2 }
0x23d0   :  { %v5337_v15 = vmax.f32 %v5335_v42, %v5336_v8  ;;  %v5346_v5 = vmax.f32 %v5344_v16, %v5345_v34 }
0x23d2   :  { %v5338_v54 = vrot.slane %v5337_v15, 2  ;;  %v5347_v46 = vrot.slane %v5346_v5, 1 }
0x23d4   :  { %v5339_v9 = vmax.f32 %v5337_v15, %v5338_v54  ;;  %v8194_v29 = vmax.f32 %v5346_v5, %v5347_v46 }
0x23d6   :  { %v5340_v0 = vrot.slane %v5339_v9, 1  ;;  %v5350_v31 = vsub.f32 %v5334_v11, %v8194_v29 }
0x23d7   :  { %v4113_v62 = vpop.permute.xlu1 %4112 }
0x23d8   :  { %vm4114_vm5 = vcmp.eq.s32.totalorder %v7129_v28, %v4113_v62  ;;  %v8191_v6 = vmax.f32 %v5339_v9, %v5340_v0  ;;  %v5353_v63 = vmul.f32 1.442695, %v5350_v31  ;;  %v5194_v62 = vrot.slane %v5193_v53, 4 }
0x23d9   :  { %v8154_v25 = vsel %vm4114_vm5, 1.0, %v8495_v43 }
0x23da   :  { %6546 = vmatmul.mubr.msk.f32.vlgmr.msra.gmra.mrb[46].mxu0 %vm345_vm13, %v8154_v25  ;;  %v5349_v22 = vsub.f32 %v5333_v40, %v8191_v6  ;;  %vm5195_vm15 = vcmp.lt.s32.totalorder %v5193_v53, %v5194_v62 }
0x23db   :  { %v4129_v1 = vpop.permute.xlu0 %4128  ;;  %6549 = vmatpush3.msra.mxu0 %v8161_v10  ;;  %6550 = vmatprep.mubr.msk.f32.mxu0 %vm6942_vm12, %v8495_v43  ;;  %v5196_v40 = vsel %vm5195_vm15, %v5193_v53, %v5194_v62 }
0x23dc   :  { %vm4130_vm6 = vcmp.eq.s32.totalorder %v7129_v28, %v4129_v1  ;;  %v4333_v41 = vpop.permute.xlu1 %4332  ;;  %6553 = vmatprep.subr.mxu0 %v8495_v43  ;;  %v5351_v35 = vmul.f32 1.442695, %v5349_v22  ;;  %v5184_v1 = vrot.slane %v5183_v32, 4  ;;  %v5197_v42 = vrot.slane %v5196_v40, 2 }
0x23dd   :  { %v8169_v58 = vsel %vm4130_vm6, 1.0, %v8495_v43  ;;  %vm4334_vm3 = vcmp.eq.s32.totalorder %v7129_v28, %v4333_v41 }
0x23de   :  { %6551 = vmatmul.mubr.msk.f32.vlgmr.msra.gmra.mrb[48].mxu0 %vm345_vm13, %v8169_v58  ;;  %v8179_v27 = vsel %vm4334_vm3, 1.0, %v8495_v43  ;;  %6889 = vpow2.f32 %v5351_v35  ;;  %vm5185_vm0 = vcmp.lt.s32.totalorder %v5183_v32, %v5184_v1  ;;  %vm5198_vm9 = vcmp.lt.s32.totalorder %v5196_v40, %v5197_v42 }
0x23df   :  { %6554 = vmatpush3.msra.mxu0 %v8161_v10  ;;  %6555 = vmatprep.mubr.msk.f32.mxu0 %vm6942_vm12, %v8495_v43  ;;  %6891 = vpow2.f32 %v5353_v63  ;;  %v5186_v33 = vsel %vm5185_vm0, %v5183_v32, %v5184_v1  ;;  %v5199_v15 = vsel %vm5198_vm9, %v5196_v40, %v5197_v42 }
0x23e0   :  { %6558 = vmatprep.subr.mxu0 %v8495_v43  ;;  %v5187_v36 = vrot.slane %v5186_v33, 2  ;;  %v5200_v0 = vrot.slane %v5199_v15, 1 }
0x23e2   :  { %6556 = vmatmul.mubr.msk.f32.vlgmr.msra.gmra.mrb[50].mxu0 %vm345_vm13, %v8179_v27  ;;  %vm5188_vm10 = vcmp.lt.s32.totalorder %v5186_v33, %v5187_v36  ;;  %vm5201_vm14 = vcmp.lt.s32.totalorder %v5199_v15, %v5200_v0 }
0x23e3   :  { %6559 = vmatpush3.msra.mxu0 %v8161_v10  ;;  %6560 = vmatprep.mubr.msk.f32.mxu0 %vm6942_vm12, %v8495_v43  ;;  %v5189_v34 = vsel %vm5188_vm10, %v5186_v33, %v5187_v36  ;;  %v5202_v33 = vsel %vm5201_vm14, %v5199_v15, %v5200_v0 }
0x23e4   :  { %6563 = vmatprep.subr.mxu0 %v8495_v43  ;;  %v5190_v12 = vrot.slane %v5189_v34, 1 }
0x23e6   :  { %vm5191_vm5 = vcmp.lt.s32.totalorder %v5189_v34, %v5190_v12 }
0x23e7   :  { %v5192_v36 = vsel %vm5191_vm5, %v5189_v34, %v5190_v12  ;;  %vm8497_vm5 = vcmp.eq.f32.partialorder %v7923_v48, %v7931_v26 }
0x23e8   :  { %v6890_v41 = vpop.eup %6889 }
0x23e9   :  { %v5355_v57 = vsel %vm345_vm13, %v6890_v41, 0.0  ;;  %v6892_v11 = vpop.eup %6891 }
0x23ea   :  { %v5356_v7 = vrot.slane %v5355_v57, 4  ;;  %v5362_v8 = vsel %vm345_vm13, %v6892_v11, 0.0 }
0x23eb   :  { %v5363_v16 = vrot.slane %v5362_v8, 4 }
0x23ec   :  { %v5357_v13 = vadd.f32 %v5356_v7, %v5355_v57 }
0x23ed   :  { %v5364_v31 = vadd.f32 %v5363_v16, %v5362_v8 }
0x23ee   :  { %v5358_v22 = vrot.slane %v5357_v13, 2 }
0x23ef   :  { %v5365_v41 = vrot.slane %v5364_v31, 2 }
0x23f0   :  { %v5359_v63 = vadd.f32 %v5358_v22, %v5357_v13 }
0x23f1   :  { %v5366_v7 = vadd.f32 %v5365_v41, %v5364_v31 }
0x23f2   :  { %v5360_v11 = vrot.slane %v5359_v63, 1 }
0x23f3   :  { %v5367_v0 = vrot.slane %v5366_v7, 1 }
0x23f5   :  { %v5368_v31 = vadd.f32 %v5367_v0, %v5366_v7 }
0x243a   :  { %v5765_v45 = vpop.xlane.xlu0 %5764  ;;  %v5767_v54 = vpop.xlane.xlu1 %5766 }
0x243b   :  { %v5769_v9 = vcvt.f32.s32 %v5767_v54  ;;  %v5768_v5 = vcvt.f32.s32 %v5765_v45  ;;  %v6963_v45 = vmov 7  }
0x243c   :  { %6756 = vset.pattern.permute.xlu0 %v6963_v45 }
0x243d   :  { %v5770_v46 = vshll.u32 %v5769_v9, 16  ;;  %v5361_v9 = vadd.f32 %v5360_v11, %v5359_v63 }
0x243e   :  { %v4551_v35 = vpop.permute.xlu1 %4550 }
0x243f   :  { %v8209_v61 = vadd.s32 %v5770_v46, %v5768_v5  ;;  %vm4552_vm11 = vcmp.eq.s32.totalorder %v7129_v28, %v4551_v35  ;;  %6893 = vlog2.f32 %v5361_v9 }
0x2440   :  { %v8213_v53 = vsel %vm4552_vm11, 1.0, %v8495_v43  ;;  %6895 = vlog2.f32 %v5368_v31 }
0x2441   :  { %vm5772_vm4 = vcmp.eq.s32.totalorder %v7129_v28, %v8209_v61  ;;  %6561 = vmatmul.mubr.msk.f32.vlgmr.msra.gmra.mrb[52].mxu0 %vm345_vm13, %v8213_v53  ;;  %v4555_v45 = vmul.f32 %v8213_v53, %v7817_v52 }
0x2442   :  { %v5773_v32 = vsel %vm5772_vm4, 1, %v8493_v3  ;;  %v4769_v62 = vpop.permute.xlu0 %4768  ;;  %v4987_v1 = vpop.permute.xlu1 %4986  ;;  %6564 = vmatpush3.msra.mxu0 %v8161_v10  ;;  %6565 = vmatprep.mubr.msk.f32.mxu0 %vm6942_vm12, %v8495_v43  ;;  %vm8496_vm4 = vcmp.eq.f32.partialorder %v7920_v56, %v7929_v18 }
0x2443   :  { %v5774_v40 = vrot.slane %v5773_v32, 1  ;;  %vm4770_vm6 = vcmp.eq.s32.totalorder %v7129_v28, %v4769_v62  ;;  %6568 = vmatprep.subr.mxu0 %v8495_v43  ;;  %vm4988_vm3 = vcmp.eq.s32.totalorder %v7129_v28, %v4987_v1  ;;  %v5775_v8 = vmul.u32 %v5773_v32, %v5192_v36 }
0x2444   :  { %v8226_v57 = vsel %vm4770_vm6, 1.0, %v8495_v43  ;;  %v8235_v54 = vsel %vm4988_vm3, 1.0, %v8495_v43 }
0x2445   :  { %v5776_v42 = vmul.u32 %v5774_v40, %v5202_v33  ;;  %6566 = vmatmul.mubr.msk.f32.vlgmr.msra.gmra.mrb[54].mxu0 %vm345_vm13, %v8226_v57  ;;  %v4122_v40 = vmul.f32 %v8154_v25, %v7808_v47  ;;  %v4133_v33 = vmul.f32 %v8169_v58, %v7811_v50  ;;  %v4991_v52 = vmul.f32 %v8235_v54, %v7826_v55 }
0x2446   :  { %6569 = vmatpush3.msra.mxu0 %v8161_v10  ;;  %6570 = vmatprep.mubr.msk.f32.mxu0 %vm6942_vm12, %v8495_v43  ;;  %v4963_v55 = vsel %vm4961_vm8, %v7125_v21, 8 }
0x2447   :  { %v5777_v13 = vrot.slane %v5776_v42, 7  ;;  %v5205_v15 = vpop.permute.xlu1 %5204  ;;  %v4124_v42 = vsel %vm4123_vm1, %v4122_v40, 0.0  ;;  %v4134_v11 = vsel %vm4123_vm1, %v4133_v33, 0.0 }
0x2448   :  { %vm5206_vm15 = vcmp.eq.s32.totalorder %v7129_v28, %v5205_v15 }
0x2449   :  { %v8239_v16 = vsel %vm5206_vm15, 1.0, %v8495_v43  ;;  %6571 = vmatmul.mubr.msk.f32.vlgmr.msra.gmra.mrb[56].mxu0 %vm345_vm13, %v8235_v54  ;;  %v5778_v10 = vsel %vm5655_vm2, %v5777_v13, %v5775_v8  ;;  %v6894_v12 = vpop.eup %6893 }
0x244a   :  { %v5779_v34 = vsel %vm4123_vm1, %v5778_v10, 0  ;;  %6576 = vmatmul.mubr.msk.f32.vlgmr.msra.gmra.mrb[38].mxu1 %vm345_vm13, %v8239_v16  ;;  %v5370_v32 = vmul.f32 0.6931472, %v6894_v12  ;;  %v6896_v62 = vpop.eup %6895 }
0x244b   :  { %v5781_v5 = vshrl.u32 %v5779_v34, 16  ;;  %v5780_v46 = vand.u32 65535, %v5779_v34  ;;  %v5372_v1 = vmul.f32 0.6931472, %v6896_v62 }
0x244c   :  { %v5373_v63 = vadd.f32 %v5370_v32, %v8191_v6 }
0x244d   :  { %v5783_v22 = vcvt.s32.f32 %v5781_v5  ;;  %v5782_v35 = vcvt.s32.f32 %v5780_v46  ;;  %v5374_v41 = vadd.f32 %v5372_v1, %v8194_v29  ;;  %v4337_v29 = vmul.f32 %v8179_v27, %v7814_v51 }
0x244e   :  { %v4556_v51 = vsel %vm4123_vm1, %v4555_v45, 0.0  ;;  %v4992_v5 = vsel %vm4123_vm1, %v4991_v52, 0.0 }
0x244f   :  { %5786 = vadd.xlane.f32.xlu0 %v5783_v22  ;;  %5784 = vadd.xlane.f32.xlu1 %v5782_v35  ;;  %v4338_v25 = vsel %vm4123_vm1, %v4337_v29, 0.0  ;;  %v4965_v35 = vsel %vm345_vm13, %v4963_v55, 2147483647 }
0x2460   :  { %5546 = vbcast.lane.b32.xlu1 %v5373_v63, 256 }
0x2465   :  { %5549 = vbcast.lane.b32.xlu0 %v5374_v41, 256 }
0x2484   :  { %4125 = vadd.xlane.f32.xlu0 %v4124_v42  ;;  %4135 = vadd.xlane.f32.xlu1 %v4134_v11 }
0x24ad   :  { %v4207_v36 = vpop.f32.mrb[46].mxu0 }
0x24ae   :  { %v4211_v6 = vmul.f32 %v8169_v58, %v4207_v36  ;;  %v6547_v7 = vpop.f32.mrb[47].mxu0 }
0x24b0   :  { %v4212_v8 = vsel %vm4123_vm1, %v4211_v6, 0.0 }
0x24b1   :  { %v4411_v13 = vpop.f32.mrb[48].mxu0  ;;  %4213 = vadd.xlane.f32.xlu0 %v4212_v8 }
0x24b2   :  { %v4415_v47 = vmul.f32 %v8179_v27, %v4411_v13  ;;  %v6552_v50 = vpop.f32.mrb[49].mxu0  ;;  %v4773_v27 = vmul.f32 %v8226_v57, %v7820_v14  ;;  %v4964_v14 = vsel %vm4962_vm7, %v7125_v21, 8 }
0x24b3   :  { %v4975_v22 = vsel %vm345_vm13, %v4964_v14, 2147483647 }
0x24b4   :  { %v4416_v15 = vsel %vm4123_vm1, %v4415_v47, 0.0  ;;  %v4774_v0 = vsel %vm4123_vm1, %v4773_v27, 0.0  ;;  %v4976_v31 = vrot.slane %v4975_v22, 4 }
0x24b5   :  { %v4629_v10 = vpop.f32.mrb[50].mxu0  ;;  %4339 = vadd.xlane.f32.xlu0 %v4338_v25  ;;  %4417 = vadd.xlane.f32.xlu1 %v4416_v15 }
0x24b6   :  { %v4633_v58 = vmul.f32 %v8213_v53, %v4629_v10  ;;  %v6557_v9 = vpop.f32.mrb[51].mxu0  ;;  %v5209_v53 = vmul.f32 %v8239_v16, %v7829_v49  ;;  %v4966_v49 = vrot.slane %v4965_v35, 4  ;;  %vm4977_vm12 = vcmp.lt.s32.totalorder %v4975_v22, %v4976_v31 }
0x24b7   :  { %v4978_v12 = vsel %vm4977_vm12, %v4975_v22, %v4976_v31 }
0x24b8   :  { %v4634_v34 = vsel %vm4123_vm1, %v4633_v58, 0.0  ;;  %v5210_v46 = vsel %vm4123_vm1, %v5209_v53, 0.0  ;;  %vm4967_vm0 = vcmp.lt.s32.totalorder %v4965_v35, %v4966_v49  ;;  %v4979_v62 = vrot.slane %v4978_v12, 2 }
0x24b9   :  { %4557 = vadd.xlane.f32.xlu0 %v4556_v51  ;;  %4635 = vadd.xlane.f32.xlu1 %v4634_v34  ;;  %v4968_v32 = vsel %vm4967_vm0, %v4965_v35, %v4966_v49 }
0x24ba   :  { %v4969_v63 = vrot.slane %v4968_v32, 2  ;;  %vm4980_vm9 = vcmp.lt.s32.totalorder %v4978_v12, %v4979_v62 }
0x24bb   :  { %v4981_v20 = vsel %vm4980_vm9, %v4978_v12, %v4979_v62 }
0x24bc   :  { %vm4970_vm7 = vcmp.lt.s32.totalorder %v4968_v32, %v4969_v63  ;;  %v4982_v41 = vrot.slane %v4981_v20, 1 }
0x24bd   :  { %4775 = vadd.xlane.f32.xlu0 %v4774_v0  ;;  %v4971_v1 = vsel %vm4970_vm7, %v4968_v32, %v4969_v63 }
0x24be   :  { %v4972_v42 = vrot.slane %v4971_v1, 1  ;;  %vm4983_vm8 = vcmp.lt.s32.totalorder %v4981_v20, %v4982_v41 }
0x24c0   :  { %vm4973_vm11 = vcmp.lt.s32.totalorder %v4971_v1, %v4972_v42 }
0x24c1   :  { %4993 = vadd.xlane.f32.xlu0 %v4992_v5  ;;  %v4974_v8 = vsel %vm4973_vm11, %v4971_v1, %v4972_v42  ;;  %vm8499_vm11 = vcmp.eq.f32.partialorder %v7891_v24, %v7899_v38 }
0x24c5   :  { %5211 = vadd.xlane.f32.xlu0 %v5210_v46 }
0x24db   :  { %5422 = vperm.xlu0 %6756, %v8126_v17   ;;  %v4984_v17 = vsel %vm4983_vm8, %v4981_v20, %v4982_v41  ;;  %vm5683_vm8 = vcmask 1024  }
0x24dc   :  { %v5787_v4 = vpop.xlane.xlu0 %5786  ;;  %v5785_v39 = vpop.xlane.xlu1 %5784 }
0x24dd   :  { %v5789_v44 = vcvt.f32.s32 %v5787_v4  ;;  %v5788_v33 = vcvt.f32.s32 %v5785_v39 }
0x24df   :  { %v5790_v40 = vshll.u32 %v5789_v44, 16 }
0x24e0   :  { %v5550_v50 = vpop.permute.xlu0 %5549  ;;  %v5547_v15 = vpop.permute.xlu1 %5546 }
0x24e1   :  { %v8287_v11 = vadd.s32 %v5790_v40, %v5788_v33  ;;  %v5552_v25 = vadd.f32 %v5550_v50, %v8050_v30  ;;  %v5551_v10 = vadd.f32 %v5547_v15, %v8053_v59 }
0x24e3   :  { %vm5792_vm10 = vcmp.eq.s32.totalorder %v7129_v28, %v8287_v11  ;;  %v5560_v45 = vsel %vm345_vm13, %v5552_v25, -inf  ;;  %v5553_v9 = vsel %vm345_vm13, %v5551_v10, -inf }
0x24e4   :  { %v5793_v36 = vsel %vm5792_vm10, 1, %v8493_v3  ;;  %v5561_v58 = vrot.slane %v5560_v45, 4  ;;  %v5554_v34 = vrot.slane %v5553_v9, 4  ;;  %vm8498_vm10 = vcmp.eq.f32.partialorder %v7888_v23, %v7897_v37 }
0x24e5   :  { %v5794_v6 = vrot.slane %v5793_v36, 1  ;;  %v5795_v29 = vmul.u32 %v5793_v36, %v4974_v8 }
0x24e6   :  { %v5562_v51 = vmax.f32 %v5560_v45, %v5561_v58  ;;  %v5555_v0 = vmax.f32 %v5553_v9, %v5554_v34 }
0x24e7   :  { %v5796_v7 = vmul.u32 %v5794_v6, %v4984_v17 }
0x24e8   :  { %v5563_v27 = vrot.slane %v5562_v51, 2  ;;  %v5556_v5 = vrot.slane %v5555_v0, 2 }
0x24e9   :  { %v5797_v13 = vrot.slane %v5796_v7, 7 }
0x24ea   :  { %v5564_v52 = vmax.f32 %v5562_v51, %v5563_v27  ;;  %v5557_v46 = vmax.f32 %v5555_v0, %v5556_v5 }
0x24eb   :  { %v5798_v47 = vsel %vm5655_vm2, %v5797_v13, %v5795_v29 }
0x24ec   :  { %v5565_v53 = vrot.slane %v5564_v52, 1  ;;  %v5558_v31 = vrot.slane %v5557_v46, 1  ;;  %v5799_v1 = vsel %vm4123_vm1, %v5798_v47, 0 }
0x24ed   :  { %v5801_v36 = vshrl.u32 %v5799_v1, 16  ;;  %v5800_v8 = vand.u32 65535, %v5799_v1 }
0x24ee   :  { %v8297_v30 = vmax.f32 %v5564_v52, %v5565_v53  ;;  %v8302_v63 = vmax.f32 %v5557_v46, %v5558_v31 }
0x24ef   :  { %v5803_v7 = vcvt.s32.f32 %v5801_v36  ;;  %v5802_v29 = vcvt.s32.f32 %v5800_v8 }
0x24f0   :  { %v5568_v12 = vsub.f32 %v5552_v25, %v8297_v30 }
0x24f2   :  { %v5571_v39 = vmul.f32 1.442695, %v5568_v12 }
0x24f4   :  { %6897 = vpow2.f32 %v5571_v39 }
0x24fe   :  { %v6898_v13 = vpop.eup %6897 }
0x24ff   :  { %v5580_v47 = vsel %vm345_vm13, %v6898_v13, 0.0 }
0x2511   :  { %v4126_v14 = vpop.xlane.xlu0 %4125  ;;  %v4136_v55 = vpop.xlane.xlu1 %4135 }
0x2512   :  { %v4137_v22 = vadd.f32 %v4136_v55, %v4126_v14 }
0x2514   :  { %v4847_v35 = vpop.f32.mrb[52].mxu0 }
0x2515   :  { %v4851_v59 = vmul.f32 %v8226_v57, %v4847_v35  ;;  %v6562_v49 = vpop.f32.mrb[53].mxu0  ;;  %v5567_v57 = vsub.f32 %v5551_v10, %v8302_v63 }
0x2517   :  { %v4852_v32 = vsel %vm4123_vm1, %v4851_v59, 0.0 }
0x2518   :  { %v5065_v62 = vpop.f32.mrb[54].mxu0  ;;  %4853 = vadd.xlane.f32.xlu1 %v4852_v32 }
0x2519   :  { %v5069_v20 = vmul.f32 %v8235_v54, %v5065_v62  ;;  %v6567_v4 = vpop.f32.mrb[55].mxu0  ;;  %v5569_v54 = vmul.f32 1.442695, %v5567_v57 }
0x251b   :  { %v5070_v44 = vsel %vm4123_vm1, %v5069_v20, 0.0  ;;  %6899 = vpow2.f32 %v5569_v54 }
0x251c   :  { %v5283_v41 = vpop.f32.mrb[56].mxu0  ;;  %5071 = vadd.xlane.f32.xlu1 %v5070_v44 }
0x251d   :  { %v5287_v40 = vmul.f32 %v8239_v16, %v5283_v41  ;;  %v6572_v33 = vpop.f32.mrb[57].mxu0  ;;  %v5501_v42 = vpop.f32.mrb[38].mxu1  ;;  %v5581_v16 = vrot.slane %v5580_v47, 4 }
0x251e   :  { %v6577_v6 = vpop.f32.mrb[39].mxu1  ;;  %v6914_v33 = vld [vmem:[%s8422_s21] ss:$0 sm:$0xff] }
0x251f   :  { %v5288_v17 = vsel %vm4123_vm1, %v5287_v40, 0.0  ;;  %v5582_v15 = vadd.f32 %v5581_v16, %v5580_v47 }
0x2520   :  { %5289 = vadd.xlane.f32.xlu1 %v5288_v17 }
0x2521   :  { %v5583_v10 = vrot.slane %v5582_v15, 2 }
0x2523   :  { %v5584_v9 = vadd.f32 %v5583_v10, %v5582_v15 }
0x2524   :  { %5806 = vadd.xlane.f32.xlu1 %v5803_v7 }
0x2525   :  { %v6900_v50 = vpop.eup %6899  ;;  %v5585_v27 = vrot.slane %v5584_v9, 1 }
0x2526   :  { %v5573_v25 = vsel %vm345_vm13, %v6900_v50, 0.0 }
0x2527   :  { %v5574_v45 = vrot.slane %v5573_v25, 4  ;;  %v5586_v46 = vadd.f32 %v5585_v27, %v5584_v9 }
0x2528   :  { %5804 = vadd.xlane.f32.xlu1 %v5802_v29 }
0x2529   :  { %v5575_v58 = vadd.f32 %v5574_v45, %v5573_v25  ;;  %6901 = vlog2.f32 %v5586_v46 }
0x252b   :  { %v5576_v51 = vrot.slane %v5575_v58, 2 }
0x252d   :  { %v5577_v52 = vadd.f32 %v5576_v51, %v5575_v58 }
0x252f   :  { %v5578_v55 = vrot.slane %v5577_v52, 1 }
0x2531   :  { %v5579_v12 = vadd.f32 %v5578_v55, %v5577_v52 }
0x2533   :  { %6903 = vlog2.f32 %v5579_v12  ;;  %v6902_v39 = vpop.eup %6901 }
0x2534   :  { %v5590_v44 = vmul.f32 0.6931472, %v6902_v39 }
0x2536   :  { %v5592_v41 = vadd.f32 %v5590_v44, %v8297_v30 }
0x2538   :  { %v8317_v36 = vadd.f32 %v6914_v33, %v5592_v41 }
0x253a   :  { %v5654_v30 = vrot.slane %v8317_v36, 7 }
0x253d   :  { %v6904_v1 = vpop.eup %6903 }
0x253e   :  { %v4214_v34 = vpop.xlane.xlu0 %4213  ;;  %v5588_v57 = vmul.f32 0.6931472, %v6904_v1 }
0x253f   :  { %v4215_v0 = vadd.f32 %v4214_v34, %v4137_v22 }
0x2540   :  { %v5591_v54 = vadd.f32 %v5588_v57, %v8302_v63  ;;  %v4745_v63 = vsel %vm8497_vm5, %v7125_v21, 8 }
0x2541   :  { %v4747_v25 = vsel %vm345_vm13, %v4745_v63, 2147483647 }
0x2542   :  { %v4340_v5 = vpop.xlane.xlu0 %4339  ;;  %v4418_v53 = vpop.xlane.xlu1 %4417  ;;  %v5650_v29 = vadd.f32 %v6914_v33, %v5591_v54  ;;  %v4748_v45 = vrot.slane %v4747_v25, 4 }
0x2543   :  { %v4341_v14 = vadd.f32 %v4340_v5, %v4215_v0 }
0x2544   :  { %v5656_v47 = vsel %vm5655_vm2, %v5654_v30, %v5650_v29  ;;  %vm4749_vm3 = vcmp.lt.s32.totalorder %v4747_v25, %v4748_v45 }
0x2545   :  { %v4419_v35 = vadd.f32 %v4418_v53, %v4341_v14  ;;  %v5658_v50 = vsel %vm4123_vm1, %v5656_v47, -inf  ;;  %v4750_v18 = vsel %vm4749_vm3, %v4747_v25, %v4748_v45 }
0x2546   :  { %v4558_v31 = vpop.xlane.xlu0 %4557  ;;  %v4636_v49 = vpop.xlane.xlu1 %4635  ;;  %v4751_v48 = vrot.slane %v4750_v18, 2 }
0x2547   :  { %v4559_v59 = vadd.f32 %v4558_v31, %v4419_v35 }
0x2548   :  { %vm4752_vm12 = vcmp.lt.s32.totalorder %v4750_v18, %v4751_v48 }
0x2549   :  { %v4637_v32 = vadd.f32 %v4636_v49, %v4559_v59  ;;  %v4753_v14 = vsel %vm4752_vm12, %v4750_v18, %v4751_v48  ;;  %v4527_v18 = vsel %vm8499_vm11, %v7125_v21, 8 }
0x254a   :  { %v4776_v62 = vpop.xlane.xlu0 %4775  ;;  %v4754_v49 = vrot.slane %v4753_v14, 1 }
0x254b   :  { %v4777_v20 = vadd.f32 %v4776_v62, %v4637_v32 }
0x254c   :  { %vm4755_vm7 = vcmp.lt.s32.totalorder %v4753_v14, %v4754_v49 }
0x254d   :  { %v4756_v39 = vsel %vm4755_vm7, %v4753_v14, %v4754_v49 }
0x254e   :  { %v4994_v4 = vpop.xlane.xlu0 %4993 }
0x2552   :  { %v5212_v22 = vpop.xlane.xlu0 %5211 }
0x255a   :  { %v5423_v40 = vpop.permute.xlu0 %5422 }
0x255b   :  { %vm5424_vm14 = vcmp.eq.s32.totalorder %v7129_v28, %v5423_v40 }
0x255c   :  { %v6042_v6 = vsel %vm5424_vm14, 1.0, %v8495_v43  ;;  %v4746_v43 = vsel %vm8496_vm4, %v7125_v21, 8 }
0x255d   :  { %v5427_v17 = vmul.f32 %v6042_v6, %v7832_v60  ;;  %v5505_v7 = vmul.f32 %v6042_v6, %v5501_v42  ;;  %v5645_v16 = vmul.f32 %v6914_v33, %v6042_v6  ;;  %v4757_v42 = vsel %vm345_vm13, %v4746_v43, 2147483647 }
0x255e   :  { %v4758_v15 = vrot.slane %v4757_v42, 4 }
0x255f   :  { %v5428_v8 = vsel %vm4123_vm1, %v5427_v17, 0.0  ;;  %v5506_v13 = vsel %vm4123_vm1, %v5505_v7, 0.0  ;;  %v5646_v60 = vsel %vm4123_vm1, %v5645_v16, 0.0 }
0x2560   :  { %5429 = vadd.xlane.f32.xlu1 %v5428_v8  ;;  %vm4759_vm6 = vcmp.lt.s32.totalorder %v4757_v42, %v4758_v15 }
0x2561   :  { %v4760_v51 = vsel %vm4759_vm6, %v4757_v42, %v4758_v15 }
0x2562   :  { %v4761_v27 = vrot.slane %v4760_v51, 2 }
0x2564   :  { %5507 = vadd.xlane.f32.xlu1 %v5506_v13  ;;  %vm4762_vm15 = vcmp.lt.s32.totalorder %v4760_v51, %v4761_v27 }
0x2565   :  { %v4763_v46 = vsel %vm4762_vm15, %v4760_v51, %v4761_v27 }
0x2566   :  { %v4764_v35 = vrot.slane %v4763_v46, 1 }
0x2568   :  { %5659 = vmax.xlane.f32.xlu1 %v5658_v50  ;;  %vm4765_vm0 = vcmp.lt.s32.totalorder %v4763_v46, %v4764_v35 }
0x256c   :  { %5647 = vadd.xlane.f32.xlu1 %v5646_v60 }
0x25a5   :  { %v4854_v10 = vpop.xlane.xlu1 %4853 }
0x25a6   :  { %v4855_v58 = vadd.f32 %v4854_v10, %v4777_v20  ;;  %v4766_v20 = vsel %vm4765_vm0, %v4763_v46, %v4764_v35  ;;  %vm5695_vm0 = vcmask 0  }
0x25a8   :  { %v4995_v9 = vadd.f32 %v4994_v4, %v4855_v58 }
0x25a9   :  { %v5072_v34 = vpop.xlane.xlu1 %5071 }
0x25aa   :  { %v5073_v56 = vadd.f32 %v5072_v34, %v4995_v9 }
0x25ac   :  { %v5213_v0 = vadd.f32 %v5212_v22, %v5073_v56  ;;  %v4528_v56 = vsel %vm8498_vm10, %v7125_v21, 8 }
0x25ad   :  { %v5290_v52 = vpop.xlane.xlu1 %5289  ;;  %v4539_v27 = vsel %vm345_vm13, %v4528_v56, 2147483647 }
0x25ae   :  { %v5291_v26 = vadd.f32 %v5290_v52, %v5213_v0  ;;  %v4529_v0 = vsel %vm345_vm13, %v4527_v18, 2147483647  ;;  %v4540_v52 = vrot.slane %v4539_v27, 4 }
0x25af   :  { %v4530_v48 = vrot.slane %v4529_v0, 4 }
0x25b0   :  { %vm4541_vm14 = vcmp.lt.s32.totalorder %v4539_v27, %v4540_v52 }
0x25b1   :  { %v5807_v5 = vpop.xlane.xlu1 %5806  ;;  %vm4531_vm4 = vcmp.lt.s32.totalorder %v4529_v0, %v4530_v48 }
0x25b2   :  { %v5809_v53 = vcvt.f32.s32 %v5807_v5  ;;  %v4532_v5 = vsel %vm4531_vm4, %v4529_v0, %v4530_v48 }
0x25b3   :  { %v4533_v23 = vrot.slane %v4532_v5, 2 }
0x25b4   :  { %v5810_v31 = vshll.u32 %v5809_v53, 16 }
0x25b5   :  { %v5805_v55 = vpop.xlane.xlu1 %5804  ;;  %vm4534_vm6 = vcmp.lt.s32.totalorder %v4532_v5, %v4533_v23 }
0x25b6   :  { %v5808_v59 = vcvt.f32.s32 %v5805_v55 }
0x25b8   :  { %v8338_v12 = vadd.s32 %v5810_v31, %v5808_v59 }
0x25ba   :  { %vm5812_vm9 = vcmp.eq.s32.totalorder %v7129_v28, %v8338_v12 }
0x25bb   :  { %v5813_v32 = vsel %vm5812_vm9, 1, %v8493_v3 }
0x25bc   :  { %v5814_v62 = vrot.slane %v5813_v32, 1  ;;  %v5815_v44 = vmul.u32 %v5813_v32, %v4756_v39  ;;  %v4535_v32 = vsel %vm4534_vm6, %v4532_v5, %v4533_v23 }
0x25be   :  { %v5816_v4 = vmul.u32 %v5814_v62, %v4766_v20 }
0x25c0   :  { %v5817_v22 = vrot.slane %v5816_v4, 7 }
0x25c2   :  { %v5818_v1 = vsel %vm5655_vm2, %v5817_v22, %v5815_v44  ;;  %v4536_v44 = vrot.slane %v4535_v32, 1 }
0x25c4   :  { %vm4537_vm12 = vcmp.lt.s32.totalorder %v4535_v32, %v4536_v44 }
0x25ed   :  { %v5430_v41 = vpop.xlane.xlu1 %5429 }
0x25ee   :  { %v5431_v57 = vadd.f32 %v5430_v41, %v5291_v26  ;;  %v4542_v26 = vsel %vm4541_vm14, %v4539_v27, %v4540_v52 }
0x25ef   :  { %v4543_v46 = vrot.slane %v4542_v26, 2 }
0x25f1   :  { %v5508_v40 = vpop.xlane.xlu1 %5507  ;;  %vm4544_vm5 = vcmp.lt.s32.totalorder %v4542_v26, %v4543_v46 }
0x25f2   :  { %v5509_v33 = vadd.f32 %v5508_v40, %v5431_v57  ;;  %v4545_v38 = vsel %vm4544_vm5, %v4542_v26, %v4543_v46 }
0x25f3   :  { %v4546_v62 = vrot.slane %v4545_v38, 1 }
0x25f5   :  { %v5660_v6 = vpop.xlane.xlu1 %5659  ;;  %vm4547_vm3 = vcmp.lt.s32.totalorder %v4545_v38, %v4546_v62 }
0x25f6   :  { %v5662_v17 = vrot.slane %v5660_v6, 1  ;;  %v5665_v54 = vsub.f32 %v5650_v29, %v5660_v6  ;;  %v4548_v57 = vsel %vm4547_vm3, %v4545_v38, %v4546_v62 }
0x25f8   :  { %v5666_v7 = vsub.f32 %v8317_v36, %v5662_v17  ;;  %v5667_v8 = vmul.f32 1.442695, %v5665_v54  ;;  %v5819_v36 = vsel %vm4123_vm1, %v5818_v1, 0 }
0x25f9   :  { %v5648_v43 = vpop.xlane.xlu1 %5647  ;;  %v5820_v10 = vand.u32 65535, %v5819_v36  ;;  %v5821_v51 = vshrl.u32 %v5819_v36, 16 }
0x25fa   :  { %v5669_v30 = vmul.f32 1.442695, %v5666_v7  ;;  %v5649_v29 = vadd.f32 %v5648_v43, %v5509_v33  ;;  %v4538_v33 = vsel %vm4537_vm12, %v4535_v32, %v4536_v44 }
0x25fb   :  { %v5822_v9 = vcvt.s32.f32 %v5820_v10  ;;  %v5823_v34 = vcvt.s32.f32 %v5821_v51 }
0x25fc   :  { %6905 = vpow2.f32 %v5669_v30 }
0x25fd   :  { %6907 = vpow2.f32 %v5667_v8 }
0x2606   :  { %v6906_v13 = vpop.eup %6905 }
0x2607   :  { %v5673_v47 = vrot.slane %v6906_v13, 7  ;;  %v6908_v50 = vpop.eup %6907 }
0x2609   :  { %v5674_v16 = vsel %vm5655_vm2, %v5673_v47, %v6908_v50 }
0x260a   :  { %v5676_v60 = vsel %vm4123_vm1, %v5674_v16, 0.0  ;;  %v8500_v16 = vld [vmem:[#allocation5_spill] sm:$0xff] }
0x260b   :  { %5677 = vadd.xlane.f32.xlu1 %v5676_v60  ;;  %v8501_v60 = vld [vmem:[#allocation7_spill] sm:$0xff] }
0x260c   :  { %vm8502_vm9 = vcmp.eq.f32.partialorder %v8500_v16, %v8501_v60 }
0x260d   :  { %v4310_v43 = vsel %vm8502_vm9, %v7125_v21, 8 }
0x2698   :  { %v5678_v63 = vpop.xlane.xlu1 %5677 }
0x2699   :  { %6909 = vlog2.f32 %v5678_v63  ;;  %v8503_v63 = vld [vmem:[#allocation6_spill] sm:$0xff] }
0x26a3   :  { %v6910_v42 = vpop.eup %6909 }
0x26a4   :  { %v5680_v25 = vmul.f32 0.6931472, %v6910_v42  ;;  %v8504_v42 = vld [vmem:[#allocation8_spill] sm:$0xff] }
0x26a5   :  { %vm8505_vm7 = vcmp.eq.f32.partialorder %v8503_v63, %v8504_v42 }
0x26a6   :  { %v5681_v15 = vadd.f32 %v5680_v25, %v5660_v6  ;;  %v4309_v25 = vsel %vm8505_vm7, %v7125_v21, 8 }
0x26a8   :  { %v5682_v45 = vsub.f32 %v5681_v15, %v5649_v29  ;;  %v4321_v29 = vsel %vm345_vm13, %v4310_v43, 2147483647  ;;  %v4311_v15 = vsel %vm345_vm13, %v4309_v25, 2147483647 }
0x26a9   :  { %v4322_v36 = vrot.slane %v4321_v29, 4 }
0x26aa   :  { %v5684_v58 = vsel %vm5683_vm8, %v5682_v45, 0.0  ;;  %v4312_v45 = vrot.slane %v4311_v15, 4 }
0x26ab   :  { %5685 = vadd.xlane.f32.xlu1 %v5684_v58  ;;  %vm4323_vm8 = vcmp.lt.s32.totalorder %v4321_v29, %v4322_v36 }
0x26ac   :  { %vm4313_vm10 = vcmp.lt.s32.totalorder %v4311_v15, %v4312_v45  ;;  %v4324_v10 = vsel %vm4323_vm8, %v4321_v29, %v4322_v36 }
0x26ad   :  { %v4314_v58 = vsel %vm4313_vm10, %v4311_v15, %v4312_v45 }
0x26ae   :  { %v4315_v51 = vrot.slane %v4314_v58, 2 }
0x26af   :  { %5824 = vadd.xlane.f32.xlu1 %v5822_v9  ;;  %v4325_v9 = vrot.slane %v4324_v10, 2 }
0x26b0   :  { %vm4316_vm14 = vcmp.lt.s32.totalorder %v4314_v58, %v4315_v51 }
0x26b1   :  { %vm4326_vm11 = vcmp.lt.s32.totalorder %v4324_v10, %v4325_v9  ;;  %v4317_v0 = vsel %vm4316_vm14, %v4314_v58, %v4315_v51 }
0x26b2   :  { %v4318_v26 = vrot.slane %v4317_v0, 1 }
0x26b3   :  { %5826 = vadd.xlane.f32.xlu1 %v5823_v34  ;;  %v4327_v34 = vsel %vm4326_vm11, %v4324_v10, %v4325_v9 }
0x26b4   :  { %v4328_v52 = vrot.slane %v4327_v34, 1  ;;  %vm4319_vm5 = vcmp.lt.s32.totalorder %v4317_v0, %v4318_v26 }
0x26b6   :  { %vm4329_vm13 = vcmp.lt.s32.totalorder %v4327_v34, %v4328_v52 }
0x2738   :  { %v5686_v53 = vpop.xlane.xlu1 %5685 }
0x2739   :  { %v5687_v14 = vrot.slane %v5686_v53, 4 }
0x273b   :  { %v5688_v37 = vadd.f32 %v5687_v14, %v5686_v53  ;;  %v4330_v14 = vsel %vm4329_vm13, %v4327_v34, %v4328_v52 }
0x273c   :  { %v5825_v55 = vpop.xlane.xlu1 %5824 }
0x273d   :  { %v5689_v35 = vrot.slane %v5688_v37, 2  ;;  %v5828_v20 = vcvt.f32.s32 %v5825_v55 }
0x273f   :  { %v5690_v24 = vadd.f32 %v5689_v35, %v5688_v37  ;;  %v4320_v37 = vsel %vm4319_vm5, %v4317_v0, %v4318_v26 }
0x2740   :  { %v5827_v31 = vpop.xlane.xlu1 %5826 }
0x2741   :  { %v5829_v59 = vcvt.f32.s32 %v5827_v31  ;;  %v5691_v49 = vrot.slane %v5690_v24, 1 }
0x2743   :  { %v5830_v4 = vshll.u32 %v5829_v59, 16  ;;  %v5692_v39 = vadd.f32 %v5691_v49, %v5690_v24 }
0x2745   :  { %v8358_v22 = vadd.s32 %v5830_v4, %v5828_v20  ;;  %6718 = vpush %v5692_v39 }
0x2747   :  { %vm5832_vm15 = vcmp.eq.s32.totalorder %v7129_v28, %v8358_v22 }
0x2748   :  { %v5833_v1 = vsel %vm5832_vm15, 1, %v8493_v3 }
0x2749   :  { %v5834_v41 = vrot.slane %v5833_v1, 1  ;;  %v5835_v6 = vmul.u32 %v5833_v1, %v4538_v33 }
0x274b   :  { %v5836_v40 = vmul.u32 %v5834_v41, %v4548_v57 }
0x274d   :  { %v5837_v17 = vrot.slane %v5836_v40, 7 }
0x274f   :  { %v5838_v54 = vsel %vm5655_vm2, %v5837_v17, %v5835_v6 }
0x2750   :  { %v5839_v7 = vsel %vm4123_vm1, %v5838_v54, 0 }
0x2751   :  { %v5841_v8 = vshrl.u32 %v5839_v7, 16  ;;  %v5840_v30 = vand.u32 65535, %v5839_v7 }
0x2753   :  { %v5843_v13 = vcvt.s32.f32 %v5841_v8  ;;  %v5842_v47 = vcvt.s32.f32 %v5840_v30 }
0x2755   :  { %5846 = vadd.xlane.f32.xlu0 %v5843_v13  ;;  %5844 = vadd.xlane.f32.xlu1 %v5842_v47 }
0x2776   :  { %s6719_s21 = spop %6718 }
0x2777   :  { %v5694_v50 = vstv %s6719_s21 }
0x2778   :  { %5696 = vst.msk [vmem:[#allocation2] sm:$0x1] %vm5695_vm0, %v5694_v50 }
0x27e2   :  { %v5847_v56 = vpop.xlane.xlu0 %5846  ;;  %v5845_v18 = vpop.xlane.xlu1 %5844 }
0x27e3   :  { %v5849_v27 = vcvt.f32.s32 %v5847_v56  ;;  %v5848_v48 = vcvt.f32.s32 %v5845_v18 }
0x27e5   :  { %v5850_v21 = vshll.u32 %v5849_v27, 16 }
0x27e7   :  { %v5851_v5 = vadd.s32 %v5850_v21, %v5848_v48 }
0x27e9   :  { %vm5852_vm4 = vcmp.eq.s32.totalorder %v7129_v28, %v5851_v5 }
0x27ea   :  { %v5853_v53 = vsel %vm5852_vm4, 1, %v8493_v3 }
0x27eb   :  { %v5854_v46 = vrot.slane %v5853_v53, 1  ;;  %v5855_v55 = vmul.u32 %v5853_v53, %v4320_v37 }
0x27ed   :  { %v5856_v23 = vmul.u32 %v5854_v46, %v4330_v14 }
0x27ef   :  { %v5857_v35 = vrot.slane %v5856_v23, 7 }
0x27f1   :  { %v5858_v24 = vsel %vm5655_vm2, %v5857_v35, %v5855_v55 }
0x27f2   :  { %v5859_v38 = vsel %vm4123_vm1, %v5858_v24, 0 }
0x27f3   :  { %v5860_v31 = vand.u32 65535, %v5859_v38  ;;  %v5861_v49 = vshrl.u32 %v5859_v38, 16 }
0x27f5   :  { %v5862_v59 = vcvt.s32.f32 %v5860_v31  ;;  %v5863_v32 = vcvt.s32.f32 %v5861_v49 }
0x27f7   :  { %5864 = vadd.xlane.f32.xlu1 %v5862_v59 }
0x27fb   :  { %5866 = vadd.xlane.f32.xlu1 %v5863_v32 }
0x27fc   :  { %6926 = shalt.err (!%p6923_p4)
}
0x27fd   :  { %s6927_s24 = scalar_lea.hbm %s8423_s22, 16 }
0x27fe   :  { %p6928_p5 = scmp.ne.s32.totalorder %s8423_s22, %s6927_s24  ;;  %p6931_p6 = scmp.lt.u32.totalorder %s6927_s24, %s8423_s22 }
0x2800   :  { %p6933_p7 = pnand %p6931_p6, %p6928_p5 }
0x2802   :  { %6936 = shalt.err (!%p6933_p7)
}
0x2803   :  { %5896 = dma.vmem_to_hbm [thread:$0]  %s5894_s11, 16, %s8423_s22, [#allocation3]   ;;  %vm5872_vm2 = vcmask 7168   ;;  %vm5874_vm6 = vcmask 15360   ;;  %vm5876_vm3 = vcmask 23552   ;;  %vm5878_vm15 = vcmask 31744  }
0x2804   :  { %vm5880_vm12 = vcmask 39936   ;;  %vm5882_vm0 = vcmask 48128   ;;  %vm5884_vm9 = vcmask 56320  }
0x2884   :  { %v5865_v28 = vpop.xlane.xlu1 %5864 }
0x2885   :  { %v5868_v20 = vcvt.f32.s32 %v5865_v28 }
0x2888   :  { %v5867_v3 = vpop.xlane.xlu1 %5866 }
0x2889   :  { %v5869_v62 = vcvt.f32.s32 %v5867_v3 }
0x288b   :  { %v5870_v4 = vshll.u32 %v5869_v62, 16 }
0x288d   :  { %v5871_v39 = vadd.s32 %v5870_v4, %v5868_v20 }
0x288f   :  { %v5873_v44 = vsel %vm5872_vm2, %v5871_v39, %v5851_v5 }
0x2890   :  { %v5875_v1 = vsel %vm5874_vm6, %v5873_v44, %v8358_v22 }
0x2891   :  { %v5877_v41 = vsel %vm5876_vm3, %v5875_v1, %v8338_v12 }
0x2892   :  { %v5879_v57 = vsel %vm5878_vm15, %v5877_v41, %v8287_v11 }
0x2893   :  { %v5881_v40 = vsel %vm5880_vm12, %v5879_v57, %v8209_v61 }
0x2894   :  { %v5883_v33 = vsel %vm5882_vm0, %v5881_v40, %v8141_v2 }
0x2895   :  { %v5885_v6 = vsel %vm5884_vm9, %v5883_v33, %v8110_v19 }
0x2896   :  { %5886 = vst.msk [vmem:[%s8424_s23] sm:$0x3] %vm4123_vm1, %v5885_v6 }
0x2897   :  { %6937 = dma.done.wait [#allocation3], 16  }
0x2898   :  { %6938 = vsyncadd [#allocation3], 4294967280 }
0x2899   :  { %5904 = vsyncpa [#allocation3], 1 }

</bundles_post_ra>
